<compile_context>
chip_gen: v7x
topology: tpu7x:2x2x1
jax: 0.10.0
libtpu: 0.0.40
codegen_flags: <defaults>
</compile_context>

<pallas_src>
import jax
import jax.numpy as jnp
from jax.experimental import pallas as pl
from jax.experimental.pallas import tpu as pltpu

MXU_DTYPE = jnp.bfloat16   # set to jnp.float32 for bit-closer parity with f32
NC_PAD = 128               # fc5 output padded to a full lane tile
N_HID = 100                # fc4 hidden width


# --------------------- precomputed constant builders (host side) -------------

def _pool_matrix(n, rows_pad, cols_pad):
    """(rows_pad, cols_pad) f32: 2x2/stride-2 average pool applied from the
    right to a (C, n*n) spatial-in-lanes activation.  [q, k] = 0.25 iff pixel q
    of the n x n grid lies in window k of the (n/2)x(n/2) grid; pad rows/cols
    are zero."""
    h = n // 2
    q = jnp.arange(n * n)
    i, j = q // n, q % n
    k = (i // 2) * h + (j // 2)
    mat = jax.nn.one_hot(k, h * h, dtype=jnp.float32) * 0.25
    return jnp.pad(mat, ((0, rows_pad - n * n), (0, cols_pad - h * h)))


def _border_masks(n, width):
    """(9, 1, width) f32 validity masks for the 9 rolled copies of a (C, n*n)
    spatial-in-lanes activation (3x3 conv, padding=1).  Lanes >= n*n (lane
    padding) are always 0, which reproduces Conv2d zero padding."""
    q = jnp.arange(width)
    i, j = q // n, q % n
    inside = q < n * n
    rows = []
    for kh in range(3):
        for kw in range(3):
            dh, dw = kh - 1, kw - 1
            ok = inside & (i + dh >= 0) & (i + dh < n) & (j + dw >= 0) & (j + dw < n)
            rows.append(jnp.where(ok, 1.0, 0.0).astype(jnp.float32).reshape(1, 1, width))
    return jnp.concatenate(rows, axis=0)


def _conv1_pool_patches(x_nchw):
    """(B, 48, 256) im2col slab for the fused conv1(3x3,pad=1)+avg_pool2d(2):
    a 4x4/stride-2 window on the zero-padded input.  Row = ci*16 + dh*4 + dw,
    lane = i*16 + j of the 16x16 pooled grid."""
    B = x_nchw.shape[0]
    xp = jnp.pad(x_nchw.astype(jnp.float32), ((0, 0), (0, 0), (1, 2), (1, 2)))
    taps = [xp[:, :, dh:dh + 32:2, dw:dw + 32:2]            # (B, 3, 16, 16)
            for dh in range(4) for dw in range(4)]
    pat = jnp.stack(taps, axis=2)                            # (B, 3, 16, 16, 16)
    return pat.reshape(B, 48, 256)


# ------------------------------ fused kernel ---------------------------------

def _im2col_rolls(act, mask_ref, n, width):
    """9 spatially shifted copies of a (C, width) spatial-in-lanes activation
    (3x3 taps, zero padding), stacked along sublanes -> (9*C, width).  Shifts
    ride the XLU via pltpu.roll; out-of-image positions come from the
    precomputed border masks (valid positions never wrap, so the rotate is
    exact)."""
    pieces = []
    for kh in range(3):
        for kw in range(3):
            t = kh * 3 + kw
            d = (kh - 1) * n + (kw - 1)              # flattened spatial offset
            if d == 0:
                pieces.append(act)                   # centre tap: no shift/mask
            else:
                rolled = pltpu.roll(act, (-d) % width, 1)   # lane roll (XLU)
                pieces.append(rolled * mask_ref[t])
    return jnp.concatenate(pieces, axis=0)


def toy3ap1_kernel(patches_ref, w1_ref, b1_ref,
                   m2_ref, w2_ref, b2_ref, p16_ref,
                   m3_ref, w3_ref, b3_ref, p8_ref,
                   efc_ref, w4w_ref, b4_ref, gfc_ref,
                   w5_ref, b5_ref, out_ref):
    f32 = jnp.float32

    # conv1 (+bias) fused with avg_pool2d(2), then ReLU.           (16, 256)
    a1 = jnp.dot(w1_ref[...], patches_ref[0], preferred_element_type=f32)
    a1 = jnp.maximum(a1 + b1_ref[...], 0.0)

    # conv2 -> ReLU -> avg_pool2d(2).       spatial 16x16 = 256 lanes
    slab2 = _im2col_rolls(a1, m2_ref, 16, 256).astype(MXU_DTYPE)   # (144, 256)
    r2 = jnp.dot(w2_ref[...], slab2, preferred_element_type=f32)
    r2 = jnp.maximum(r2 + b2_ref[...], 0.0)                        # (32, 256)
    a2 = jnp.dot(r2.astype(MXU_DTYPE), p16_ref[...],
                 preferred_element_type=f32)                       # (32, 128)

    # conv3 -> ReLU -> avg_pool2d(2).       spatial 8x8 = 64, lane-padded to 128
    slab3 = _im2col_rolls(a2, m3_ref, 8, 128).astype(MXU_DTYPE)    # (288, 128)
    r3 = jnp.dot(w3_ref[...], slab3, preferred_element_type=f32)
    r3 = jnp.maximum(r3 + b3_ref[...], 0.0)                        # (64, 128)
    pooled = jnp.dot(r3.astype(MXU_DTYPE), p8_ref[...],
                     preferred_element_type=f32)                   # (64, 16)

    # fc4 (NCHW flatten folded into the weight layout) + ReLU, then fc5.
    # wide[c, n*16+p] = pooled[c, p];  prod = wide * fc4_w[n, c*16+p];
    # sum over c (ones-matmul) then over p (group-sum matmul) -> (1, 100).
    wide = jnp.dot(pooled.astype(MXU_DTYPE), efc_ref[...],
                   preferred_element_type=f32)                     # (64, 1600)
    prod = wide * w4w_ref[...]                                     # (64, 1600)
    rowsum = jnp.dot(jnp.ones((1, 64), f32), prod,
                     preferred_element_type=f32)                   # (1, 1600)
    h4 = jnp.dot(rowsum, gfc_ref[...], preferred_element_type=f32) + b4_ref[...]
    h4 = jnp.maximum(h4, 0.0)                                      # (1, 100)
    out = jnp.dot(h4, w5_ref[...], preferred_element_type=f32) + b5_ref[...]
    out_ref[...] = out.reshape(1, 1, NC_PAD)


# ------------------------------ wrapper ---------------------------------------

def forward(x_nchw, kp):
    """x_nchw: (B, 3, 32, 32) f32 -> (B, NC_PAD) padded logits."""
    B = x_nchw.shape[0]
    patches = _conv1_pool_patches(x_nchw).astype(MXU_DTYPE)        # (B, 48, 256)

    def c2(r, c):
        return pl.BlockSpec((r, c), lambda b: (0, 0))

    def c3(a, r, c):
        return pl.BlockSpec((a, r, c), lambda b: (0, 0, 0))

    out = pl.pallas_call(
        toy3ap1_kernel,
        out_shape=jax.ShapeDtypeStruct((B, 1, NC_PAD), jnp.float32),
        grid=(B,),
        in_specs=[
            pl.BlockSpec((1, 48, 256), lambda b: (b, 0, 0)),  # conv1+pool patches
            c2(16, 48),        # w1 (fused conv1+pool)
            c2(16, 1),         # b1
            c3(9, 1, 256),     # conv2 border masks
            c2(32, 144),       # w2 (im2col layout)
            c2(32, 1),         # b2
            c2(256, 128),      # pool 16x16 -> 8x8 (lane-padded)
            c3(9, 1, 128),     # conv3 border masks
            c2(64, 288),       # w3 (im2col layout)
            c2(64, 1),         # b3
            c2(128, 16),       # pool 8x8 -> 4x4
            c2(16, 16 * N_HID),      # fc4 lane-expansion E
            c2(64, 16 * N_HID),      # fc4 weights (wide layout)
            c2(1, N_HID),            # b4
            c2(16 * N_HID, N_HID),   # fc4 group-sum G
            c2(N_HID, NC_PAD),       # w5 (lane-padded)
            c2(1, NC_PAD),           # b5 (lane-padded)
        ],
        out_specs=pl.BlockSpec((1, 1, NC_PAD), lambda b: (b, 0, 0)),
        compiler_params=pltpu.CompilerParams(
            dimension_semantics=("parallel",),   # v7x: one image per TensorCore
            vmem_limit_bytes=32 * 1024 * 1024,
        ),
    )(patches, kp["w1"], kp["b1"], kp["m2"], kp["w2"], kp["b2"], kp["p16"],
      kp["m3"], kp["w3"], kp["b3"], kp["p8"], kp["efc"], kp["w4w"], kp["b4"],
      kp["gfc"], kp["w5"], kp["b5"])
    return out.reshape(B, NC_PAD)


# ------------------------------ parameters -----------------------------------

def init_params(key, num_classes=10):
    """PyTorch-layout parameters with the module's init scheme."""
    p = {}
    for name, cin, cout in [("conv1", 3, 16), ("conv2", 16, 32), ("conv3", 32, 64)]:
        key, k = jax.random.split(key)
        std = (2.0 / (cout * 3 * 3)) ** 0.5           # kaiming_normal_(fan_out)
        p[f"{name}_w"] = jax.random.normal(k, (cout, cin, 3, 3), jnp.float32) * std
        p[f"{name}_b"] = jnp.zeros((cout,), jnp.float32)
    key, k4, k5 = jax.random.split(key, 3)
    std4 = (2.0 / (1024 + N_HID)) ** 0.5              # xavier_normal_
    p["fc4_w"] = jax.random.normal(k4, (N_HID, 1024), jnp.float32) * std4
    p["fc4_b"] = jnp.zeros((N_HID,), jnp.float32)
    std5 = (2.0 / (N_HID + num_classes)) ** 0.5
    p["fc5_w"] = jax.random.normal(k5, (num_classes, N_HID), jnp.float32) * std5
    p["fc5_b"] = jnp.zeros((num_classes,), jnp.float32)
    return p


def prepare_params(p):
    """PyTorch layouts -> kernel layouts (run once, outside the hot path)."""
    f32 = jnp.float32
    kp = {}
    # conv1 fused with the following 2x2 average pool -> 4x4/stride-2 kernel.
    w1 = p["conv1_w"].astype(f32)                                 # (16, 3, 3, 3)
    w1e = jnp.zeros((16, 3, 4, 4), f32)
    for a in (0, 1):
        for b in (0, 1):
            w1e = w1e.at[:, :, a:a + 3, b:b + 3].add(w1)
    kp["w1"] = (0.25 * w1e).reshape(16, 48).astype(MXU_DTYPE)     # col = ci*16+dh*4+dw
    kp["b1"] = p["conv1_b"].reshape(16, 1).astype(f32)
    # conv2 / conv3: one im2col matmul each; weight col = t*Cin + ci, t = kh*3+kw.
    kp["w2"] = jnp.transpose(p["conv2_w"], (0, 2, 3, 1)).reshape(32, 144).astype(MXU_DTYPE)
    kp["b2"] = p["conv2_b"].reshape(32, 1).astype(f32)
    kp["w3"] = jnp.transpose(p["conv3_w"], (0, 2, 3, 1)).reshape(64, 288).astype(MXU_DTYPE)
    kp["b3"] = p["conv3_b"].reshape(64, 1).astype(f32)
    # roll border masks and pooling matrices.
    kp["m2"] = _border_masks(16, 256)                             # (9, 1, 256) f32
    kp["m3"] = _border_masks(8, 128)                              # (9, 1, 128) f32
    kp["p16"] = _pool_matrix(16, 256, 128).astype(MXU_DTYPE)      # (256, 128)
    kp["p8"] = _pool_matrix(8, 128, 16).astype(MXU_DTYPE)         # (128, 16)
    # fc4: NCHW flatten index c*16 + p folded into a (64, 1600) weight layout.
    w4 = p["fc4_w"].astype(f32)                                   # (100, 1024)
    kp["w4w"] = jnp.transpose(w4.reshape(N_HID, 64, 16), (1, 0, 2)).reshape(64, 16 * N_HID)
    kp["b4"] = p["fc4_b"].reshape(1, N_HID).astype(f32)
    kp["efc"] = jnp.tile(jnp.eye(16, dtype=f32), (1, N_HID)).astype(MXU_DTYPE)  # (16, 1600)
    kp["gfc"] = jnp.repeat(jnp.eye(N_HID, dtype=f32), 16, axis=0)               # (1600, 100)
    # fc5 padded to a lane-dense 128-wide output.
    nc = p["fc5_w"].shape[0]
    kp["w5"] = jnp.zeros((N_HID, NC_PAD), f32).at[:, :nc].set(p["fc5_w"].T.astype(f32))
    kp["b5"] = jnp.zeros((1, NC_PAD), f32).at[:, :nc].set(p["fc5_b"].astype(f32))
    return kp


# ------------------------------ main ------------------------------------------

if __name__ == "__main__":
    key = jax.random.PRNGKey(0)
    kx, kp_key = jax.random.split(key)
    num_classes = 10
    # 32x32 input is implied by fc4_si: 64 * (32 / 2**3)**2 = 64*4*4 = 1024.
    x = jax.random.normal(kx, (2, 3, 32, 32), jnp.float32)
    params = init_params(kp_key, num_classes=num_classes)
    kparams = prepare_params(params)

    logits_padded = jax.jit(forward)(x, kparams)
    logits_padded = jax.block_until_ready(logits_padded)
    logits = logits_padded[:, :num_classes]
    assert logits.shape == (2, num_classes), logits.shape
    print("KERNEL_OK")
</pallas_src>

<mosaic_0001>
module attributes {stable_mosaic.version = 11 : i64} {
  func.func @toy3ap1_kernel(%arg0: i32, %arg1: memref<1x48x256xbf16, #tpu.memory_space<vmem>>, %arg2: memref<16x48xbf16, #tpu.memory_space<vmem>>, %arg3: memref<16x1xf32, #tpu.memory_space<vmem>>, %arg4: memref<9x1x256xf32, #tpu.memory_space<vmem>>, %arg5: memref<32x144xbf16, #tpu.memory_space<vmem>>, %arg6: memref<32x1xf32, #tpu.memory_space<vmem>>, %arg7: memref<256x128xbf16, #tpu.memory_space<vmem>>, %arg8: memref<9x1x128xf32, #tpu.memory_space<vmem>>, %arg9: memref<64x288xbf16, #tpu.memory_space<vmem>>, %arg10: memref<64x1xf32, #tpu.memory_space<vmem>>, %arg11: memref<128x16xbf16, #tpu.memory_space<vmem>>, %arg12: memref<16x1600xbf16, #tpu.memory_space<vmem>>, %arg13: memref<64x1600xf32, #tpu.memory_space<vmem>>, %arg14: memref<1x100xf32, #tpu.memory_space<vmem>>, %arg15: memref<1600x100xf32, #tpu.memory_space<vmem>>, %arg16: memref<100x128xf32, #tpu.memory_space<vmem>>, %arg17: memref<1x128xf32, #tpu.memory_space<vmem>>, %arg18: memref<1x1x128xf32, #tpu.memory_space<vmem>>) attributes {dimension_semantics = [#tpu.dimension_semantics<parallel>], iteration_bounds = array<i64: 2>, scalar_prefetch = 0 : i64, scratch_operands = 0 : i64, tpu.core_type = #tpu.core_type<tc>, window_params = [{transform_indices = @transform_0, window_bounds = array<i64: 1, 48, 256>}, {pipeline_mode = #tpu.pipeline_mode<synchronous>, transform_indices = @transform_1, window_bounds = array<i64: 16, 48>}, {pipeline_mode = #tpu.pipeline_mode<synchronous>, transform_indices = @transform_2, window_bounds = array<i64: 16, 1>}, {pipeline_mode = #tpu.pipeline_mode<synchronous>, transform_indices = @transform_3, window_bounds = array<i64: 9, 1, 256>}, {pipeline_mode = #tpu.pipeline_mode<synchronous>, transform_indices = @transform_4, window_bounds = array<i64: 32, 144>}, {pipeline_mode = #tpu.pipeline_mode<synchronous>, transform_indices = @transform_5, window_bounds = array<i64: 32, 1>}, {pipeline_mode = #tpu.pipeline_mode<synchronous>, transform_indices = @transform_6, window_bounds = array<i64: 256, 128>}, {pipeline_mode = #tpu.pipeline_mode<synchronous>, transform_indices = @transform_7, window_bounds = array<i64: 9, 1, 128>}, {pipeline_mode = #tpu.pipeline_mode<synchronous>, transform_indices = @transform_8, window_bounds = array<i64: 64, 288>}, {pipeline_mode = #tpu.pipeline_mode<synchronous>, transform_indices = @transform_9, window_bounds = array<i64: 64, 1>}, {pipeline_mode = #tpu.pipeline_mode<synchronous>, transform_indices = @transform_10, window_bounds = array<i64: 128, 16>}, {pipeline_mode = #tpu.pipeline_mode<synchronous>, transform_indices = @transform_11, window_bounds = array<i64: 16, 1600>}, {pipeline_mode = #tpu.pipeline_mode<synchronous>, transform_indices = @transform_12, window_bounds = array<i64: 64, 1600>}, {pipeline_mode = #tpu.pipeline_mode<synchronous>, transform_indices = @transform_13, window_bounds = array<i64: 1, 100>}, {pipeline_mode = #tpu.pipeline_mode<synchronous>, transform_indices = @transform_14, window_bounds = array<i64: 1600, 100>}, {pipeline_mode = #tpu.pipeline_mode<synchronous>, transform_indices = @transform_15, window_bounds = array<i64: 100, 128>}, {pipeline_mode = #tpu.pipeline_mode<synchronous>, transform_indices = @transform_16, window_bounds = array<i64: 1, 128>}, {transform_indices = @transform_17, window_bounds = array<i64: 1, 1, 128>}]} {
    %c0 = arith.constant 0 : index
    %c0_0 = arith.constant 0 : index
    %0 = vector.load %arg2[%c0, %c0_0] : memref<16x48xbf16, #tpu.memory_space<vmem>>, vector<16x48xbf16>
    %c0_1 = arith.constant 0 : index
    %c0_2 = arith.constant 0 : index
    %c0_3 = arith.constant 0 : index
    %1 = vector.load %arg1[%c0_1, %c0_2, %c0_3] : memref<1x48x256xbf16, #tpu.memory_space<vmem>>, vector<1x48x256xbf16>
    %2 = vector.shape_cast %1 : vector<1x48x256xbf16> to vector<48x256xbf16>
    %cst = arith.constant dense<0.000000e+00> : vector<16x256xf32>
    %3 = tpu.matmul %0, %2, %cst {dimension_numbers = #tpu.dot_dimension_numbers<[1], [0], [0], [1], [0, 0, 1, 1], [], []>} : vector<16x48xbf16>, vector<48x256xbf16>, vector<16x256xf32> -> vector<16x256xf32>
    %c0_4 = arith.constant 0 : index
    %c0_5 = arith.constant 0 : index
    %4 = vector.load %arg3[%c0_4, %c0_5] : memref<16x1xf32, #tpu.memory_space<vmem>>, vector<16x1xf32>
    %5 = vector.broadcast %4 : vector<16x1xf32> to vector<16x256xf32>
    %6 = arith.addf %3, %5 : vector<16x256xf32>
    %cst_6 = arith.constant 0.000000e+00 : f32
    %7 = vector.broadcast %cst_6 : f32 to vector<16x256xf32>
    %8 = arith.maximumf %6, %7 : vector<16x256xf32>
    %c17_i32 = arith.constant 17 : i32
    %9 = tpu.dynamic_rotate %8 by %c17_i32 dim 1 : vector<16x256xf32>, i32 -> vector<16x256xf32>
    %c0_7 = arith.constant 0 : index
    %c0_8 = arith.constant 0 : index
    %c0_9 = arith.constant 0 : index
    %10 = vector.load %arg4[%c0_7, %c0_8, %c0_9] : memref<9x1x256xf32, #tpu.memory_space<vmem>>, vector<1x1x256xf32>
    %11 = vector.shape_cast %10 : vector<1x1x256xf32> to vector<1x256xf32>
    %12 = vector.broadcast %11 : vector<1x256xf32> to vector<16x256xf32>
    %13 = arith.mulf %9, %12 : vector<16x256xf32>
    %c16_i32 = arith.constant 16 : i32
    %14 = tpu.dynamic_rotate %8 by %c16_i32 dim 1 : vector<16x256xf32>, i32 -> vector<16x256xf32>
    %c1 = arith.constant 1 : index
    %c0_10 = arith.constant 0 : index
    %c0_11 = arith.constant 0 : index
    %15 = vector.load %arg4[%c1, %c0_10, %c0_11] : memref<9x1x256xf32, #tpu.memory_space<vmem>>, vector<1x1x256xf32>
    %16 = vector.shape_cast %15 : vector<1x1x256xf32> to vector<1x256xf32>
    %17 = vector.broadcast %16 : vector<1x256xf32> to vector<16x256xf32>
    %18 = arith.mulf %14, %17 : vector<16x256xf32>
    %c15_i32 = arith.constant 15 : i32
    %19 = tpu.dynamic_rotate %8 by %c15_i32 dim 1 : vector<16x256xf32>, i32 -> vector<16x256xf32>
    %c2 = arith.constant 2 : index
    %c0_12 = arith.constant 0 : index
    %c0_13 = arith.constant 0 : index
    %20 = vector.load %arg4[%c2, %c0_12, %c0_13] : memref<9x1x256xf32, #tpu.memory_space<vmem>>, vector<1x1x256xf32>
    %21 = vector.shape_cast %20 : vector<1x1x256xf32> to vector<1x256xf32>
    %22 = vector.broadcast %21 : vector<1x256xf32> to vector<16x256xf32>
    %23 = arith.mulf %19, %22 : vector<16x256xf32>
    %c1_i32 = arith.constant 1 : i32
    %24 = tpu.dynamic_rotate %8 by %c1_i32 dim 1 : vector<16x256xf32>, i32 -> vector<16x256xf32>
    %c3 = arith.constant 3 : index
    %c0_14 = arith.constant 0 : index
    %c0_15 = arith.constant 0 : index
    %25 = vector.load %arg4[%c3, %c0_14, %c0_15] : memref<9x1x256xf32, #tpu.memory_space<vmem>>, vector<1x1x256xf32>
    %26 = vector.shape_cast %25 : vector<1x1x256xf32> to vector<1x256xf32>
    %27 = vector.broadcast %26 : vector<1x256xf32> to vector<16x256xf32>
    %28 = arith.mulf %24, %27 : vector<16x256xf32>
    %c255_i32 = arith.constant 255 : i32
    %29 = tpu.dynamic_rotate %8 by %c255_i32 dim 1 : vector<16x256xf32>, i32 -> vector<16x256xf32>
    %c5 = arith.constant 5 : index
    %c0_16 = arith.constant 0 : index
    %c0_17 = arith.constant 0 : index
    %30 = vector.load %arg4[%c5, %c0_16, %c0_17] : memref<9x1x256xf32, #tpu.memory_space<vmem>>, vector<1x1x256xf32>
    %31 = vector.shape_cast %30 : vector<1x1x256xf32> to vector<1x256xf32>
    %32 = vector.broadcast %31 : vector<1x256xf32> to vector<16x256xf32>
    %33 = arith.mulf %29, %32 : vector<16x256xf32>
    %c241_i32 = arith.constant 241 : i32
    %34 = tpu.dynamic_rotate %8 by %c241_i32 dim 1 : vector<16x256xf32>, i32 -> vector<16x256xf32>
    %c6 = arith.constant 6 : index
    %c0_18 = arith.constant 0 : index
    %c0_19 = arith.constant 0 : index
    %35 = vector.load %arg4[%c6, %c0_18, %c0_19] : memref<9x1x256xf32, #tpu.memory_space<vmem>>, vector<1x1x256xf32>
    %36 = vector.shape_cast %35 : vector<1x1x256xf32> to vector<1x256xf32>
    %37 = vector.broadcast %36 : vector<1x256xf32> to vector<16x256xf32>
    %38 = arith.mulf %34, %37 : vector<16x256xf32>
    %c240_i32 = arith.constant 240 : i32
    %39 = tpu.dynamic_rotate %8 by %c240_i32 dim 1 : vector<16x256xf32>, i32 -> vector<16x256xf32>
    %c7 = arith.constant 7 : index
    %c0_20 = arith.constant 0 : index
    %c0_21 = arith.constant 0 : index
    %40 = vector.load %arg4[%c7, %c0_20, %c0_21] : memref<9x1x256xf32, #tpu.memory_space<vmem>>, vector<1x1x256xf32>
    %41 = vector.shape_cast %40 : vector<1x1x256xf32> to vector<1x256xf32>
    %42 = vector.broadcast %41 : vector<1x256xf32> to vector<16x256xf32>
    %43 = arith.mulf %39, %42 : vector<16x256xf32>
    %c239_i32 = arith.constant 239 : i32
    %44 = tpu.dynamic_rotate %8 by %c239_i32 dim 1 : vector<16x256xf32>, i32 -> vector<16x256xf32>
    %c8 = arith.constant 8 : index
    %c0_22 = arith.constant 0 : index
    %c0_23 = arith.constant 0 : index
    %45 = vector.load %arg4[%c8, %c0_22, %c0_23] : memref<9x1x256xf32, #tpu.memory_space<vmem>>, vector<1x1x256xf32>
    %46 = vector.shape_cast %45 : vector<1x1x256xf32> to vector<1x256xf32>
    %47 = vector.broadcast %46 : vector<1x256xf32> to vector<16x256xf32>
    %48 = arith.mulf %44, %47 : vector<16x256xf32>
    %49 = tpu.concatenate %13, %18, %23, %28, %8, %33, %38, %43, %48 in 0 : vector<16x256xf32>, vector<16x256xf32>, vector<16x256xf32>, vector<16x256xf32>, vector<16x256xf32>, vector<16x256xf32>, vector<16x256xf32>, vector<16x256xf32>, vector<16x256xf32> -> vector<144x256xf32>
    %50 = arith.truncf %49 : vector<144x256xf32> to vector<144x256xbf16>
    %c0_24 = arith.constant 0 : index
    %c0_25 = arith.constant 0 : index
    %51 = vector.load %arg5[%c0_24, %c0_25] : memref<32x144xbf16, #tpu.memory_space<vmem>>, vector<32x144xbf16>
    %cst_26 = arith.constant dense<0.000000e+00> : vector<32x256xf32>
    %52 = tpu.matmul %51, %50, %cst_26 {dimension_numbers = #tpu.dot_dimension_numbers<[1], [0], [0], [1], [0, 0, 1, 1], [], []>} : vector<32x144xbf16>, vector<144x256xbf16>, vector<32x256xf32> -> vector<32x256xf32>
    %c0_27 = arith.constant 0 : index
    %c0_28 = arith.constant 0 : index
    %53 = vector.load %arg6[%c0_27, %c0_28] : memref<32x1xf32, #tpu.memory_space<vmem>>, vector<32x1xf32>
    %54 = vector.broadcast %53 : vector<32x1xf32> to vector<32x256xf32>
    %55 = arith.addf %52, %54 : vector<32x256xf32>
    %cst_29 = arith.constant 0.000000e+00 : f32
    %56 = vector.broadcast %cst_29 : f32 to vector<32x256xf32>
    %57 = arith.maximumf %55, %56 : vector<32x256xf32>
    %58 = arith.truncf %57 : vector<32x256xf32> to vector<32x256xbf16>
    %c0_30 = arith.constant 0 : index
    %c0_31 = arith.constant 0 : index
    %59 = vector.load %arg7[%c0_30, %c0_31] : memref<256x128xbf16, #tpu.memory_space<vmem>>, vector<256x128xbf16>
    %cst_32 = arith.constant dense<0.000000e+00> : vector<32x128xf32>
    %60 = tpu.matmul %58, %59, %cst_32 {dimension_numbers = #tpu.dot_dimension_numbers<[1], [0], [0], [1], [0, 0, 1, 1], [], []>} : vector<32x256xbf16>, vector<256x128xbf16>, vector<32x128xf32> -> vector<32x128xf32>
    %c9_i32 = arith.constant 9 : i32
    %61 = tpu.dynamic_rotate %60 by %c9_i32 dim 1 : vector<32x128xf32>, i32 -> vector<32x128xf32>
    %c0_33 = arith.constant 0 : index
    %c0_34 = arith.constant 0 : index
    %c0_35 = arith.constant 0 : index
    %62 = vector.load %arg8[%c0_33, %c0_34, %c0_35] : memref<9x1x128xf32, #tpu.memory_space<vmem>>, vector<1x1x128xf32>
    %63 = vector.shape_cast %62 : vector<1x1x128xf32> to vector<1x128xf32>
    %64 = vector.broadcast %63 : vector<1x128xf32> to vector<32x128xf32>
    %65 = arith.mulf %61, %64 : vector<32x128xf32>
    %c8_i32 = arith.constant 8 : i32
    %66 = tpu.dynamic_rotate %60 by %c8_i32 dim 1 : vector<32x128xf32>, i32 -> vector<32x128xf32>
    %c1_36 = arith.constant 1 : index
    %c0_37 = arith.constant 0 : index
    %c0_38 = arith.constant 0 : index
    %67 = vector.load %arg8[%c1_36, %c0_37, %c0_38] : memref<9x1x128xf32, #tpu.memory_space<vmem>>, vector<1x1x128xf32>
    %68 = vector.shape_cast %67 : vector<1x1x128xf32> to vector<1x128xf32>
    %69 = vector.broadcast %68 : vector<1x128xf32> to vector<32x128xf32>
    %70 = arith.mulf %66, %69 : vector<32x128xf32>
    %c7_i32 = arith.constant 7 : i32
    %71 = tpu.dynamic_rotate %60 by %c7_i32 dim 1 : vector<32x128xf32>, i32 -> vector<32x128xf32>
    %c2_39 = arith.constant 2 : index
    %c0_40 = arith.constant 0 : index
    %c0_41 = arith.constant 0 : index
    %72 = vector.load %arg8[%c2_39, %c0_40, %c0_41] : memref<9x1x128xf32, #tpu.memory_space<vmem>>, vector<1x1x128xf32>
    %73 = vector.shape_cast %72 : vector<1x1x128xf32> to vector<1x128xf32>
    %74 = vector.broadcast %73 : vector<1x128xf32> to vector<32x128xf32>
    %75 = arith.mulf %71, %74 : vector<32x128xf32>
    %c1_i32_42 = arith.constant 1 : i32
    %76 = tpu.dynamic_rotate %60 by %c1_i32_42 dim 1 : vector<32x128xf32>, i32 -> vector<32x128xf32>
    %c3_43 = arith.constant 3 : index
    %c0_44 = arith.constant 0 : index
    %c0_45 = arith.constant 0 : index
    %77 = vector.load %arg8[%c3_43, %c0_44, %c0_45] : memref<9x1x128xf32, #tpu.memory_space<vmem>>, vector<1x1x128xf32>
    %78 = vector.shape_cast %77 : vector<1x1x128xf32> to vector<1x128xf32>
    %79 = vector.broadcast %78 : vector<1x128xf32> to vector<32x128xf32>
    %80 = arith.mulf %76, %79 : vector<32x128xf32>
    %c127_i32 = arith.constant 127 : i32
    %81 = tpu.dynamic_rotate %60 by %c127_i32 dim 1 : vector<32x128xf32>, i32 -> vector<32x128xf32>
    %c5_46 = arith.constant 5 : index
    %c0_47 = arith.constant 0 : index
    %c0_48 = arith.constant 0 : index
    %82 = vector.load %arg8[%c5_46, %c0_47, %c0_48] : memref<9x1x128xf32, #tpu.memory_space<vmem>>, vector<1x1x128xf32>
    %83 = vector.shape_cast %82 : vector<1x1x128xf32> to vector<1x128xf32>
    %84 = vector.broadcast %83 : vector<1x128xf32> to vector<32x128xf32>
    %85 = arith.mulf %81, %84 : vector<32x128xf32>
    %c121_i32 = arith.constant 121 : i32
    %86 = tpu.dynamic_rotate %60 by %c121_i32 dim 1 : vector<32x128xf32>, i32 -> vector<32x128xf32>
    %c6_49 = arith.constant 6 : index
    %c0_50 = arith.constant 0 : index
    %c0_51 = arith.constant 0 : index
    %87 = vector.load %arg8[%c6_49, %c0_50, %c0_51] : memref<9x1x128xf32, #tpu.memory_space<vmem>>, vector<1x1x128xf32>
    %88 = vector.shape_cast %87 : vector<1x1x128xf32> to vector<1x128xf32>
    %89 = vector.broadcast %88 : vector<1x128xf32> to vector<32x128xf32>
    %90 = arith.mulf %86, %89 : vector<32x128xf32>
    %c120_i32 = arith.constant 120 : i32
    %91 = tpu.dynamic_rotate %60 by %c120_i32 dim 1 : vector<32x128xf32>, i32 -> vector<32x128xf32>
    %c7_52 = arith.constant 7 : index
    %c0_53 = arith.constant 0 : index
    %c0_54 = arith.constant 0 : index
    %92 = vector.load %arg8[%c7_52, %c0_53, %c0_54] : memref<9x1x128xf32, #tpu.memory_space<vmem>>, vector<1x1x128xf32>
    %93 = vector.shape_cast %92 : vector<1x1x128xf32> to vector<1x128xf32>
    %94 = vector.broadcast %93 : vector<1x128xf32> to vector<32x128xf32>
    %95 = arith.mulf %91, %94 : vector<32x128xf32>
    %c119_i32 = arith.constant 119 : i32
    %96 = tpu.dynamic_rotate %60 by %c119_i32 dim 1 : vector<32x128xf32>, i32 -> vector<32x128xf32>
    %c8_55 = arith.constant 8 : index
    %c0_56 = arith.constant 0 : index
    %c0_57 = arith.constant 0 : index
    %97 = vector.load %arg8[%c8_55, %c0_56, %c0_57] : memref<9x1x128xf32, #tpu.memory_space<vmem>>, vector<1x1x128xf32>
    %98 = vector.shape_cast %97 : vector<1x1x128xf32> to vector<1x128xf32>
    %99 = vector.broadcast %98 : vector<1x128xf32> to vector<32x128xf32>
    %100 = arith.mulf %96, %99 : vector<32x128xf32>
    %101 = tpu.concatenate %65, %70, %75, %80, %60, %85, %90, %95, %100 in 0 : vector<32x128xf32>, vector<32x128xf32>, vector<32x128xf32>, vector<32x128xf32>, vector<32x128xf32>, vector<32x128xf32>, vector<32x128xf32>, vector<32x128xf32>, vector<32x128xf32> -> vector<288x128xf32>
    %102 = arith.truncf %101 : vector<288x128xf32> to vector<288x128xbf16>
    %c0_58 = arith.constant 0 : index
    %c0_59 = arith.constant 0 : index
    %103 = vector.load %arg9[%c0_58, %c0_59] : memref<64x288xbf16, #tpu.memory_space<vmem>>, vector<64x288xbf16>
    %cst_60 = arith.constant dense<0.000000e+00> : vector<64x128xf32>
    %104 = tpu.matmul %103, %102, %cst_60 {dimension_numbers = #tpu.dot_dimension_numbers<[1], [0], [0], [1], [0, 0, 1, 1], [], []>} : vector<64x288xbf16>, vector<288x128xbf16>, vector<64x128xf32> -> vector<64x128xf32>
    %c0_61 = arith.constant 0 : index
    %c0_62 = arith.constant 0 : index
    %105 = vector.load %arg10[%c0_61, %c0_62] : memref<64x1xf32, #tpu.memory_space<vmem>>, vector<64x1xf32>
    %106 = vector.broadcast %105 : vector<64x1xf32> to vector<64x128xf32>
    %107 = arith.addf %104, %106 : vector<64x128xf32>
    %cst_63 = arith.constant 0.000000e+00 : f32
    %108 = vector.broadcast %cst_63 : f32 to vector<64x128xf32>
    %109 = arith.maximumf %107, %108 : vector<64x128xf32>
    %110 = arith.truncf %109 : vector<64x128xf32> to vector<64x128xbf16>
    %c0_64 = arith.constant 0 : index
    %c0_65 = arith.constant 0 : index
    %111 = vector.load %arg11[%c0_64, %c0_65] : memref<128x16xbf16, #tpu.memory_space<vmem>>, vector<128x16xbf16>
    %cst_66 = arith.constant dense<0.000000e+00> : vector<64x16xf32>
    %112 = tpu.matmul %110, %111, %cst_66 {dimension_numbers = #tpu.dot_dimension_numbers<[1], [0], [0], [1], [0, 0, 1, 1], [], []>} : vector<64x128xbf16>, vector<128x16xbf16>, vector<64x16xf32> -> vector<64x16xf32>
    %113 = arith.truncf %112 : vector<64x16xf32> to vector<64x16xbf16>
    %c0_67 = arith.constant 0 : index
    %c0_68 = arith.constant 0 : index
    %114 = vector.load %arg12[%c0_67, %c0_68] : memref<16x1600xbf16, #tpu.memory_space<vmem>>, vector<16x1600xbf16>
    %cst_69 = arith.constant dense<0.000000e+00> : vector<64x1600xf32>
    %115 = tpu.matmul %113, %114, %cst_69 {dimension_numbers = #tpu.dot_dimension_numbers<[1], [0], [0], [1], [0, 0, 1, 1], [], []>} : vector<64x16xbf16>, vector<16x1600xbf16>, vector<64x1600xf32> -> vector<64x1600xf32>
    %c0_70 = arith.constant 0 : index
    %c0_71 = arith.constant 0 : index
    %116 = vector.load %arg13[%c0_70, %c0_71] : memref<64x1600xf32, #tpu.memory_space<vmem>>, vector<64x1600xf32>
    %117 = arith.mulf %115, %116 : vector<64x1600xf32>
    %cst_72 = arith.constant 1.000000e+00 : f32
    %118 = vector.broadcast %cst_72 : f32 to vector<1x64xf32>
    %cst_73 = arith.constant dense<0.000000e+00> : vector<1x1600xf32>
    %119 = tpu.matmul %118, %117, %cst_73 {dimension_numbers = #tpu.dot_dimension_numbers<[1], [0], [0], [1], [0, 0, 1, 1], [], []>} : vector<1x64xf32>, vector<64x1600xf32>, vector<1x1600xf32> -> vector<1x1600xf32>
    %c0_74 = arith.constant 0 : index
    %c0_75 = arith.constant 0 : index
    %120 = vector.load %arg15[%c0_74, %c0_75] : memref<1600x100xf32, #tpu.memory_space<vmem>>, vector<1600x100xf32>
    %cst_76 = arith.constant dense<0.000000e+00> : vector<1x100xf32>
    %121 = tpu.matmul %119, %120, %cst_76 {dimension_numbers = #tpu.dot_dimension_numbers<[1], [0], [0], [1], [0, 0, 1, 1], [], []>} : vector<1x1600xf32>, vector<1600x100xf32>, vector<1x100xf32> -> vector<1x100xf32>
    %c0_77 = arith.constant 0 : index
    %c0_78 = arith.constant 0 : index
    %122 = vector.load %arg14[%c0_77, %c0_78] : memref<1x100xf32, #tpu.memory_space<vmem>>, vector<1x100xf32>
    %123 = arith.addf %121, %122 : vector<1x100xf32>
    %cst_79 = arith.constant 0.000000e+00 : f32
    %124 = vector.broadcast %cst_79 : f32 to vector<1x100xf32>
    %125 = arith.maximumf %123, %124 : vector<1x100xf32>
    %c0_80 = arith.constant 0 : index
    %c0_81 = arith.constant 0 : index
    %126 = vector.load %arg16[%c0_80, %c0_81] : memref<100x128xf32, #tpu.memory_space<vmem>>, vector<100x128xf32>
    %cst_82 = arith.constant dense<0.000000e+00> : vector<1x128xf32>
    %127 = tpu.matmul %125, %126, %cst_82 {dimension_numbers = #tpu.dot_dimension_numbers<[1], [0], [0], [1], [0, 0, 1, 1], [], []>} : vector<1x100xf32>, vector<100x128xf32>, vector<1x128xf32> -> vector<1x128xf32>
    %c0_83 = arith.constant 0 : index
    %c0_84 = arith.constant 0 : index
    %128 = vector.load %arg17[%c0_83, %c0_84] : memref<1x128xf32, #tpu.memory_space<vmem>>, vector<1x128xf32>
    %129 = arith.addf %127, %128 : vector<1x128xf32>
    %130 = vector.shape_cast %129 : vector<1x128xf32> to vector<1x1x128xf32>
    %c0_85 = arith.constant 0 : index
    %c0_86 = arith.constant 0 : index
    %c0_87 = arith.constant 0 : index
    %131 = vector.load %arg18[%c0_85, %c0_86, %c0_87] : memref<1x1x128xf32, #tpu.memory_space<vmem>>, vector<1x1x128xf32>
    tpu.vector_store %arg18[%c0_85, %c0_86, %c0_87], %130 {strides = array<i32>} : memref<1x1x128xf32, #tpu.memory_space<vmem>>, vector<1x1x128xf32>,
    return
  }
  func.func @transform_0(%arg0: i32) -> (i32, i32, i32) {
    %c0_i32 = arith.constant 0 : i32
    %c0_i32_0 = arith.constant 0 : i32
    %c0_i32_1 = arith.constant 0 : i32
    return %arg0, %c0_i32, %c0_i32_0 : i32, i32, i32
  }
  func.func @transform_1(%arg0: i32) -> (i32, i32) {
    %c0_i32 = arith.constant 0 : i32
    %c0_i32_0 = arith.constant 0 : i32
    %c0_i32_1 = arith.constant 0 : i32
    return %c0_i32, %c0_i32_0 : i32, i32
  }
  func.func @transform_2(%arg0: i32) -> (i32, i32) {
    %c0_i32 = arith.constant 0 : i32
    %c0_i32_0 = arith.constant 0 : i32
    %c0_i32_1 = arith.constant 0 : i32
    return %c0_i32, %c0_i32_0 : i32, i32
  }
  func.func @transform_3(%arg0: i32) -> (i32, i32, i32) {
    %c0_i32 = arith.constant 0 : i32
    %c0_i32_0 = arith.constant 0 : i32
    %c0_i32_1 = arith.constant 0 : i32
    %c0_i32_2 = arith.constant 0 : i32
    return %c0_i32, %c0_i32_0, %c0_i32_1 : i32, i32, i32
  }
  func.func @transform_4(%arg0: i32) -> (i32, i32) {
    %c0_i32 = arith.constant 0 : i32
    %c0_i32_0 = arith.constant 0 : i32
    %c0_i32_1 = arith.constant 0 : i32
    return %c0_i32, %c0_i32_0 : i32, i32
  }
  func.func @transform_5(%arg0: i32) -> (i32, i32) {
    %c0_i32 = arith.constant 0 : i32
    %c0_i32_0 = arith.constant 0 : i32
    %c0_i32_1 = arith.constant 0 : i32
    return %c0_i32, %c0_i32_0 : i32, i32
  }
  func.func @transform_6(%arg0: i32) -> (i32, i32) {
    %c0_i32 = arith.constant 0 : i32
    %c0_i32_0 = arith.constant 0 : i32
    %c0_i32_1 = arith.constant 0 : i32
    return %c0_i32, %c0_i32_0 : i32, i32
  }
  func.func @transform_7(%arg0: i32) -> (i32, i32, i32) {
    %c0_i32 = arith.constant 0 : i32
    %c0_i32_0 = arith.constant 0 : i32
    %c0_i32_1 = arith.constant 0 : i32
    %c0_i32_2 = arith.constant 0 : i32
    return %c0_i32, %c0_i32_0, %c0_i32_1 : i32, i32, i32
  }
  func.func @transform_8(%arg0: i32) -> (i32, i32) {
    %c0_i32 = arith.constant 0 : i32
    %c0_i32_0 = arith.constant 0 : i32
    %c0_i32_1 = arith.constant 0 : i32
    return %c0_i32, %c0_i32_0 : i32, i32
  }
  func.func @transform_9(%arg0: i32) -> (i32, i32) {
    %c0_i32 = arith.constant 0 : i32
    %c0_i32_0 = arith.constant 0 : i32
    %c0_i32_1 = arith.constant 0 : i32
    return %c0_i32, %c0_i32_0 : i32, i32
  }
  func.func @transform_10(%arg0: i32) -> (i32, i32) {
    %c0_i32 = arith.constant 0 : i32
    %c0_i32_0 = arith.constant 0 : i32
    %c0_i32_1 = arith.constant 0 : i32
    return %c0_i32, %c0_i32_0 : i32, i32
  }
  func.func @transform_11(%arg0: i32) -> (i32, i32) {
    %c0_i32 = arith.constant 0 : i32
    %c0_i32_0 = arith.constant 0 : i32
    %c0_i32_1 = arith.constant 0 : i32
    return %c0_i32, %c0_i32_0 : i32, i32
  }
  func.func @transform_12(%arg0: i32) -> (i32, i32) {
    %c0_i32 = arith.constant 0 : i32
    %c0_i32_0 = arith.constant 0 : i32
    %c0_i32_1 = arith.constant 0 : i32
    return %c0_i32, %c0_i32_0 : i32, i32
  }
  func.func @transform_13(%arg0: i32) -> (i32, i32) {
    %c0_i32 = arith.constant 0 : i32
    %c0_i32_0 = arith.constant 0 : i32
    %c0_i32_1 = arith.constant 0 : i32
    return %c0_i32, %c0_i32_0 : i32, i32
  }
  func.func @transform_14(%arg0: i32) -> (i32, i32) {
    %c0_i32 = arith.constant 0 : i32
    %c0_i32_0 = arith.constant 0 : i32
    %c0_i32_1 = arith.constant 0 : i32
    return %c0_i32, %c0_i32_0 : i32, i32
  }
  func.func @transform_15(%arg0: i32) -> (i32, i32) {
    %c0_i32 = arith.constant 0 : i32
    %c0_i32_0 = arith.constant 0 : i32
    %c0_i32_1 = arith.constant 0 : i32
    return %c0_i32, %c0_i32_0 : i32, i32
  }
  func.func @transform_16(%arg0: i32) -> (i32, i32) {
    %c0_i32 = arith.constant 0 : i32
    %c0_i32_0 = arith.constant 0 : i32
    %c0_i32_1 = arith.constant 0 : i32
    return %c0_i32, %c0_i32_0 : i32, i32
  }
  func.func @transform_17(%arg0: i32) -> (i32, i32, i32) {
    %c0_i32 = arith.constant 0 : i32
    %c0_i32_0 = arith.constant 0 : i32
    %c0_i32_1 = arith.constant 0 : i32
    return %arg0, %c0_i32, %c0_i32_0 : i32, i32, i32
  }
}

</mosaic_0001>

<bundles_post_ra>
// kernel: forward.1
= control target key start
LH: loop header
LB: loop body
LE: loop exit
PB: predicated region body
PF: predicated region fallthrough
CT: control target
= control target key end

     0   :  { %s6840_s0 = inlined_call_operand.vmem [shape: bf16[2,48,256], index: 0, kind: input, shape index: {}]   ;;  %s6841_s1 = inlined_call_operand.vmem [shape: bf16[16,48], index: 1, kind: input, shape index: {}]   ;;  %s6842_s2 = inlined_call_operand.vmem [shape: f32[16,1], index: 2, kind: input, shape index: {}]   ;;  %s6843_s3 = inlined_call_operand.vmem [shape: f32[9,1,256], index: 3, kind: input, shape index: {}]   ;;  %s6844_s4 = inlined_call_operand.vmem [shape: bf16[32,144], index: 4, kind: input, shape index: {}]   ;;  %s6845_s5 = inlined_call_operand.vmem [shape: f32[32,1], index: 5, kind: input, shape index: {}]   ;;  %s6846_s6 = inlined_call_operand.vmem [shape: bf16[256,128], index: 6, kind: input, shape index: {}]   ;;  %s6847_s7 = inlined_call_operand.vmem [shape: f32[9,1,128], index: 7, kind: input, shape index: {}]   ;;  %s6848_s8 = inlined_call_operand.vmem [shape: bf16[64,288], index: 8, kind: input, shape index: {}]   ;;  %s6849_s9 = inlined_call_operand.vmem [shape: f32[64,1], index: 9, kind: input, shape index: {}]   ;;  %s6850_s10 = inlined_call_operand.vmem [shape: bf16[128,16], index: 10, kind: input, shape index: {}]   ;;  %s6851_s11 = inlined_call_operand.vmem [shape: bf16[16,1600], index: 11, kind: input, shape index: {}]   ;;  %s6852_s12 = inlined_call_operand.vmem [shape: f32[64,1600], index: 12, kind: input, shape index: {}]   ;;  %s6853_s13 = inlined_call_operand.vmem [shape: f32[1,100], index: 13, kind: input, shape index: {}]   ;;  %s6854_s14 = inlined_call_operand.vmem [shape: f32[1600,100], index: 14, kind: input, shape index: {}]   ;;  %s6855_s15 = inlined_call_operand.vmem [shape: f32[100,128], index: 15, kind: input, shape index: {}]   ;;  %s6856_s16 = inlined_call_operand.vmem [shape: f32[1,128], index: 16, kind: input, shape index: {}]   ;;  %s6857_s17 = inlined_call_operand.hbm [shape: f32[2,1,128], index: 17, kind: output, shape index: {}]  }
   0x1   :  { %6866 = sst [smem:[#allocation9_spill]] %s6840_s0 }
   0x2   :  { %6867 = sst [smem:[#allocation10_spill]] %s6841_s1 }
   0x3   :  { %6868 = sst [smem:[#allocation11_spill]] %s6842_s2 }
   0x4   :  { %6869 = sst [smem:[#allocation12_spill]] %s6843_s3 }
   0x5   :  { %22 = vsyncpa [#allocation3], 0 }
   0x6   :  { %24 = vsyncpa [#allocation3 + $0x1], 0  ;;  %s5192_s24 = smov 0   ;;  %s5194_s25 = smov 0  }
   0x7   :  { %s5196_s26 = smov 0   ;;  %s5198_s27 = smov 0  }
   0x8 LB: > { %6870 = sst [smem:[#allocation5_spill]] %s5076_s26  ;;  %s5213_s28 = sadd.s32 4294967295, %s5080_s27   ;;  %s5080_s27 = sphi %s5198_s27, %s6883_s27   ;;  %s5076_s26 = sphi %s5196_s26, %s6885_s26   ;;  %s5072_s25 = sphi %s5194_s25, %s6887_s25   ;;  %s5068_s24 = sphi %s5192_s24, %s6886_s24  }
   0x9   : > { %s3955_s29 = sadd.s32 4294967294, %s5080_s27   ;;  %s5217_s0 = sadd.s32 1, %s5080_s27  }
   0xa   : > { %6871 = sst [smem:[#allocation6_spill]] %s5217_s0  ;;  %s399_s30 = sadd.s32 1, %s5076_s26 }
   0xb   : > { %s396_s18 = ssub.s32 %s5080_s27, %s5217_s0  ;;  %p409_p0 = scmp.ne.s32.totalorder %s5076_s26, %s5072_s25 }
   0xc   : > { %p397_p1 = scmp.eq.s32.totalorder %s396_s18, 0  ;;  %p410_p2 = scmp.eq.s32.totalorder %s5213_s28, 1 }
   0xd   : > { %p415_p3 = scmp.ne.s32.totalorder %s5072_s25, %s5068_s24  ;;  %p416_p4 = scmp.eq.s32.totalorder %s3955_s29, 1 }
   0xe   : > { %s5228_s19 = scalar_select %p397_p1, %s5076_s26, %s399_s30  }
   0xf   : > { %p5230_p5 = por %p410_p2, %p409_p0  ;;  %p5234_p6 = por %p416_p4, %p415_p3 }
  0x10   : > { %6872 = sst [smem:[#allocation7_spill]] %s5228_s19  ;;  %p3958_p7 = scmp.ge.s32.totalorder %s5080_s27, 1 }
  0x11   : > { %s6874_s20 = scalar_select %p5234_p6, 1, 0 }
  0x12   : > { %p490_p8 = scmp.lt.s32.totalorder %s5080_s27, 3 }
  0x13   : > { %6875 = sst [smem:[#allocation8_spill]] %s6874_s20 }
  0x14   : > { %p491_p9 = pnand %p3958_p7, %p490_p8 }
  0x15   : > { %p541_p10 = scmp.lt.s32.totalorder (!%p491_p9), %s5213_s28, 1  ;;  %v5082_v0 = vmov (!%p491_p9), 0   ;;  %s6876_s2 = sld [smem:[#allocation11_spill]] (!%p491_p9)  ;;  %vm602_vm0 = vcmask (!%p491_p9), 392192   ;;  %v916_v26 = vld [vmem:[%s6845_s5] sm:$0xff] (!%p491_p9)  ;;  %vm958_vm1 = vcmask (!%p491_p9), 130048   ;;  %v661_v52 = vlaneseq (!%p491_p9) }
  0x16   : > { %494 = sbr.rel (%p491_p9) target bundleno = 2500 (0x9c4), region = 88  ;;  %638 = vmatprep.mubr.bf16.mxu0 (!%p491_p9), %v5082_v0  ;;  %4941 = vset.pattern.permute.xlu0 (!%p491_p9), %v5082_v0  ;;  %s6877_s0 = sld [smem:[#allocation9_spill]] (!%p491_p9)  ;;  %v4955_v27 = vld [vmem:[%s6844_s4 + $0x4] ss:$8 sps:$4 sm:$0xff] (!%p491_p9)   ;;  %v918_v28 = vld [vmem:[%s6845_s5 + $0x10] sm:$0xff] (!%p491_p9)  ;;  %v919_v33 = vld [vmem:[%s6845_s5 + $0x18] sm:$0xff] (!%p491_p9) }
  0x17   : > { %4942 = vset.pattern.permute.xlu1 (!%p491_p9), %v5082_v0  ;;  %s6878_s23 = sld [smem:[#allocation10_spill]] (!%p491_p9)  ;;  %s5083_s26 = smov (!%p491_p9), 16   ;;  %3979 = vmatprep.mubr.msk.bf16.mxu1 (!%p491_p9), %vm958_vm1, %v4955_v27  ;;  %v917_v29 = vld [vmem:[%s6845_s5 + $0x8] sm:$0xff] (!%p491_p9)  ;;  %v4959_v30 = vld [vmem:[%s6846_s6 + $0x40] sm:$0xff] (!%p491_p9)   ;;  %v4963_v35 = vld [vmem:[%s6846_s6 + $0x50] sm:$0xff] (!%p491_p9)   ;;  %v671_v55 = vshrl.u32 (!%p491_p9), %v661_v52, 7 }
  0x18   : > { %s5085_s19 = smov (!%p491_p9), 15   ;;  %s6864_s29 = smov (!%p491_p9), 127   ;;  %v4960_v31 = vld [vmem:[%s6846_s6] sm:$0xff] (!%p491_p9)   ;;  %v4961_v32 = vld [vmem:[%s6846_s6 + $0x48] sm:$0xff] (!%p491_p9)   ;;  %v4964_v36 = vld [vmem:[%s6846_s6 + $0x10] sm:$0xff] (!%p491_p9)   ;;  %v5374_v56 = vand.u32 (!%p491_p9), 127, %v661_v52 }
  0x19   : > { %s5090_s21 = smov (!%p491_p9), 111   ;;  %v4962_v34 = vld [vmem:[%s6846_s6 + $0x8] sm:$0xff] (!%p491_p9)   ;;  %v4965_v37 = vld [vmem:[%s6846_s6 + $0x58] sm:$0xff] (!%p491_p9)   ;;  %v4967_v39 = vld [vmem:[%s6846_s6 + $0x60] sm:$0xff] (!%p491_p9)   ;;  %v5378_v59 = vsub.s32 (!%p491_p9), 0, %v671_v55  ;;  %v5380_v60 = vsub.s32 (!%p491_p9), 1, %v671_v55 }
  0x1a   : > { %v4966_v38 = vld [vmem:[%s6846_s6 + $0x18] sm:$0xff] (!%p491_p9)   ;;  %v4968_v40 = vld [vmem:[%s6846_s6 + $0x20] sm:$0xff] (!%p491_p9)   ;;  %v4969_v41 = vld [vmem:[%s6846_s6 + $0x68] sm:$0xff] (!%p491_p9)   ;;  %s6879_s3 = sld [smem:[#allocation12_spill]] (!%p491_p9)  ;;  %vm663_vm2 = vcmp.lt.s32.totalorder (!%p491_p9), %v5374_v56, 17  ;;  %vm692_vm3 = vcmp.lt.s32.totalorder (!%p491_p9), %v5374_v56, 16 }
  0x1b   : > { %v555_v1 = vld [vmem:[%s6876_s2] sm:$0xff] (!%p491_p9)  ;;  %v556_v2 = vld [vmem:[%s6876_s2 + $0x8] sm:$0xff] (!%p491_p9)  ;;  %vm722_vm4 = vcmp.lt.s32.totalorder (!%p491_p9), %v5374_v56, 15  ;;  %vm752_vm5 = vcmp.lt.s32.totalorder (!%p491_p9), %v5374_v56, 1  ;;  %vm782_vm6 = vcmp.lt.s32.totalorder (!%p491_p9), %v5374_v56, 127  ;;  %vm812_vm7 = vcmp.lt.s32.totalorder (!%p491_p9), %v5374_v56, 113 }
  0x1c   : > { %559 = vperm.xlu0 (!%p491_p9), %4941, %v555_v1   ;;  %vm842_vm8 = vcmp.lt.s32.totalorder (!%p491_p9), %v5374_v56, 112  ;;  %vm872_vm9 = vcmp.lt.s32.totalorder (!%p491_p9), %v5374_v56, 111  ;;  %v4958_v56 = vld [vmem:[%s6844_s4 + $0x10] ss:$8 sps:$4 sm:$0xff] (!%p491_p9)   ;;  %s6880_s2 = smov (!%p491_p9), 127   ;;  %vm1508_vm10 = vcmask (!%p491_p9), 261120  }
  0x1d   : > { %s542_s30 = scalar_select %p541_p10, %s5213_s28, 1  ;;  %v4952_v9 = vld [vmem:[%s6878_s23] sm:$0xff]   ;;  %vm2599_vm11 = vcmask 523264   ;;  %vm5100_vm12 = vmmov 0   ;;  %vm3812_vm13 = vcmask 1043456   ;;  %vm3808_vm14 = vcmask 818176  }
  0x1f   : > { %s4882_s18 = smul.u32 48, %s542_s30  ;;  %s5088_s30 = smov 113  }
  0x20   : > { %564 = vperm.xlu0 %4941, %v556_v2   ;;  %v668_v61 = vld [vmem:[%s6879_s3] sm:$0x3]  ;;  %v3968_v2 = vld [vmem:[%s6879_s3 + $0x2] sm:$0x3] }
  0x21   : > { %s545_s20 = scalar_lea.vmem %s6877_s0, %s4882_s18  ;;  %s5084_s0 = smov 17   ;;  %v673_v1 = vrot.slane %v668_v61, %v5378_v59 }
  0x22   : > { %v4943_v3 = vld [vmem:[%s545_s20 + $0x4] ss:$8 sps:$4 sm:$0xff]   ;;  %v4945_v4 = vld [vmem:[%s545_s20] ss:$8 sps:$4 sm:$0xff]   ;;  %v4946_v5 = vld [vmem:[%s545_s20 + $0x14] ss:$8 sps:$4 sm:$0xff]  }
  0x23   : > { %606 = vmatprep.subr.bf16.mxu0 %v4943_v3  ;;  %v4948_v6 = vld [vmem:[%s545_s20 + $0x10] ss:$8 sps:$4 sm:$0xff]   ;;  %v4949_v7 = vld [vmem:[%s545_s20 + $0x24] ss:$8 sps:$4 sm:$0xff]   ;;  %v4951_v8 = vld [vmem:[%s545_s20 + $0x20] ss:$8 sps:$4 sm:$0xff]   ;;  %v677_v3 = vrot.slane %v668_v61, %v5380_v60 }
  0x24   : > { %607 = vmatpush1.bf16.msra.mxu0 %v4945_v4  ;;  %s6862_s20 = smov 1   ;;  %s5089_s18 = smov 112  }
  0x25   : > { %608 = vmatprep.subr.bf16.mxu0 %v4946_v5 }
  0x28   : > { %609 = vmatpush1.bf16.msra.mxu0 %v4948_v6 }
  0x29   : > { %610 = vmatprep.subr.bf16.mxu0 %v4949_v7 }
  0x2c   : > { %611 = vmatpush1.bf16.msra.mxu0 %v4951_v8  ;;  %v703_v8 = vrot.slane %v3968_v2, %v5378_v59 }
  0x2d   : > { %4090 = vmatprep.subr.bf16.mxu0 %v4959_v30 }
  0x2f   : > { %3967 = vmatmul.mubr.msk.bf16.vlgmr.msra.gmra.mrb[0].mxu0 %vm602_vm0, %v4952_v9  ;;  %v707_v9 = vrot.slane %v3968_v2, %v5380_v60 }
  0x30   : > { %4091 = vmatpush3.bf16.msra.mxu0 %v4960_v31 }
  0x31   : > { %4092 = vmatprep.subr.bf16.mxu0 %v4961_v32 }
  0x34   : > { %4093 = vmatpush3.bf16.msra.mxu0 %v4962_v34 }
  0x35   : > { %4094 = vmatprep.subr.bf16.mxu0 %v4963_v35  ;;  %v3970_v35 = vld [vmem:[%s6879_s3 + $0x6] sm:$0x3] }
  0x38   : > { %4095 = vmatpush3.bf16.msra.mxu0 %v4964_v36 }
  0x39   : > { %4096 = vmatprep.subr.bf16.mxu0 %v4965_v37 }
  0x3c   : > { %4097 = vmatpush3.bf16.msra.mxu0 %v4966_v38 }
  0x3d   : > { %4098 = vmatprep.subr.bf16.mxu0 %v4967_v39 }
  0x40   : > { %4099 = vmatpush3.bf16.msra.mxu0 %v4968_v40 }
  0x41   : > { %4100 = vmatprep.subr.bf16.mxu0 %v4969_v41 }
  0x9b   : > { %v560_v10 = vpop.permute.xlu0 %559 }
  0x9f   : > { %v565_v14 = vpop.permute.xlu0 %564 }
 0x102   : > { %v640_v11 = vpop.f32.mrb[0].mxu0 }
 0x103   : > { %v641_v12 = vadd.f32 %v640_v11, %v560_v10  ;;  %v642_v13 = vpop.f32.mrb[1].mxu0 }
 0x104   : > { %v643_v15 = vadd.f32 %v642_v13, %v560_v10  ;;  %v644_v16 = vpop.f32.mrb[2].mxu0  ;;  %v3969_v13 = vld [vmem:[%s6879_s3 + $0x4] sm:$0x3] }
 0x105   : > { %v5257_v17 = vmax.f32 %v641_v12, 0.0  ;;  %v645_v18 = vadd.f32 %v644_v16, %v565_v14  ;;  %v646_v19 = vpop.f32.mrb[3].mxu0  ;;  %v737_v30 = vrot.slane %v3969_v13, %v5380_v60 }
 0x106   : > { %v647_v20 = vadd.f32 %v646_v19, %v565_v14  ;;  %v5264_v22 = vmax.f32 %v643_v15, 0.0 }
 0x107   : > { %v5259_v21 = vmax.f32 %v645_v18, 0.0  ;;  %684 = vrot.lane.b32.xlu0 %v5257_v17, %s5083_s26  ;;  %653 = vrot.lane.b32.xlu1 %v5257_v17, %s5084_s0 }
 0x108   : > { %v5266_v23 = vmax.f32 %v647_v20, 0.0 }
 0x109   : > { %v902_v24 = vpack.c.bf16 %v5259_v21, %v5257_v17 }
 0x10a   : > { %v903_v25 = vpack.c.bf16 %v5266_v23, %v5264_v22 }
 0x10b   : > { %714 = vrot.lane.b32.xlu0 %v5257_v17, %s5085_s19  ;;  %655 = vrot.lane.b32.xlu1 %v5259_v21, %s5084_s0 }
 0x10f   : > { %744 = vrot.lane.b32.xlu0 %v5257_v17, %s6862_s20  ;;  %686 = vrot.lane.b32.xlu1 %v5259_v21, %s5083_s26 }
 0x113   : > { %774 = vrot.lane.b32.xlu0 %v5257_v17, %s6864_s29  ;;  %716 = vrot.lane.b32.xlu1 %v5259_v21, %s5085_s19 }
 0x117   : > { %804 = vrot.lane.b32.xlu0 %v5257_v17, %s5088_s30  ;;  %746 = vrot.lane.b32.xlu1 %v5259_v21, %s6862_s20 }
 0x11b   : > { %834 = vrot.lane.b32.xlu0 %v5257_v17, %s5089_s18  ;;  %776 = vrot.lane.b32.xlu1 %v5259_v21, %s6864_s29 }
 0x11f   : > { %657 = vrot.lane.b32.xlu0 %v5264_v22, %s5084_s0  ;;  %806 = vrot.lane.b32.xlu1 %v5259_v21, %s5088_s30 }
 0x123   : > { %688 = vrot.lane.b32.xlu0 %v5264_v22, %s5083_s26  ;;  %836 = vrot.lane.b32.xlu1 %v5259_v21, %s5089_s18 }
 0x127   : > { %718 = vrot.lane.b32.xlu0 %v5264_v22, %s5085_s19  ;;  %659 = vrot.lane.b32.xlu1 %v5266_v23, %s5084_s0  ;;  %s5093_s0 = smov 121  }
 0x12b   : > { %748 = vrot.lane.b32.xlu0 %v5264_v22, %s6862_s20  ;;  %690 = vrot.lane.b32.xlu1 %v5266_v23, %s5083_s26  ;;  %s5092_s26 = smov 8  }
 0x12f   : > { %864 = vrot.lane.b32.xlu0 %v5257_v17, %s5090_s21  ;;  %720 = vrot.lane.b32.xlu1 %v5266_v23, %s5085_s19  ;;  %s6881_s19 = smov 1  }
 0x133   : > { %778 = vrot.lane.b32.xlu0 %v5264_v22, %s6864_s29  ;;  %750 = vrot.lane.b32.xlu1 %v5266_v23, %s6862_s20  ;;  %s5095_s20 = smov 120  }
 0x137   : > { %808 = vrot.lane.b32.xlu0 %v5264_v22, %s5088_s30  ;;  %866 = vrot.lane.b32.xlu1 %v5259_v21, %s5090_s21  ;;  %v3974_v21 = vld [vmem:[%s6879_s3 + $0x10] sm:$0x3] }
 0x13b   : > { %838 = vrot.lane.b32.xlu0 %v5264_v22, %s5089_s18  ;;  %780 = vrot.lane.b32.xlu1 %v5266_v23, %s6864_s29  ;;  %s5091_s29 = smov 9  }
 0x13f   : > { %868 = vrot.lane.b32.xlu0 %v5264_v22, %s5090_s21  ;;  %810 = vrot.lane.b32.xlu1 %v5266_v23, %s5088_s30  ;;  %v3973_v22 = vld [vmem:[%s6879_s3 + $0xe] sm:$0x3] }
 0x143   : > { %922 = vperm.xlu0 %4941, %v916_v26   ;;  %840 = vrot.lane.b32.xlu1 %v5266_v23, %s5089_s18  ;;  %s5094_s18 = smov 7  }
 0x147   : > { %932 = vperm.xlu0 %4941, %v918_v28   ;;  %870 = vrot.lane.b32.xlu1 %v5266_v23, %s5090_s21 }
 0x14b   : > { %927 = vperm.xlu1 %4942, %v917_v29   ;;  %v733_v29 = vrot.slane %v3969_v13, %v5378_v59 }
 0x14f   : > { %937 = vperm.xlu1 %4942, %v919_v33  }
 0x179   : > { %v685_v42 = vpop.permute.xlu0 %684  ;;  %v654_v43 = vpop.permute.xlu1 %653 }
 0x17d   : > { %v715_v44 = vpop.permute.xlu0 %714  ;;  %v656_v45 = vpop.permute.xlu1 %655 }
 0x181   : > { %v5362_v46 = vpop.permute.xlu0 %744  ;;  %v687_v47 = vpop.permute.xlu1 %686 }
 0x185   : > { %v5364_v48 = vpop.permute.xlu0 %774  ;;  %v717_v49 = vpop.permute.xlu1 %716 }
 0x189   : > { %v5366_v50 = vpop.permute.xlu0 %804  ;;  %v5368_v51 = vpop.permute.xlu1 %746 }
 0x18d   : > { %v5370_v53 = vpop.permute.xlu0 %834  ;;  %v5372_v54 = vpop.permute.xlu1 %776 }
 0x191   : > { %v658_v57 = vpop.permute.xlu0 %657  ;;  %v5376_v58 = vpop.permute.xlu1 %806 }
 0x192   : > { %v664_v4 = vsel %vm663_vm2, %v654_v43, %v658_v57  ;;  %v666_v5 = vsel %vm663_vm2, %v658_v57, %v654_v43 }
 0x193   : > { %v680_v12 = vmul.f32 %v673_v1, %v666_v5  ;;  %v681_v15 = vmul.f32 %v677_v3, %v664_v4 }
 0x195   : > { %v689_v62 = vpop.permute.xlu0 %688  ;;  %v5386_v63 = vpop.permute.xlu1 %836 }
 0x196   : > { %v693_v18 = vsel %vm692_vm3, %v685_v42, %v689_v62  ;;  %v695_v19 = vsel %vm692_vm3, %v689_v62, %v685_v42 }
 0x197   : > { %v710_v33 = vmul.f32 %v703_v8, %v695_v19  ;;  %v711_v34 = vmul.f32 %v707_v9, %v693_v18  ;;  %v3972_v18 = vld [vmem:[%s6879_s3 + $0xc] sm:$0x3] }
 0x199   : > { %v719_v6 = vpop.permute.xlu0 %718  ;;  %v660_v7 = vpop.permute.xlu1 %659 }
 0x19a   : > { %v665_v10 = vsel %vm663_vm2, %v656_v45, %v660_v7  ;;  %v667_v11 = vsel %vm663_vm2, %v660_v7, %v656_v45  ;;  %v723_v38 = vsel %vm722_vm4, %v715_v44, %v719_v6  ;;  %v725_v39 = vsel %vm722_vm4, %v719_v6, %v715_v44 }
 0x19b   : > { %v682_v14 = vmul.f32 %v673_v1, %v667_v11  ;;  %v683_v16 = vmul.f32 %v677_v3, %v665_v10  ;;  %v763_v45 = vrot.slane %v3970_v35, %v5378_v59  ;;  %v740_v57 = vmul.f32 %v733_v29, %v725_v39 }
 0x19c   : > { %v741_v44 = vmul.f32 %v737_v30, %v723_v38  ;;  %v857_v38 = vrot.slane %v3973_v22, %v5380_v60 }
 0x19d   : > { %v749_v20 = vpop.permute.xlu0 %748  ;;  %v691_v26 = vpop.permute.xlu1 %690  ;;  %v895_v27 = vpack.c.bf16 %v683_v16, %v681_v15  ;;  %v894_v28 = vpack.c.bf16 %v682_v14, %v680_v12 }
 0x19e   : > { %v694_v31 = vsel %vm692_vm3, %v687_v47, %v691_v26  ;;  %v696_v32 = vsel %vm692_vm3, %v691_v26, %v687_v47  ;;  %v767_v47 = vrot.slane %v3970_v35, %v5380_v60  ;;  %v753_v1 = vsel %vm752_vm5, %v5362_v46, %v749_v20 }
 0x19f   : > { %v712_v36 = vmul.f32 %v703_v8, %v696_v32  ;;  %v713_v37 = vmul.f32 %v707_v9, %v694_v31  ;;  %965 = vmatprep.subr.bf16.mxu1 %v895_v27  ;;  %v755_v2 = vsel %vm752_vm5, %v749_v20, %v5362_v46  ;;  %v3971_v46 = vld [vmem:[%s6879_s3 + $0xa] sm:$0x3]  ;;  %v823_v27 = vrot.slane %v3972_v18, %v5378_v59 }
 0x1a0   : > { %966 = vmatpush1.bf16.msra.mxu1 %v894_v28  ;;  %v770_v8 = vmul.f32 %v763_v45, %v755_v2  ;;  %v771_v9 = vmul.f32 %v767_v47, %v753_v1  ;;  %v793_v16 = vrot.slane %v3971_v46, %v5378_v59  ;;  %v827_v28 = vrot.slane %v3972_v18, %v5380_v60 }
 0x1a1   : > { %v5418_v40 = vpop.permute.xlu0 %864  ;;  %v721_v41 = vpop.permute.xlu1 %720  ;;  %v897_v42 = vpack.c.bf16 %v713_v37, %v711_v34  ;;  %v896_v43 = vpack.c.bf16 %v712_v36, %v710_v33  ;;  %v853_v37 = vrot.slane %v3973_v22, %v5378_v59 }
 0x1a2   : > { %v724_v52 = vsel %vm722_vm4, %v717_v49, %v721_v41  ;;  %v726_v55 = vsel %vm722_vm4, %v721_v41, %v717_v49 }
 0x1a3   : > { %v742_v61 = vmul.f32 %v733_v29, %v726_v55  ;;  %v743_v62 = vmul.f32 %v737_v30, %v724_v52  ;;  %967 = vmatprep.subr.bf16.mxu1 %v897_v42 }
 0x1a4   : > { %968 = vmatpush1.bf16.msra.mxu1 %v896_v43 }
 0x1a5   : > { %v779_v3 = vpop.permute.xlu0 %778  ;;  %v751_v4 = vpop.permute.xlu1 %750  ;;  %v899_v5 = vpack.c.bf16 %v743_v62, %v741_v44  ;;  %v898_v6 = vpack.c.bf16 %v742_v61, %v740_v57  ;;  %v883_v57 = vrot.slane %v3974_v21, %v5378_v59  ;;  %v887_v44 = vrot.slane %v3974_v21, %v5380_v60 }
 0x1a6   : > { %v754_v49 = vsel %vm752_vm5, %v5368_v51, %v751_v4  ;;  %v756_v7 = vsel %vm752_vm5, %v751_v4, %v5368_v51  ;;  %v797_v51 = vrot.slane %v3971_v46, %v5380_v60  ;;  %v783_v19 = vsel %vm782_vm6, %v5364_v48, %v779_v3  ;;  %v4953_v46 = vld [vmem:[%s6844_s4] ss:$8 sps:$4 sm:$0xff]  }
 0x1a7   : > { %v772_v10 = vmul.f32 %v763_v45, %v756_v7  ;;  %v773_v11 = vmul.f32 %v767_v47, %v754_v49  ;;  %969 = vmatprep.subr.bf16.mxu1 %v899_v5  ;;  %v785_v20 = vsel %vm782_vm6, %v779_v3, %v5364_v48  ;;  %v800_v30 = vmul.f32 %v793_v16, %v783_v19 }
 0x1a8   : > { %970 = vmatpush1.bf16.msra.mxu1 %v898_v6  ;;  %v801_v31 = vmul.f32 %v797_v51, %v785_v20 }
 0x1a9   : > { %v809_v12 = vpop.permute.xlu0 %808  ;;  %v5442_v13 = vpop.permute.xlu1 %866  ;;  %v901_v14 = vpack.c.bf16 %v773_v11, %v771_v9  ;;  %v900_v15 = vpack.c.bf16 %v772_v10, %v770_v8 }
 0x1aa   : > { %v813_v33 = vsel %vm812_vm7, %v5366_v50, %v809_v12  ;;  %v815_v34 = vsel %vm812_vm7, %v809_v12, %v5366_v50  ;;  %v4956_v12 = vld [vmem:[%s6844_s4 + $0x14] ss:$8 sps:$4 sm:$0xff]  }
 0x1ab   : > { %971 = vmatprep.subr.bf16.mxu1 %v901_v14  ;;  %v830_v41 = vmul.f32 %v823_v27, %v813_v33  ;;  %v831_v17 = vmul.f32 %v827_v28, %v815_v34  ;;  %v4971_v14 = vld [vmem:[%s6846_s6 + $0x70] sm:$0xff]  }
 0x1ac   : > { %972 = vmatpush1.bf16.msra.mxu1 %v900_v15  ;;  %v4972_v15 = vld [vmem:[%s6846_s6 + $0x30] sm:$0xff]  }
 0x1ad   : > { %973 = vmatprep.subr.bf16.mxu1 %v903_v25  ;;  %v781_v26 = vpop.permute.xlu1 %780  ;;  %v839_v23 = vpop.permute.xlu0 %838 }
 0x1ae   : > { %v784_v29 = vsel %vm782_vm6, %v5372_v54, %v781_v26  ;;  %v786_v48 = vsel %vm782_vm6, %v781_v26, %v5372_v54  ;;  %v843_v43 = vsel %vm842_vm8, %v5370_v53, %v839_v23  ;;  %v845_v45 = vsel %vm842_vm8, %v839_v23, %v5370_v53 }
 0x1af   : > { %v802_v25 = vmul.f32 %v793_v16, %v784_v29  ;;  %v803_v32 = vmul.f32 %v797_v51, %v786_v48  ;;  %v860_v53 = vmul.f32 %v853_v37, %v843_v43  ;;  %v861_v1 = vmul.f32 %v857_v38, %v845_v45  ;;  %v4973_v16 = vld [vmem:[%s6846_s6 + $0x78] sm:$0xff]  }
 0x1b0   : > { %974 = vmatpush1.bf16.msra.mxu1 %v902_v24  ;;  %v4974_v51 = vld [vmem:[%s6846_s6 + $0x38] sm:$0xff]  }
 0x1b1   : > { %v811_v54 = vpop.permute.xlu1 %810  ;;  %v905_v35 = vpack.c.bf16 %v803_v32, %v801_v31  ;;  %v904_v36 = vpack.c.bf16 %v802_v25, %v800_v30 }
 0x1b2   : > { %v814_v39 = vsel %vm812_vm7, %v5376_v58, %v811_v54  ;;  %v816_v50 = vsel %vm812_vm7, %v811_v54, %v5376_v58  ;;  %v869_v58 = vpop.permute.xlu0 %868 }
 0x1b3   : > { %v832_v24 = vmul.f32 %v823_v27, %v814_v39  ;;  %v833_v42 = vmul.f32 %v827_v28, %v816_v50  ;;  %975 = vmatprep.subr.bf16.mxu1 %v905_v35  ;;  %v873_v4 = vsel %vm872_vm9, %v5418_v40, %v869_v58  ;;  %v875_v59 = vsel %vm872_vm9, %v869_v58, %v5418_v40 }
 0x1b4   : > { %976 = vmatpush1.bf16.msra.mxu1 %v904_v36  ;;  %v890_v7 = vmul.f32 %v883_v57, %v873_v4  ;;  %v891_v8 = vmul.f32 %v887_v44, %v875_v59 }
 0x1b5   : > { %v841_v47 = vpop.permute.xlu1 %840  ;;  %v907_v52 = vpack.c.bf16 %v833_v42, %v831_v17  ;;  %v906_v55 = vpack.c.bf16 %v832_v24, %v830_v41 }
 0x1b6   : > { %v844_v61 = vsel %vm842_vm8, %v5386_v63, %v841_v47  ;;  %v846_v62 = vsel %vm842_vm8, %v841_v47, %v5386_v63 }
 0x1b7   : > { %v862_v2 = vmul.f32 %v853_v37, %v844_v61  ;;  %v863_v3 = vmul.f32 %v857_v38, %v846_v62  ;;  %977 = vmatprep.subr.bf16.mxu1 %v907_v52 }
 0x1b8   : > { %978 = vmatpush1.bf16.msra.mxu1 %v906_v55 }
 0x1b9   : > { %v871_v60 = vpop.permute.xlu1 %870  ;;  %v909_v5 = vpack.c.bf16 %v863_v3, %v861_v1  ;;  %v908_v6 = vpack.c.bf16 %v862_v2, %v860_v53 }
 0x1ba   : > { %v874_v63 = vsel %vm872_vm9, %v5442_v13, %v871_v60  ;;  %v876_v49 = vsel %vm872_vm9, %v871_v60, %v5442_v13  ;;  %v4970_v13 = vld [vmem:[%s6846_s6 + $0x28] sm:$0xff]  }
 0x1bb   : > { %v892_v9 = vmul.f32 %v883_v57, %v874_v63  ;;  %v893_v10 = vmul.f32 %v887_v44, %v876_v49  ;;  %979 = vmatprep.subr.bf16.mxu1 %v909_v5  ;;  %4101 = vmatpush3.bf16.msra.mxu0 %v4970_v13  ;;  %v4981_v63 = vld [vmem:[%s6848_s8 + $0x8] ss:$12 sps:$4 sm:$0xff]   ;;  %v1400_v49 = vld [vmem:[%s6849_s9] sm:$0xff] }
 0x1bc   : > { %980 = vmatpush1.bf16.msra.mxu1 %v908_v6  ;;  %4102 = vmatprep.subr.bf16.mxu0 %v4971_v14  ;;  %v4977_v6 = vld [vmem:[%s6848_s8 + $0x4] ss:$12 sps:$4 sm:$0xff]  }
 0x1bd   : > { %v911_v11 = vpack.c.bf16 %v893_v10, %v891_v8  ;;  %v910_v40 = vpack.c.bf16 %v892_v9, %v890_v7  ;;  %v1401_v7 = vld [vmem:[%s6849_s9 + $0x8] sm:$0xff]  ;;  %v1402_v8 = vld [vmem:[%s6849_s9 + $0x10] sm:$0xff]  ;;  %v1403_v9 = vld [vmem:[%s6849_s9 + $0x18] sm:$0xff] }
 0x1be   : > { %v1404_v10 = vld [vmem:[%s6849_s9 + $0x20] sm:$0xff] }
 0x1bf   : > { %981 = vmatprep.subr.bf16.mxu1 %v911_v11  ;;  %4103 = vmatpush3.bf16.msra.mxu0 %v4972_v15  ;;  %v1405_v11 = vld [vmem:[%s6849_s9 + $0x28] sm:$0xff] }
 0x1c0   : > { %982 = vmatpush1.bf16.msra.mxu1 %v910_v40  ;;  %4104 = vmatprep.subr.bf16.mxu0 %v4973_v16  ;;  %v1406_v40 = vld [vmem:[%s6849_s9 + $0x30] sm:$0xff] }
 0x1c2   : > { %v923_v18 = vpop.permute.xlu0 %922 }
 0x1c3   : > { %998 = vmatmul.mubr.bf16.vlgmr.msra.gmra.mrb[0].mxu1 %v4953_v46  ;;  %4105 = vmatpush3.bf16.msra.mxu0 %v4974_v51  ;;  %v1407_v46 = vld [vmem:[%s6849_s9 + $0x38] sm:$0xff] }
 0x1c4   : > { %3980 = vmatprep.mubr.msk.bf16.mxu1 %vm958_vm1, %v4956_v12  ;;  %v3997_v12 = vld [vmem:[%s6847_s7] ss:$0 sm:$0xff] }
 0x1c6   : > { %v933_v34 = vpop.permute.xlu0 %932 }
 0x1ca   : > { %v928_v27 = vpop.permute.xlu1 %927 }
 0x1cb   : > { %1008 = vmatmul.mubr.bf16.gmra.mrb[4].mxu1 %v4958_v56 }
 0x1cc   : > { %1553 = vmatprep.mubr.bf16.mxu1 %v4977_v6 }
 0x1ce   : > { %v938_v38 = vpop.permute.xlu1 %937 }
 0x296   : > { %v999_v19 = vpop.f32.mrb[0].mxu1 }
 0x297   : > { %v1000_v20 = vadd.f32 %v999_v19, %v923_v18  ;;  %v1001_v26 = vpop.f32.mrb[1].mxu1 }
 0x298   : > { %v1002_v28 = vadd.f32 %v1001_v26, %v923_v18  ;;  %v1003_v29 = vpop.f32.mrb[2].mxu1 }
 0x299   : > { %v1004_v48 = vadd.f32 %v1003_v29, %v928_v27  ;;  %v1005_v30 = vpop.f32.mrb[3].mxu1  ;;  %v1018_v22 = vmax.f32 %v1000_v20, 0.0 }
 0x29a   : > { %v1006_v31 = vadd.f32 %v1005_v30, %v928_v27  ;;  %v1019_v25 = vmax.f32 %v1002_v28, 0.0 }
 0x29b   : > { %v1020_v23 = vmax.f32 %v1004_v48, 0.0 }
 0x29c   : > { %v1021_v32 = vmax.f32 %v1006_v31, 0.0 }
 0x29d   : > { %v1026_v33 = vpack.c.bf16 %v1020_v23, %v1018_v22 }
 0x29e   : > { %v1027_v54 = vpack.c.bf16 %v1021_v32, %v1019_v25  ;;  %v1009_v35 = vpop.f32.mrb[4].mxu1  ;;  %v4005_v25 = vld [vmem:[%s6847_s7 + $0x5] ss:$0 sm:$0xff] }
 0x29f   : > { %v1010_v36 = vadd.f32 %v1009_v35, %v933_v34  ;;  %v1011_v37 = vpop.f32.mrb[5].mxu1 }
 0x2a0   : > { %v1012_v39 = vadd.f32 %v1011_v37, %v933_v34  ;;  %v1013_v50 = vpop.f32.mrb[6].mxu1  ;;  %1190 = vmatprep.mubr.bf16.mxu0 %v1027_v54 }
 0x2a1   : > { %v1014_v41 = vadd.f32 %v1013_v50, %v938_v38  ;;  %v1015_v17 = vpop.f32.mrb[7].mxu1  ;;  %1191 = vmatmul.mubr.bf16.vlgmr.msra.gmra.mrb[4].mxu0 %v1026_v33  ;;  %v1022_v24 = vmax.f32 %v1010_v36, 0.0  ;;  %v3999_v36 = vld [vmem:[%s6847_s7 + $0x1] ss:$0 sm:$0xff] }
 0x2a2   : > { %v1016_v21 = vadd.f32 %v1015_v17, %v938_v38  ;;  %v1023_v43 = vmax.f32 %v1012_v39, 0.0 }
 0x2a3   : > { %v1024_v42 = vmax.f32 %v1014_v41, 0.0 }
 0x2a4   : > { %v1025_v45 = vmax.f32 %v1016_v21, 0.0 }
 0x2a5   : > { %v1028_v58 = vpack.c.bf16 %v1024_v42, %v1022_v24 }
 0x2a6   : > { %v1029_v47 = vpack.c.bf16 %v1025_v45, %v1023_v43  ;;  %v4007_v45 = vld [vmem:[%s6847_s7 + $0x6] ss:$0 sm:$0xff] }
 0x2a8   : > { %1198 = vmatprep.mubr.bf16.mxu0 %v1029_v47 }
 0x2a9   : > { %1199 = vmatmul.mubr.bf16.gmra.mrb[8].mxu0 %v1028_v58 }
 0x2aa   : > { %4427 = vmatprep.mubr.msk.bf16.mxu0 %vm1508_vm10, %v4981_v63  ;;  %v4009_v63 = vld [vmem:[%s6847_s7 + $0x7] ss:$0 sm:$0xff] }
 0x374   : > { %v4106_v52 = vpop.f32.mrb[4].mxu0 }
 0x375   : > { %v4107_v55 = vpop.f32.mrb[5].mxu0 }
 0x376   : > { %v4108_v57 = vadd.f32 %v4107_v55, %v4106_v52  ;;  %v4109_v44 = vpop.f32.mrb[6].mxu0 }
 0x377   : > { %v4110_v61 = vpop.f32.mrb[7].mxu0 }
 0x378   : > { %v4111_v62 = vadd.f32 %v4110_v61, %v4109_v44  ;;  %1207 = vrot.lane.b32.xlu0 %v4108_v57, %s5091_s29  ;;  %v4001_v61 = vld [vmem:[%s6847_s7 + $0x2] ss:$0 sm:$0xff] }
 0x37a   : > { %1209 = vrot.lane.b32.xlu1 %v4111_v62, %s5091_s29  ;;  %v1374_v53 = vpack.c.bf16 %v4111_v62, %v4108_v57 }
 0x37c   : > { %v4112_v1 = vpop.f32.mrb[8].mxu0  ;;  %1286 = vrot.lane.b32.xlu0 %v4108_v57, %s6880_s2  ;;  %4118 = vmatprep.subr.bf16.mxu1 %v1374_v53 }
 0x37d   : > { %v4113_v2 = vpop.f32.mrb[9].mxu0 }
 0x37e   : > { %v5544_v3 = vadd.f32 %v4113_v2, %v4112_v1  ;;  %v4115_v4 = vpop.f32.mrb[10].mxu0  ;;  %1288 = vrot.lane.b32.xlu1 %v4111_v62, %s6880_s2 }
 0x37f   : > { %v4116_v59 = vpop.f32.mrb[11].mxu0 }
 0x380   : > { %v5547_v60 = vadd.f32 %v4116_v59, %v4115_v4  ;;  %1226 = vrot.lane.b32.xlu0 %v4108_v57, %s5092_s26 }
 0x382   : > { %1228 = vrot.lane.b32.xlu1 %v4111_v62, %s5092_s26  ;;  %v1375_v5 = vpack.c.bf16 %v5547_v60, %v5544_v3 }
 0x384   : > { %1306 = vrot.lane.b32.xlu0 %v4108_v57, %s5093_s0 }
 0x386   : > { %1308 = vrot.lane.b32.xlu1 %v4111_v62, %s5093_s0 }
 0x388   : > { %1246 = vrot.lane.b32.xlu0 %v4108_v57, %s5094_s18 }
 0x38a   : > { %1248 = vrot.lane.b32.xlu1 %v4111_v62, %s5094_s18 }
 0x38c   : > { %1326 = vrot.lane.b32.xlu0 %v4108_v57, %s5095_s20 }
 0x38e   : > { %1328 = vrot.lane.b32.xlu1 %v4111_v62, %s5095_s20 }
 0x390   : > { %1266 = vrot.lane.b32.xlu0 %v4108_v57, %s6881_s19 }
 0x392   : > { %1268 = vrot.lane.b32.xlu1 %v4111_v62, %s6881_s19 }
 0x394   : > { %1211 = vrot.lane.b32.xlu0 %v5544_v3, %s5091_s29 }
 0x396   : > { %1213 = vrot.lane.b32.xlu1 %v5547_v60, %s5091_s29  ;;  %s5096_s29 = smov 119  }
 0x398   : > { %1290 = vrot.lane.b32.xlu0 %v5544_v3, %s6880_s2 }
 0x39a   : > { %1292 = vrot.lane.b32.xlu1 %v5547_v60, %s6880_s2 }
 0x39c   : > { %1230 = vrot.lane.b32.xlu0 %v5544_v3, %s5092_s26 }
 0x39e   : > { %1232 = vrot.lane.b32.xlu1 %v5547_v60, %s5092_s26 }
 0x3a0   : > { %1310 = vrot.lane.b32.xlu0 %v5544_v3, %s5093_s0 }
 0x3a2   : > { %1312 = vrot.lane.b32.xlu1 %v5547_v60, %s5093_s0  ;;  %s539_s0 = sand.u32 1, %s5072_s25  }
 0x3a3   : > { %s540_s3 = scalar_lea.vmem [#allocation2], %s539_s0 }
 0x3a4   : > { %1250 = vrot.lane.b32.xlu0 %v5544_v3, %s5094_s18  ;;  %s3900_s21 = sshll.u32 %s540_s3, 4  ;;  %s6800_s21 = int_to_ptr.vmem [resolvable:$true] %s3900_s21 }
 0x3a5   : > { %s5018_s2 = scalar_lea.vmem %s6800_s21, 16 }
 0x3a6   : > { %1252 = vrot.lane.b32.xlu1 %v5547_v60, %s5094_s18  ;;  %p5019_p11 = scmp.ne.s32.totalorder %s6800_s21, %s5018_s2 }
 0x3a8   : > { %1330 = vrot.lane.b32.xlu0 %v5544_v3, %s5095_s20  ;;  %p5020_p12 = pnand %p5019_p11, %p5230_p5 }
 0x3aa   : > { %1332 = vrot.lane.b32.xlu1 %v5547_v60, %s5095_s20  ;;  %p5021_p13 = pneg %p5020_p12 }
 0x3ac   : > { %1270 = vrot.lane.b32.xlu0 %v5544_v3, %s6881_s19 }
 0x3ae   : > { %1272 = vrot.lane.b32.xlu1 %v5547_v60, %s6881_s19  ;;  %s4087_s19 = sshll.u32 %s5213_s28, 4  ;;  %s5101_s28 = smov [#allocation2]  }
 0x3af   : > { %s6798_s23 = scalar_lea.hbm %s6857_s17, %s4087_s19  ;;  %s5022_s26 = sshll.u32 %s5101_s28, 4  ;;  %s5023_s26 = int_to_ptr.vmem [resolvable:$false] %s5022_s26 }
 0x3b0   : > { %1346 = vrot.lane.b32.xlu0 %v4108_v57, %s5096_s29  ;;  %s5024_s18 = scalar_lea.vmem %s5023_s26, 32  ;;  %p5025_p0 = scmp.lt.s32.totalorder %s6800_s21, %s5023_s26 }
 0x3b1   : > { %p5026_p1 = scmp.lt.s32.totalorder %s5024_s18, %s5018_s2 }
 0x3b2   : > { %1348 = vrot.lane.b32.xlu1 %v4111_v62, %s5096_s29 }
 0x3b3   : > { %p5027_p2 = por %p5026_p1, %p5025_p0 }
 0x3b4   : > { %1350 = vrot.lane.b32.xlu0 %v5544_v3, %s5096_s29 }
 0x3b5   : > { %p5028_p3 = pnand %p5027_p2, %p5021_p13 }
 0x3b6   : > { %1352 = vrot.lane.b32.xlu1 %v5547_v60, %s5096_s29  ;;  %s3888_s29 = scalar_lea.sflag [#allocation3], %s539_s0 }
 0x3b8   : > { %1410 = vperm.xlu0 %4941, %v1400_v49  }
 0x3ba   : > { %1415 = vperm.xlu1 %4942, %v1401_v7  }
 0x3bc   : > { %1420 = vperm.xlu0 %4941, %v1402_v8  }
 0x3be   : > { %1425 = vperm.xlu1 %4942, %v1403_v9  }
 0x3c0   : > { %1430 = vperm.xlu0 %4941, %v1404_v10  }
 0x3c2   : > { %1435 = vperm.xlu1 %4942, %v1405_v11  }
 0x3c4   : > { %1440 = vperm.xlu0 %4941, %v1406_v40   ;;  %v4003_v40 = vld [vmem:[%s6847_s7 + $0x3] ss:$0 sm:$0xff] }
 0x3c6   : > { %1445 = vperm.xlu1 %4942, %v1407_v46  }
 0x3ea   : > { %v1208_v56 = vpop.permute.xlu0 %1207 }
 0x3eb   : > { %v1222_v14 = vmul.f32 %v3997_v12, %v1208_v56 }
 0x3ec   : > { %v1210_v13 = vpop.permute.xlu1 %1209 }
 0x3ed   : > { %v1223_v15 = vmul.f32 %v3997_v12, %v1210_v13 }
 0x3ee   : > { %v1287_v16 = vpop.permute.xlu0 %1286 }
 0x3ef   : > { %v1366_v51 = vpack.c.bf16 %v1223_v15, %v1222_v14  ;;  %v1302_v35 = vmul.f32 %v4005_v25, %v1287_v16 }
 0x3f0   : > { %v1289_v18 = vpop.permute.xlu1 %1288 }
 0x3f1   : > { %4119 = vmatpush3.bf16.msra.mxu1 %v1366_v51  ;;  %v1303_v32 = vmul.f32 %v4005_v25, %v1289_v18 }
 0x3f2   : > { %v1227_v19 = vpop.permute.xlu0 %1226  ;;  %4120 = vmatprep.subr.bf16.mxu1 %v1375_v5 }
 0x3f3   : > { %v1376_v50 = vpack.c.bf16 %v1303_v32, %v1302_v35  ;;  %v1242_v17 = vmul.f32 %v3999_v36, %v1227_v19 }
 0x3f4   : > { %v1229_v20 = vpop.permute.xlu1 %1228 }
 0x3f5   : > { %v1243_v38 = vmul.f32 %v3999_v36, %v1229_v20 }
 0x3f6   : > { %v1307_v26 = vpop.permute.xlu0 %1306 }
 0x3f7   : > { %v1368_v43 = vpack.c.bf16 %v1243_v38, %v1242_v17  ;;  %v1322_v44 = vmul.f32 %v4007_v45, %v1307_v26  ;;  %v4992_v38 = vld [vmem:[%s6850_s10 + $0x8] sm:$0xff]   ;;  %v4983_v17 = vld [vmem:[%s6848_s8 + $0x34] ss:$12 sps:$4 sm:$0xff]  }
 0x3f8   : > { %v1309_v27 = vpop.permute.xlu1 %1308 }
 0x3f9   : > { %v1323_v47 = vmul.f32 %v4007_v45, %v1309_v27 }
 0x3fa   : > { %v1247_v28 = vpop.permute.xlu0 %1246 }
 0x3fb   : > { %v1378_v2 = vpack.c.bf16 %v1323_v47, %v1322_v44  ;;  %v1262_v4 = vmul.f32 %v4001_v61, %v1247_v28  ;;  %v4994_v47 = vld [vmem:[%s6850_s10 + $0x18] sm:$0xff]  }
 0x3fc   : > { %v1249_v29 = vpop.permute.xlu1 %1248  ;;  %v4998_v44 = vld [vmem:[%s6850_s10 + $0x38] sm:$0xff]  }
 0x3fd   : > { %v1263_v53 = vmul.f32 %v4001_v61, %v1249_v29  ;;  %v4011_v29 = vld [vmem:[%s6847_s7 + $0x8] ss:$0 sm:$0xff] }
 0x3fe   : > { %v1327_v48 = vpop.permute.xlu0 %1326 }
 0x3ff   : > { %v1370_v6 = vpack.c.bf16 %v1263_v53, %v1262_v4  ;;  %v1342_v11 = vmul.f32 %v4009_v63, %v1327_v48 }
 0x400   : > { %v1329_v30 = vpop.permute.xlu1 %1328 }
 0x401   : > { %v1343_v7 = vmul.f32 %v4009_v63, %v1329_v30 }
 0x402   : > { %v1267_v31 = vpop.permute.xlu0 %1266 }
 0x403   : > { %v1380_v13 = vpack.c.bf16 %v1343_v7, %v1342_v11  ;;  %v1282_v15 = vmul.f32 %v4003_v40, %v1267_v31  ;;  %v4975_v31 = vld [vmem:[%s6848_s8] ss:$12 sps:$4 sm:$0xff]  }
 0x404   : > { %v1269_v22 = vpop.permute.xlu1 %1268 }
 0x406   : > { %v1212_v23 = vpop.permute.xlu0 %1211 }
 0x407   : > { %v1224_v34 = vmul.f32 %v3997_v12, %v1212_v23  ;;  %v4991_v23 = vld [vmem:[%s6850_s10] sm:$0xff]  }
 0x408   : > { %v1214_v33 = vpop.permute.xlu1 %1213 }
 0x409   : > { %v1225_v54 = vmul.f32 %v3997_v12, %v1214_v33  ;;  %v1283_v12 = vmul.f32 %v4003_v40, %v1269_v22  ;;  %v4978_v33 = vld [vmem:[%s6848_s8 + $0x1c] ss:$12 sps:$4 sm:$0xff]  }
 0x40a   : > { %v1291_v37 = vpop.permute.xlu0 %1290 }
 0x40b   : > { %v1367_v39 = vpack.c.bf16 %v1225_v54, %v1224_v34  ;;  %v1304_v21 = vmul.f32 %v4005_v25, %v1291_v37  ;;  %v1372_v19 = vpack.c.bf16 %v1283_v12, %v1282_v15 }
 0x40c   : > { %v1293_v41 = vpop.permute.xlu1 %1292 }
 0x40d   : > { %v1305_v24 = vmul.f32 %v4005_v25, %v1293_v41  ;;  %4121 = vmatpush3.bf16.msra.mxu1 %v1367_v39  ;;  %v4982_v41 = vld [vmem:[%s6848_s8 + $0x20] ss:$12 sps:$4 sm:$0xff]  }
 0x40e   : > { %v1231_v42 = vpop.permute.xlu0 %1230  ;;  %4122 = vmatprep.subr.bf16.mxu1 %v1376_v50  ;;  %v4980_v50 = vld [vmem:[%s6848_s8 + $0x18] ss:$12 sps:$4 sm:$0xff]  }
 0x40f   : > { %v1377_v58 = vpack.c.bf16 %v1305_v24, %v1304_v21  ;;  %v1244_v55 = vmul.f32 %v3999_v36, %v1231_v42  ;;  %v4993_v21 = vld [vmem:[%s6850_s10 + $0x10] sm:$0xff]   ;;  %v4986_v24 = vld [vmem:[%s6848_s8 + $0x38] ss:$12 sps:$4 sm:$0xff]  }
 0x410   : > { %v1233_v52 = vpop.permute.xlu1 %1232  ;;  %v4985_v42 = vld [vmem:[%s6848_s8 + $0x30] ss:$12 sps:$4 sm:$0xff]  }
 0x411   : > { %v1245_v57 = vmul.f32 %v3999_v36, %v1233_v52  ;;  %4123 = vmatpush3.bf16.msra.mxu1 %v1368_v43  ;;  %v4987_v43 = vld [vmem:[%s6848_s8 + $0x50] ss:$12 sps:$4 sm:$0xff]   ;;  %v4995_v52 = vld [vmem:[%s6850_s10 + $0x20] sm:$0xff]  }
 0x412   : > { %v1311_v62 = vpop.permute.xlu0 %1310  ;;  %4124 = vmatprep.subr.bf16.mxu1 %v1377_v58  ;;  %v4990_v58 = vld [vmem:[%s6848_s8 + $0x48] ss:$12 sps:$4 sm:$0xff]  }
 0x413   : > { %v1369_v1 = vpack.c.bf16 %v1245_v57, %v1244_v55  ;;  %v1324_v59 = vmul.f32 %v4007_v45, %v1311_v62  ;;  %v4996_v55 = vld [vmem:[%s6850_s10 + $0x28] sm:$0xff]   ;;  %v4997_v57 = vld [vmem:[%s6850_s10 + $0x30] sm:$0xff]  }
 0x414   : > { %v1313_v3 = vpop.permute.xlu1 %1312 }
 0x415   : > { %v1325_v60 = vmul.f32 %v4007_v45, %v1313_v3  ;;  %4125 = vmatpush3.bf16.msra.mxu1 %v1369_v1  ;;  %v4988_v45 = vld [vmem:[%s6848_s8 + $0x4c] ss:$12 sps:$4 sm:$0xff]  }
 0x416   : > { %v1251_v5 = vpop.permute.xlu0 %1250  ;;  %4126 = vmatprep.subr.bf16.mxu1 %v1378_v2 }
 0x417   : > { %v1379_v49 = vpack.c.bf16 %v1325_v60, %v1324_v59  ;;  %v1264_v9 = vmul.f32 %v4001_v61, %v1251_v5 }
 0x418   : > { %v1253_v8 = vpop.permute.xlu1 %1252 }
 0x419   : > { %v1265_v10 = vmul.f32 %v4001_v61, %v1253_v8  ;;  %4127 = vmatpush3.bf16.msra.mxu1 %v1370_v6 }
 0x41a   : > { %v1331_v46 = vpop.permute.xlu0 %1330  ;;  %4128 = vmatprep.subr.bf16.mxu1 %v1379_v49 }
 0x41b   : > { %v1371_v56 = vpack.c.bf16 %v1265_v10, %v1264_v9  ;;  %v1344_v16 = vmul.f32 %v4009_v63, %v1331_v46 }
 0x41c   : > { %v1333_v14 = vpop.permute.xlu1 %1332 }
 0x41d   : > { %v1345_v51 = vmul.f32 %v4009_v63, %v1333_v14  ;;  %4129 = vmatpush3.bf16.msra.mxu1 %v1371_v56 }
 0x41e   : > { %v1271_v18 = vpop.permute.xlu0 %1270  ;;  %4130 = vmatprep.subr.bf16.mxu1 %v1380_v13 }
 0x41f   : > { %v1381_v20 = vpack.c.bf16 %v1345_v51, %v1344_v16  ;;  %v1284_v27 = vmul.f32 %v4003_v40, %v1271_v18 }
 0x420   : > { %v1273_v26 = vpop.permute.xlu1 %1272 }
 0x421   : > { %v1285_v28 = vmul.f32 %v4003_v40, %v1273_v26  ;;  %4131 = vmatpush3.bf16.msra.mxu1 %v1372_v19 }
 0x422   : > { %v1347_v48 = vpop.permute.xlu0 %1346  ;;  %4132 = vmatprep.subr.bf16.mxu1 %v1381_v20 }
 0x423   : > { %v1373_v30 = vpack.c.bf16 %v1285_v28, %v1284_v27  ;;  %v1362_v25 = vmul.f32 %v4011_v29, %v1347_v48 }
 0x424   : > { %v1349_v22 = vpop.permute.xlu1 %1348 }
 0x425   : > { %v1363_v32 = vmul.f32 %v4011_v29, %v1349_v22  ;;  %4133 = vmatpush3.bf16.msra.mxu1 %v1373_v30 }
 0x426   : > { %v1351_v34 = vpop.permute.xlu0 %1350  ;;  %4866 = vmatprep.subr.bf16.mxu1 %v4991_v23 }
 0x427   : > { %v1382_v54 = vpack.c.bf16 %v1363_v32, %v1362_v25  ;;  %v1364_v36 = vmul.f32 %v4011_v29, %v1351_v34 }
 0x428   : > { %v1353_v35 = vpop.permute.xlu1 %1352  ;;  %1554 = vmatmul.mubr.bf16.vlgmr.msra.gmra.mrb[8].mxu1 %v4975_v31 }
 0x429   : > { %v1365_v37 = vmul.f32 %v4011_v29, %v1353_v35  ;;  %4423 = vmatprep.subr.bf16.mxu0 %v1382_v54  ;;  %1561 = vmatprep.mubr.bf16.mxu1 %v4978_v33 }
 0x42a   : > { %4424 = vmatpush3.bf16.msra.mxu0 %v1382_v54  ;;  %4874 = vmatpush3.bf16.msra.mxu1 %v4991_v23 }
 0x42b   : > { %v1383_v39 = vpack.c.bf16 %v1365_v37, %v1364_v36  ;;  %4867 = vmatprep.subr.bf16.mxu1 %v4992_v38 }
 0x42d   : > { %4425 = vmatprep.subr.bf16.mxu0 %v1383_v39 }
 0x42e   : > { %4426 = vmatpush3.bf16.msra.mxu0 %v1383_v39  ;;  %4875 = vmatpush3.bf16.msra.mxu1 %v4992_v38 }
 0x42f   : > { %4435 = vmatprep.subr.bf16.mxu0 %v4991_v23  ;;  %4868 = vmatprep.subr.bf16.mxu1 %v4993_v21 }
 0x430   : > { %1562 = vmatmul.mubr.bf16.gmra.mrb[12].mxu1 %v4980_v50 }
 0x431   : > { %4428 = vmatmul.mubr.msk.bf16.vlgmr.msra.gmra.mrb[12].mxu0 %vm1508_vm10, %v4982_v41  ;;  %1569 = vmatprep.mubr.bf16.mxu1 %v4983_v17 }
 0x432   : > { %4431 = vmatprep.mubr.msk.bf16.mxu0 %vm1508_vm10, %v4986_v24  ;;  %4436 = vmatpush3.bf16.msra.mxu0 %v4991_v23 }
 0x433   : > { %4437 = vmatprep.subr.bf16.mxu0 %v4992_v38  ;;  %4876 = vmatpush3.bf16.msra.mxu1 %v4993_v21 }
 0x434   : > { %4869 = vmatprep.subr.bf16.mxu1 %v4994_v47 }
 0x436   : > { %4438 = vmatpush3.bf16.msra.mxu0 %v4992_v38 }
 0x437   : > { %4439 = vmatprep.subr.bf16.mxu0 %v4993_v21  ;;  %4877 = vmatpush3.bf16.msra.mxu1 %v4994_v47  ;;  %v1411_v53 = vpop.permute.xlu0 %1410 }
 0x438   : > { %1570 = vmatmul.mubr.bf16.gmra.mrb[16].mxu1 %v4985_v42  ;;  %4870 = vmatprep.subr.bf16.mxu1 %v4995_v52 }
 0x439   : > { %4432 = vmatmul.mubr.msk.bf16.gmra.mrb[16].mxu0 %vm1508_vm10, %v4987_v43  ;;  %1577 = vmatprep.mubr.bf16.mxu1 %v4988_v45  ;;  %v1416_v59 = vpop.permute.xlu1 %1415 }
 0x43a   : > { %4440 = vmatpush3.bf16.msra.mxu0 %v4993_v21 }
 0x43b   : > { %4441 = vmatprep.subr.bf16.mxu0 %v4994_v47  ;;  %4878 = vmatpush3.bf16.msra.mxu1 %v4995_v52  ;;  %v1421_v60 = vpop.permute.xlu0 %1420 }
 0x43c   : > { %4871 = vmatprep.subr.bf16.mxu1 %v4996_v55 }
 0x43d   : > { %v1426_v14 = vpop.permute.xlu1 %1425 }
 0x43e   : > { %4442 = vmatpush3.bf16.msra.mxu0 %v4994_v47 }
 0x43f   : > { %4443 = vmatprep.subr.bf16.mxu0 %v4995_v52  ;;  %4879 = vmatpush3.bf16.msra.mxu1 %v4996_v55  ;;  %v1431_v20 = vpop.permute.xlu0 %1430 }
 0x440   : > { %1578 = vmatmul.mubr.bf16.gmra.mrb[20].mxu1 %v4990_v58  ;;  %4872 = vmatprep.subr.bf16.mxu1 %v4997_v57 }
 0x441   : > { %v1436_v37 = vpop.permute.xlu1 %1435 }
 0x442   : > { %4444 = vmatpush3.bf16.msra.mxu0 %v4995_v52 }
 0x443   : > { %4445 = vmatprep.subr.bf16.mxu0 %v4996_v55  ;;  %4880 = vmatpush3.bf16.msra.mxu1 %v4997_v57  ;;  %v1441_v45 = vpop.permute.xlu0 %1440 }
 0x444   : > { %4873 = vmatprep.subr.bf16.mxu1 %v4998_v44 }
 0x446   : > { %4446 = vmatpush3.bf16.msra.mxu0 %v4996_v55 }
 0x447   : > { %4447 = vmatprep.subr.bf16.mxu0 %v4997_v57  ;;  %4881 = vmatpush3.bf16.msra.mxu1 %v4998_v44 }
 0x44a   : > { %4448 = vmatpush3.bf16.msra.mxu0 %v4997_v57  ;;  %v1446_v57 = vpop.permute.xlu1 %1445 }
 0x44b   : > { %4449 = vmatprep.subr.bf16.mxu0 %v4998_v44 }
 0x44e   : > { %4450 = vmatpush3.bf16.msra.mxu0 %v4998_v44 }
 0x4fb   : > { %v4134_v61 = vpop.f32.mrb[8].mxu1 }
 0x4fc   : > { %v4135_v62 = vpop.f32.mrb[9].mxu1 }
 0x4fd   : > { %v4136_v1 = vadd.f32 %v4135_v62, %v4134_v61  ;;  %v4137_v2 = vpop.f32.mrb[10].mxu1 }
 0x4fe   : > { %v4138_v3 = vpop.f32.mrb[11].mxu1 }
 0x4ff   : > { %v4139_v4 = vadd.f32 %v4138_v3, %v4137_v2  ;;  %v1556_v49 = vadd.f32 %v4136_v1, %v1411_v53  ;;  %v5001_v3 = vld [vmem:[%s6851_s11 + $0x4] ss:$52 sps:$4 sm:$0xff]  }
 0x500   : > { %1888 = vmatprep.subr.bf16.mxu1 %v5001_v3  ;;  %v2431_v3 = vld [vmem:[%s6852_s12 + $0x140] sm:$0xff] }
 0x501   : > { %v1559_v46 = vadd.f32 %v4139_v4, %v1416_v59  ;;  %v5004_v4 = vld [vmem:[%s6851_s11 + $0xc] ss:$52 sps:$4 sm:$0xff]  }
 0x502   : > { %v4999_v59 = vld [vmem:[%s6851_s11] ss:$52 sps:$4 sm:$0xff]   ;;  %1961 = vmatprep.subr.bf16.mxu0 %v5004_v4 }
 0x503   : > { %v4140_v5 = vpop.f32.mrb[12].mxu1  ;;  %v2433_v4 = vld [vmem:[%s6852_s12 + $0x150] sm:$0xff] }
 0x504   : > { %v4141_v6 = vpop.f32.mrb[13].mxu1  ;;  %v4429_v63 = vpop.f32.mrb[12].mxu0 }
 0x505   : > { %v4142_v7 = vadd.f32 %v4141_v6, %v4140_v5  ;;  %v4143_v8 = vpop.f32.mrb[14].mxu1  ;;  %v1620_v9 = vpop.f32.mrb[13].mxu0  ;;  %v5007_v5 = vld [vmem:[%s6851_s11 + $0x14] ss:$52 sps:$4 sm:$0xff]   ;;  %v5010_v6 = vld [vmem:[%s6851_s11 + $0x1c] ss:$52 sps:$4 sm:$0xff]  }
 0x506   : > { %v1621_v10 = vadd.f32 %v1620_v9, %v1556_v49  ;;  %v4144_v11 = vpop.f32.mrb[15].mxu1  ;;  %v4430_v40 = vpop.f32.mrb[14].mxu0 }
 0x507   : > { %v1564_v12 = vadd.f32 %v4142_v7, %v1421_v60  ;;  %v4145_v56 = vadd.f32 %v4144_v11, %v4143_v8  ;;  %v1623_v13 = vpop.f32.mrb[15].mxu0  ;;  %v5002_v60 = vld [vmem:[%s6851_s11 + $0x8] ss:$52 sps:$4 sm:$0xff]   ;;  %v5005_v11 = vld [vmem:[%s6851_s11 + $0x10] ss:$52 sps:$4 sm:$0xff]  }
 0x508   : > { %v1624_v15 = vadd.f32 %v1623_v13, %v1559_v46  ;;  %v1651_v18 = vmax.f32 %v1621_v10, 0.0  ;;  %v5013_v46 = vld [vmem:[%s6851_s11 + $0x24] ss:$52 sps:$4 sm:$0xff]  }
 0x509   : > { %v1629_v16 = vadd.f32 %v4429_v63, %v1564_v12  ;;  %v1567_v51 = vadd.f32 %v4145_v56, %v1426_v14  ;;  %v5016_v12 = vld [vmem:[%s6851_s11 + $0x2c] ss:$52 sps:$4 sm:$0xff]  }
 0x50a   : > { %v1652_v19 = vmax.f32 %v1624_v15, 0.0 }
 0x50b   : > { %v1632_v26 = vadd.f32 %v4430_v40, %v1567_v51  ;;  %v4146_v27 = vpop.f32.mrb[16].mxu1  ;;  %v1653_v30 = vmax.f32 %v1629_v16, 0.0  ;;  %v5008_v40 = vld [vmem:[%s6851_s11 + $0x18] ss:$52 sps:$4 sm:$0xff]  }
 0x50c   : > { %v1659_v28 = vpack.c.bf16 %v1652_v19, %v1651_v18  ;;  %v4147_v29 = vpop.f32.mrb[17].mxu1  ;;  %v4433_v48 = vpop.f32.mrb[16].mxu0  ;;  %v5011_v18 = vld [vmem:[%s6851_s11 + $0x20] ss:$52 sps:$4 sm:$0xff]   ;;  %v5014_v19 = vld [vmem:[%s6851_s11 + $0x28] ss:$52 sps:$4 sm:$0xff]  }
 0x50d   : > { %v1654_v22 = vmax.f32 %v1632_v26, 0.0  ;;  %v4148_v31 = vadd.f32 %v4147_v29, %v4146_v27  ;;  %v4149_v23 = vpop.f32.mrb[18].mxu1  ;;  %v1636_v25 = vpop.f32.mrb[17].mxu0  ;;  %v5097_v26 = vmov 0.0   ;;  %v2393_v27 = vld [vmem:[%s6852_s12 + $0x10] sm:$0xff] }
 0x50e   : > { %v4150_v32 = vpop.f32.mrb[19].mxu1  ;;  %4451 = vmatprep.mubr.bf16.mxu0 %v1659_v28  ;;  %v4434_v33 = vpop.f32.mrb[18].mxu0 }
 0x50f   : > { %v1660_v34 = vpack.c.bf16 %v1654_v22, %v1653_v30  ;;  %v4151_v54 = vadd.f32 %v4150_v32, %v4149_v23  ;;  %v1572_v35 = vadd.f32 %v4148_v31, %v1431_v20  ;;  %v1639_v36 = vpop.f32.mrb[19].mxu0  ;;  %v5017_v20 = vld [vmem:[%s6851_s11 + $0x30] ss:$52 sps:$4 sm:$0xff]   ;;  %v2404_v30 = vld [vmem:[%s6852_s12 + $0x68] sm:$0xff]  ;;  %v2406_v22 = vld [vmem:[%s6852_s12 + $0x78] sm:$0xff] }
 0x510   : > { %v2405_v32 = vld [vmem:[%s6852_s12 + $0x70] sm:$0xff] }
 0x511   : > { %v1637_v38 = vadd.f32 %v1636_v25, %v1572_v35  ;;  %4452 = vmatmul.mubr.bf16.vlgmr.msra.gmra.mrb[20].mxu0 %v1660_v34  ;;  %v1575_v39 = vadd.f32 %v4151_v54, %v1436_v37  ;;  %v2394_v25 = vld [vmem:[%s6852_s12 + $0x18] sm:$0xff] }
 0x512   : > { %1993 = vmatprep.mubr.bf16.mxu0 %v5082_v0  ;;  %1962 = vmatpush1.bf16.msra.mxu0 %v5002_v60 }
 0x513   : > { %v1640_v50 = vadd.f32 %v1639_v36, %v1575_v39  ;;  %v4152_v41 = vpop.f32.mrb[20].mxu1  ;;  %v1655_v21 = vmax.f32 %v1637_v38, 0.0  ;;  %2107 = vmatprep.subr.bf16.mxu0 %v5010_v6 }
 0x514   : > { %v4153_v17 = vpop.f32.mrb[21].mxu1 }
 0x515   : > { %v1656_v24 = vmax.f32 %v1640_v50, 0.0  ;;  %v4154_v42 = vadd.f32 %v4153_v17, %v4152_v41  ;;  %v4155_v43 = vpop.f32.mrb[22].mxu1 }
 0x516   : > { %v4156_v58 = vpop.f32.mrb[23].mxu1 }
 0x517   : > { %v1661_v47 = vpack.c.bf16 %v1656_v24, %v1655_v21  ;;  %v1580_v52 = vadd.f32 %v4154_v42, %v1441_v45  ;;  %v4157_v55 = vadd.f32 %v4156_v58, %v4155_v43 }
 0x519   : > { %v1645_v44 = vadd.f32 %v4433_v48, %v1580_v52  ;;  %v1583_v61 = vadd.f32 %v4157_v55, %v1446_v57  ;;  %4455 = vmatprep.mubr.bf16.mxu1 %v1661_v47  ;;  %v2392_v48 = vld [vmem:[%s6852_s12 + $0x8] sm:$0xff]  ;;  %v2417_v47 = vld [vmem:[%s6852_s12 + $0xd0] sm:$0xff]  ;;  %v2419_v52 = vld [vmem:[%s6852_s12 + $0xe0] sm:$0xff] }
 0x51b   : > { %v1648_v62 = vadd.f32 %v4434_v33, %v1583_v61  ;;  %v1657_v53 = vmax.f32 %v1645_v44, 0.0  ;;  %v2407_v33 = vld [vmem:[%s6852_s12 + $0x80] sm:$0xff]  ;;  %v2418_v44 = vld [vmem:[%s6852_s12 + $0xd8] sm:$0xff] }
 0x51c   : > { %v2430_v61 = vld [vmem:[%s6852_s12 + $0x138] sm:$0xff] }
 0x51d   : > { %v1658_v1 = vmax.f32 %v1648_v62, 0.0  ;;  %v2432_v62 = vld [vmem:[%s6852_s12 + $0x148] sm:$0xff] }
 0x51f   : > { %v1662_v2 = vpack.c.bf16 %v1658_v1, %v1657_v53 }
 0x521   : > { %4456 = vmatmul.mubr.bf16.vlgmr.msra.gmra.mrb[24].mxu1 %v1662_v2  ;;  %v2420_v2 = vld [vmem:[%s6852_s12 + $0xe8] sm:$0xff] }
 0x522   : > { %1920 = vmatprep.mubr.bf16.mxu1 %v5082_v0  ;;  %1889 = vmatpush1.bf16.msra.mxu1 %v4999_v59 }
 0x523   : > { %2034 = vmatprep.subr.bf16.mxu1 %v5007_v5 }
 0x5e4   : > { %v4453_v63 = vpop.f32.mrb[20].mxu0 }
 0x5e5   : > { %v1761_v49 = vpop.f32.mrb[21].mxu0 }
 0x5e6   : > { %v4454_v7 = vpop.f32.mrb[22].mxu0 }
 0x5e7   : > { %v5705_v8 = vpack.c.bf16 %v4454_v7, %v4453_v63  ;;  %v1764_v9 = vpop.f32.mrb[23].mxu0 }
 0x5e8   : > { %v5707_v10 = vpack.c.bf16 %v1764_v9, %v1761_v49 }
 0x5ea   : > { %4049 = vmatmul.mubr.msk.bf16.vlgmr.msra.gmra.mrb[28].mxu1 %vm958_vm1, %v5707_v10  ;;  %4053 = vmatmul.mubr.msk.bf16.vlgmr.msra.gmra.mrb[24].mxu0 %vm958_vm1, %v5707_v10 }
 0x5eb   : > { %1930 = vmatprep.mubr.bf16.mxu1 %v5082_v0  ;;  %2003 = vmatprep.mubr.bf16.mxu0 %v5082_v0 }
 0x5ec   : > { %2035 = vmatpush1.bf16.msra.mxu1 %v5005_v11  ;;  %2108 = vmatpush1.bf16.msra.mxu0 %v5008_v40 }
 0x5ed   : > { %2180 = vmatprep.subr.bf16.mxu1 %v5013_v46  ;;  %2253 = vmatprep.subr.bf16.mxu0 %v5016_v12 }
 0x5f2   : > { %4050 = vmatmul.mubr.msk.bf16.gmra.mrb[32].mxu1 %vm958_vm1, %v5705_v8  ;;  %4054 = vmatmul.mubr.msk.bf16.gmra.mrb[28].mxu0 %vm958_vm1, %v5705_v8 }
 0x5f3   : > { %1940 = vmatprep.mubr.bf16.mxu1 %v5082_v0  ;;  %2013 = vmatprep.mubr.bf16.mxu0 %v5082_v0 }
 0x5f4   : > { %v4457_v56 = vpop.f32.mrb[24].mxu1 }
 0x5f5   : > { %v1777_v13 = vpop.f32.mrb[25].mxu1 }
 0x5f6   : > { %v4458_v14 = vpop.f32.mrb[26].mxu1 }
 0x5f7   : > { %v1795_v15 = vpack.c.bf16 %v4458_v14, %v4457_v56  ;;  %v1780_v16 = vpop.f32.mrb[27].mxu1  ;;  %v2443_v14 = vld [vmem:[%s6852_s12 + $0x1a0] sm:$0xff] }
 0x5f8   : > { %v1794_v51 = vpack.c.bf16 %v1780_v16, %v1777_v13 }
 0x5fa   : > { %4051 = vmatmul.mubr.msk.bf16.gmra.mrb[36].mxu1 %vm958_vm1, %v1794_v51  ;;  %4055 = vmatmul.mubr.msk.bf16.gmra.mrb[32].mxu0 %vm958_vm1, %v1794_v51 }
 0x5fb   : > { %1950 = vmatprep.mubr.bf16.mxu1 %v5082_v0  ;;  %2023 = vmatprep.mubr.bf16.mxu0 %v5082_v0 }
 0x602   : > { %4052 = vmatmul.mubr.msk.bf16.gmra.mrb[40].mxu1 %vm958_vm1, %v1795_v15  ;;  %4056 = vmatmul.mubr.msk.bf16.gmra.mrb[36].mxu0 %vm958_vm1, %v1795_v15 }
 0x603   : > { %2066 = vmatprep.mubr.bf16.mxu1 %v5082_v0  ;;  %2139 = vmatprep.mubr.bf16.mxu0 %v5082_v0 }
 0x60a   : > { %4057 = vmatmul.mubr.msk.bf16.vlgmr.msra.gmra.mrb[44].mxu1 %vm958_vm1, %v5707_v10  ;;  %4061 = vmatmul.mubr.msk.bf16.vlgmr.msra.gmra.mrb[40].mxu0 %vm958_vm1, %v5707_v10 }
 0x60b   : > { %2076 = vmatprep.mubr.bf16.mxu1 %v5082_v0  ;;  %2149 = vmatprep.mubr.bf16.mxu0 %v5082_v0 }
 0x60c   : > { %2181 = vmatpush1.bf16.msra.mxu1 %v5011_v18  ;;  %2254 = vmatpush1.bf16.msra.mxu0 %v5014_v19  ;;  %v2444_v18 = vld [vmem:[%s6852_s12 + $0x1a8] sm:$0xff] }
 0x60d   : > { %4459 = vmatprep.subr.bf16.mxu1 %v5017_v20  ;;  %v2456_v19 = vld [vmem:[%s6852_s12 + $0x208] sm:$0xff] }
 0x612   : > { %4058 = vmatmul.mubr.msk.bf16.gmra.mrb[48].mxu1 %vm958_vm1, %v5705_v8  ;;  %4062 = vmatmul.mubr.msk.bf16.gmra.mrb[44].mxu0 %vm958_vm1, %v5705_v8 }
 0x613   : > { %2086 = vmatprep.mubr.bf16.mxu1 %v5082_v0  ;;  %2159 = vmatprep.mubr.bf16.mxu0 %v5082_v0 }
 0x61a   : > { %4059 = vmatmul.mubr.msk.bf16.gmra.mrb[52].mxu1 %vm958_vm1, %v1794_v51  ;;  %4063 = vmatmul.mubr.msk.bf16.gmra.mrb[48].mxu0 %vm958_vm1, %v1794_v51 }
 0x61b   : > { %2096 = vmatprep.mubr.bf16.mxu1 %v5082_v0  ;;  %2169 = vmatprep.mubr.bf16.mxu0 %v5082_v0 }
 0x622   : > { %4060 = vmatmul.mubr.msk.bf16.gmra.mrb[56].mxu1 %vm958_vm1, %v1795_v15  ;;  %4064 = vmatmul.mubr.msk.bf16.gmra.mrb[52].mxu0 %vm958_vm1, %v1795_v15 }
 0x623   : > { %2212 = vmatprep.mubr.bf16.mxu1 %v5082_v0  ;;  %2285 = vmatprep.mubr.bf16.mxu0 %v5082_v0 }
 0x62a   : > { %4065 = vmatmul.mubr.msk.bf16.vlgmr.msra.gmra.mrb[60].mxu1 %vm958_vm1, %v5707_v10  ;;  %4069 = vmatmul.mubr.msk.bf16.vlgmr.msra.gmra.mrb[56].mxu0 %vm958_vm1, %v5707_v10 }
 0x62b   : > { %2222 = vmatprep.mubr.bf16.mxu1 %v5082_v0  ;;  %2295 = vmatprep.mubr.bf16.mxu0 %v5082_v0 }
 0x62c   : > { %4460 = vmatpush3.bf16.msra.mxu1 %v5017_v20  ;;  %v2458_v20 = vld [vmem:[%s6852_s12 + $0x218] sm:$0xff] }
 0x632   : > { %4066 = vmatmul.mubr.msk.bf16.gmra.mrb[64].mxu1 %vm958_vm1, %v5705_v8  ;;  %4070 = vmatmul.mubr.msk.bf16.gmra.mrb[60].mxu0 %vm958_vm1, %v5705_v8 }
 0x633   : > { %2232 = vmatprep.mubr.bf16.mxu1 %v5082_v0  ;;  %2305 = vmatprep.mubr.bf16.mxu0 %v5082_v0 }
 0x63a   : > { %4067 = vmatmul.mubr.msk.bf16.gmra.mrb[68].mxu1 %vm958_vm1, %v1794_v51  ;;  %4071 = vmatmul.mubr.msk.bf16.gmra.mrb[64].mxu0 %vm958_vm1, %v1794_v51 }
 0x63b   : > { %2242 = vmatprep.mubr.bf16.mxu1 %v5082_v0  ;;  %2315 = vmatprep.mubr.bf16.mxu0 %v5082_v0  ;;  %v2391_v0 = vld [vmem:[%s6852_s12] sm:$0xff] }
 0x642   : > { %4068 = vmatmul.mubr.msk.bf16.gmra.mrb[72].mxu1 %vm958_vm1, %v1795_v15  ;;  %4072 = vmatmul.mubr.msk.bf16.gmra.mrb[68].mxu0 %vm958_vm1, %v1795_v15 }
 0x643   : > { %4461 = vmatprep.mubr.msk.bf16.mxu1 %vm958_vm1, %v5707_v10  ;;  %2667 = vmatprep.mubr.f32.mxu0 %v5097_v26 }
 0x64a   : > { %4462 = vmatmul.mubr.msk.bf16.vlgmr.msra.gmra.mrb[76].mxu1 %vm958_vm1, %v5705_v8 }
 0x64b   : > { %4465 = vmatprep.mubr.msk.bf16.mxu1 %vm958_vm1, %v1794_v51 }
 0x652   : > { %4466 = vmatmul.mubr.msk.bf16.gmra.mrb[80].mxu1 %vm958_vm1, %v1795_v15  ;;  %v2445_v15 = vld [vmem:[%s6852_s12 + $0x1b0] sm:$0xff] }
 0x653   : > { %2738 = vmatprep.mubr.f32.mxu1 %v5097_v26 }
 0x6bd   : > { %v1922_v28 = vpop.f32.mrb[28].mxu1  ;;  %v1995_v29 = vpop.f32.mrb[24].mxu0 }
 0x6be   : > { %v1924_v31 = vpop.f32.mrb[29].mxu1  ;;  %v1997_v23 = vpop.f32.mrb[25].mxu0  ;;  %v2495_v35 = vmul.f32 %v2391_v0, %v1922_v28  ;;  %v2497_v36 = vmul.f32 %v2393_v27, %v1995_v29  ;;  %v2446_v28 = vld [vmem:[%s6852_s12 + $0x1b8] sm:$0xff]  ;;  %v2457_v29 = vld [vmem:[%s6852_s12 + $0x210] sm:$0xff] }
 0x6bf   : > { %v1926_v34 = vpop.f32.mrb[30].mxu1  ;;  %v1999_v54 = vpop.f32.mrb[26].mxu0  ;;  %v2496_v41 = vmul.f32 %v2392_v48, %v1924_v31  ;;  %v2498_v17 = vmul.f32 %v2394_v25, %v1997_v23  ;;  %v2459_v48 = vld [vmem:[%s6852_s12 + $0x220] sm:$0xff] }
 0x6c0   : > { %v2508_v37 = vmul.f32 %v2404_v30, %v1926_v34  ;;  %v2510_v38 = vmul.f32 %v2406_v22, %v1999_v54  ;;  %v1928_v39 = vpop.f32.mrb[31].mxu1  ;;  %v2001_v50 = vpop.f32.mrb[27].mxu0 }
 0x6c1   : > { %v2509_v21 = vmul.f32 %v2405_v32, %v1928_v39  ;;  %v2511_v24 = vmul.f32 %v2407_v33, %v2001_v50 }
 0x6c2   : > { %v4538_v42 = vpack.c.bf16 %v2508_v37, %v2495_v35  ;;  %v4554_v43 = vpack.c.bf16 %v2510_v38, %v2497_v36 }
 0x6c3   : > { %v4536_v45 = vpack.c.bf16 %v2509_v21, %v2496_v41  ;;  %v4552_v58 = vpack.c.bf16 %v2511_v24, %v2498_v17  ;;  %v2469_v17 = vld [vmem:[%s6852_s12 + $0x270] sm:$0xff]  ;;  %v2471_v21 = vld [vmem:[%s6852_s12 + $0x280] sm:$0xff] }
 0x6c5   : > { %v1932_v55 = vpop.f32.mrb[32].mxu1  ;;  %v2005_v57 = vpop.f32.mrb[28].mxu0  ;;  %4537 = vmatprep.subr.bf16.mxu0 %v4536_v45  ;;  %4553 = vmatprep.subr.bf16.mxu1 %v4552_v58  ;;  %v2482_v45 = vld [vmem:[%s6852_s12 + $0x2d8] sm:$0xff]  ;;  %v2484_v58 = vld [vmem:[%s6852_s12 + $0x2e8] sm:$0xff] }
 0x6c6   : > { %v1934_v53 = vpop.f32.mrb[33].mxu1  ;;  %v2007_v1 = vpop.f32.mrb[29].mxu0  ;;  %4539 = vmatpush1.bf16.msra.mxu0 %v4538_v42  ;;  %4555 = vmatpush1.bf16.msra.mxu1 %v4554_v43  ;;  %v2521_v5 = vmul.f32 %v2417_v47, %v1932_v55  ;;  %v2523_v6 = vmul.f32 %v2419_v52, %v2005_v57  ;;  %v2470_v43 = vld [vmem:[%s6852_s12 + $0x278] sm:$0xff]  ;;  %v2472_v55 = vld [vmem:[%s6852_s12 + $0x288] sm:$0xff]  ;;  %v2483_v57 = vld [vmem:[%s6852_s12 + $0x2e0] sm:$0xff] }
 0x6c7   : > { %v1936_v59 = vpop.f32.mrb[34].mxu1  ;;  %v2009_v60 = vpop.f32.mrb[30].mxu0  ;;  %v2522_v9 = vmul.f32 %v2418_v44, %v1934_v53  ;;  %v2524_v10 = vmul.f32 %v2420_v2, %v2007_v1  ;;  %v2485_v44 = vld [vmem:[%s6852_s12 + $0x2f0] sm:$0xff] }
 0x6c8   : > { %v2534_v63 = vmul.f32 %v2430_v61, %v1936_v59  ;;  %v2536_v49 = vmul.f32 %v2432_v62, %v2009_v60  ;;  %v1938_v7 = vpop.f32.mrb[35].mxu1  ;;  %v2011_v8 = vpop.f32.mrb[31].mxu0 }
 0x6c9   : > { %v2535_v11 = vmul.f32 %v2431_v3, %v1938_v7  ;;  %v2537_v40 = vmul.f32 %v2433_v4, %v2011_v8 }
 0x6ca   : > { %v4542_v46 = vpack.c.bf16 %v2534_v63, %v2521_v5  ;;  %v4558_v12 = vpack.c.bf16 %v2536_v49, %v2523_v6 }
 0x6cb   : > { %v4540_v56 = vpack.c.bf16 %v2535_v11, %v2522_v9  ;;  %v4556_v13 = vpack.c.bf16 %v2537_v40, %v2524_v10  ;;  %v2395_v10 = vld [vmem:[%s6852_s12 + $0x20] sm:$0xff]  ;;  %v2397_v11 = vld [vmem:[%s6852_s12 + $0x30] sm:$0xff]  ;;  %v2396_v40 = vld [vmem:[%s6852_s12 + $0x28] sm:$0xff] }
 0x6cd   : > { %v1942_v16 = vpop.f32.mrb[36].mxu1  ;;  %v2015_v51 = vpop.f32.mrb[32].mxu0  ;;  %4541 = vmatprep.subr.bf16.mxu0 %v4540_v56  ;;  %4557 = vmatprep.subr.bf16.mxu1 %v4556_v13  ;;  %v2398_v56 = vld [vmem:[%s6852_s12 + $0x38] sm:$0xff]  ;;  %v2408_v13 = vld [vmem:[%s6852_s12 + $0x88] sm:$0xff] }
 0x6ce   : > { %v1944_v0 = vpop.f32.mrb[37].mxu1  ;;  %v2017_v27 = vpop.f32.mrb[33].mxu0  ;;  %4543 = vmatpush1.bf16.msra.mxu0 %v4542_v46  ;;  %4559 = vmatpush1.bf16.msra.mxu1 %v4558_v12  ;;  %v2547_v31 = vmul.f32 %v2443_v14, %v1942_v16  ;;  %v2549_v23 = vmul.f32 %v2445_v15, %v2015_v51  ;;  %v2410_v14 = vld [vmem:[%s6852_s12 + $0x98] sm:$0xff]  ;;  %v2409_v51 = vld [vmem:[%s6852_s12 + $0x90] sm:$0xff] }
 0x6cf   : > { %v1946_v30 = vpop.f32.mrb[38].mxu1  ;;  %v2019_v22 = vpop.f32.mrb[34].mxu0  ;;  %v2548_v54 = vmul.f32 %v2444_v18, %v1944_v0  ;;  %v2550_v35 = vmul.f32 %v2446_v28, %v2017_v27  ;;  %v2411_v18 = vld [vmem:[%s6852_s12 + $0xa0] sm:$0xff] }
 0x6d0   : > { %v2560_v25 = vmul.f32 %v2456_v19, %v1946_v30  ;;  %v2562_v32 = vmul.f32 %v2458_v20, %v2019_v22  ;;  %v1948_v33 = vpop.f32.mrb[39].mxu1  ;;  %v2021_v34 = vpop.f32.mrb[35].mxu0 }
 0x6d1   : > { %v2561_v36 = vmul.f32 %v2457_v29, %v1948_v33  ;;  %v2563_v37 = vmul.f32 %v2459_v48, %v2021_v34 }
 0x6d2   : > { %v4546_v38 = vpack.c.bf16 %v2560_v25, %v2547_v31  ;;  %v4562_v39 = vpack.c.bf16 %v2562_v32, %v2549_v23  ;;  %v5098_v32 = vmov 1.0  }
 0x6d3   : > { %v4544_v50 = vpack.c.bf16 %v2561_v36, %v2548_v54  ;;  %v4560_v41 = vpack.c.bf16 %v2563_v37, %v2550_v35  ;;  %v2421_v36 = vld [vmem:[%s6852_s12 + $0xf0] sm:$0xff]  ;;  %v2423_v37 = vld [vmem:[%s6852_s12 + $0x100] sm:$0xff] }
 0x6d5   : > { %v1952_v24 = vpop.f32.mrb[40].mxu1  ;;  %v2025_v42 = vpop.f32.mrb[36].mxu0  ;;  %4545 = vmatprep.subr.bf16.mxu0 %v4544_v50  ;;  %4561 = vmatprep.subr.bf16.mxu1 %v4560_v41  ;;  %v2422_v50 = vld [vmem:[%s6852_s12 + $0xf8] sm:$0xff] }
 0x6d6   : > { %v1954_v47 = vpop.f32.mrb[41].mxu1  ;;  %v2027_v52 = vpop.f32.mrb[37].mxu0  ;;  %4547 = vmatpush1.bf16.msra.mxu0 %v4546_v38  ;;  %4563 = vmatpush1.bf16.msra.mxu1 %v4562_v39  ;;  %v2573_v53 = vmul.f32 %v2469_v17, %v1952_v24  ;;  %v2575_v1 = vmul.f32 %v2471_v21, %v2025_v42  ;;  %v2434_v41 = vld [vmem:[%s6852_s12 + $0x158] sm:$0xff]  ;;  %v2436_v17 = vld [vmem:[%s6852_s12 + $0x168] sm:$0xff] }
 0x6d7   : > { %v1956_v61 = vpop.f32.mrb[42].mxu1  ;;  %v2029_v62 = vpop.f32.mrb[38].mxu0  ;;  %v2574_v60 = vmul.f32 %v2470_v43, %v1954_v47  ;;  %v2576_v5 = vmul.f32 %v2472_v55, %v2027_v52  ;;  %v2424_v42 = vld [vmem:[%s6852_s12 + $0x108] sm:$0xff]  ;;  %v2435_v43 = vld [vmem:[%s6852_s12 + $0x160] sm:$0xff] }
 0x6d8   : > { %v2586_v2 = vmul.f32 %v2482_v45, %v1956_v61  ;;  %v2588_v3 = vmul.f32 %v2484_v58, %v2029_v62  ;;  %v1958_v4 = vpop.f32.mrb[43].mxu1  ;;  %v2031_v59 = vpop.f32.mrb[39].mxu0  ;;  %v2437_v45 = vld [vmem:[%s6852_s12 + $0x170] sm:$0xff] }
 0x6d9   : > { %v2587_v6 = vmul.f32 %v2483_v57, %v1958_v4  ;;  %v2589_v63 = vmul.f32 %v2485_v44, %v2031_v59 }
 0x6da   : > { %v4550_v49 = vpack.c.bf16 %v2586_v2, %v2573_v53  ;;  %v4566_v7 = vpack.c.bf16 %v2588_v3, %v2575_v1 }
 0x6db   : > { %v4548_v8 = vpack.c.bf16 %v2587_v6, %v2574_v60  ;;  %v4564_v9 = vpack.c.bf16 %v2589_v63, %v2576_v5  ;;  %v2447_v6 = vld [vmem:[%s6852_s12 + $0x1c0] sm:$0xff]  ;;  %v2449_v63 = vld [vmem:[%s6852_s12 + $0x1d0] sm:$0xff] }
 0x6dd   : > { %v2068_v46 = vpop.f32.mrb[44].mxu1  ;;  %v2141_v12 = vpop.f32.mrb[40].mxu0  ;;  %4549 = vmatprep.subr.bf16.mxu0 %v4548_v8  ;;  %4565 = vmatprep.subr.bf16.mxu1 %v4564_v9  ;;  %v2448_v8 = vld [vmem:[%s6852_s12 + $0x1c8] sm:$0xff] }
 0x6de   : > { %v2070_v15 = vpop.f32.mrb[45].mxu1  ;;  %v2143_v16 = vpop.f32.mrb[41].mxu0  ;;  %4551 = vmatpush1.bf16.msra.mxu0 %v4550_v49  ;;  %4567 = vmatpush1.bf16.msra.mxu1 %v4566_v7  ;;  %v2499_v19 = vmul.f32 %v2395_v10, %v2068_v46  ;;  %v2501_v27 = vmul.f32 %v2397_v11, %v2141_v12  ;;  %v2460_v9 = vld [vmem:[%s6852_s12 + $0x228] sm:$0xff]  ;;  %v2462_v10 = vld [vmem:[%s6852_s12 + $0x238] sm:$0xff]  ;;  %v2461_v12 = vld [vmem:[%s6852_s12 + $0x230] sm:$0xff] }
 0x6df   : > { %v2072_v20 = vpop.f32.mrb[46].mxu1  ;;  %v2145_v0 = vpop.f32.mrb[42].mxu0  ;;  %v2500_v28 = vmul.f32 %v2396_v40, %v2070_v15  ;;  %v2502_v31 = vmul.f32 %v2398_v56, %v2143_v16  ;;  %v2450_v46 = vld [vmem:[%s6852_s12 + $0x1d8] sm:$0xff]  ;;  %v2463_v56 = vld [vmem:[%s6852_s12 + $0x240] sm:$0xff] }
 0x6e0   : > { %v2512_v29 = vmul.f32 %v2408_v13, %v2072_v20  ;;  %v2514_v48 = vmul.f32 %v2410_v14, %v2145_v0  ;;  %v2074_v30 = vpop.f32.mrb[47].mxu1  ;;  %v2147_v22 = vpop.f32.mrb[43].mxu0 }
 0x6e1   : > { %v2513_v23 = vmul.f32 %v2409_v51, %v2074_v30  ;;  %v2515_v25 = vmul.f32 %v2411_v18, %v2147_v22  ;;  %4077 = vmatmul.mubr.msk.f32.vlgmr.msra.gmra.mrb[72].mxu0 %vm2599_vm11, %v5098_v32  ;;  %4078 = vmatmul.mubr.msk.f32.vlgmr.msra.gmra.mrb[84].mxu1 %vm2599_vm11, %v5098_v32 }
 0x6e2   : > { %v4570_v33 = vpack.c.bf16 %v2512_v29, %v2499_v19  ;;  %v4586_v34 = vpack.c.bf16 %v2514_v48, %v2501_v27  ;;  %2809 = vmatprep.mubr.f32.mxu0 %v5097_v26  ;;  %2880 = vmatprep.mubr.f32.mxu1 %v5097_v26 }
 0x6e3   : > { %v4568_v54 = vpack.c.bf16 %v2513_v23, %v2500_v28  ;;  %v4584_v35 = vpack.c.bf16 %v2515_v25, %v2502_v31  ;;  %v2473_v23 = vld [vmem:[%s6852_s12 + $0x290] sm:$0xff]  ;;  %v2475_v25 = vld [vmem:[%s6852_s12 + $0x2a0] sm:$0xff] }
 0x6e5   : > { %v2078_v38 = vpop.f32.mrb[48].mxu1  ;;  %v2151_v39 = vpop.f32.mrb[44].mxu0  ;;  %4569 = vmatprep.subr.bf16.mxu0 %v4568_v54  ;;  %4585 = vmatprep.subr.bf16.mxu1 %v4584_v35  ;;  %v2474_v54 = vld [vmem:[%s6852_s12 + $0x298] sm:$0xff] }
 0x6e6   : > { %v2080_v21 = vpop.f32.mrb[49].mxu1  ;;  %v2153_v24 = vpop.f32.mrb[45].mxu0  ;;  %4571 = vmatpush1.bf16.msra.mxu0 %v4570_v33  ;;  %4587 = vmatpush1.bf16.msra.mxu1 %v4586_v34  ;;  %v2525_v52 = vmul.f32 %v2421_v36, %v2078_v38  ;;  %v2527_v55 = vmul.f32 %v2423_v37, %v2151_v39  ;;  %v2486_v35 = vld [vmem:[%s6852_s12 + $0x2f8] sm:$0xff]  ;;  %v2488_v36 = vld [vmem:[%s6852_s12 + $0x308] sm:$0xff] }
 0x6e7   : > { %v2082_v58 = vpop.f32.mrb[50].mxu1  ;;  %v2155_v47 = vpop.f32.mrb[46].mxu0  ;;  %v2526_v53 = vmul.f32 %v2422_v50, %v2080_v21  ;;  %v2528_v1 = vmul.f32 %v2424_v42, %v2153_v24  ;;  %v2476_v39 = vld [vmem:[%s6852_s12 + $0x2a8] sm:$0xff]  ;;  %v2487_v50 = vld [vmem:[%s6852_s12 + $0x300] sm:$0xff] }
 0x6e8   : > { %v2538_v57 = vmul.f32 %v2434_v41, %v2082_v58  ;;  %v2540_v44 = vmul.f32 %v2436_v17, %v2155_v47  ;;  %v2084_v61 = vpop.f32.mrb[51].mxu1  ;;  %v2157_v62 = vpop.f32.mrb[47].mxu0  ;;  %v2489_v41 = vld [vmem:[%s6852_s12 + $0x310] sm:$0xff] }
 0x6e9   : > { %v2539_v2 = vmul.f32 %v2435_v43, %v2084_v61  ;;  %v2541_v3 = vmul.f32 %v2437_v45, %v2157_v62 }
 0x6ea   : > { %v4574_v4 = vpack.c.bf16 %v2538_v57, %v2525_v52  ;;  %v4590_v59 = vpack.c.bf16 %v2540_v44, %v2527_v55 }
 0x6eb   : > { %v4572_v60 = vpack.c.bf16 %v2539_v2, %v2526_v53  ;;  %v4588_v5 = vpack.c.bf16 %v2541_v3, %v2528_v1  ;;  %v2399_v2 = vld [vmem:[%s6852_s12 + $0x40] sm:$0xff]  ;;  %v2401_v3 = vld [vmem:[%s6852_s12 + $0x50] sm:$0xff] }
 0x6ed   : > { %v2088_v49 = vpop.f32.mrb[52].mxu1  ;;  %v2161_v7 = vpop.f32.mrb[48].mxu0  ;;  %4573 = vmatprep.subr.bf16.mxu0 %v4572_v60  ;;  %4589 = vmatprep.subr.bf16.mxu1 %v4588_v5  ;;  %v2400_v60 = vld [vmem:[%s6852_s12 + $0x48] sm:$0xff] }
 0x6ee   : > { %v2090_v11 = vpop.f32.mrb[53].mxu1  ;;  %v2163_v40 = vpop.f32.mrb[49].mxu0  ;;  %4575 = vmatpush1.bf16.msra.mxu0 %v4574_v4  ;;  %4591 = vmatpush1.bf16.msra.mxu1 %v4590_v59  ;;  %v2551_v15 = vmul.f32 %v2447_v6, %v2088_v49  ;;  %v2553_v16 = vmul.f32 %v2449_v63, %v2161_v7  ;;  %v2412_v5 = vld [vmem:[%s6852_s12 + $0xa8] sm:$0xff]  ;;  %v2414_v6 = vld [vmem:[%s6852_s12 + $0xb8] sm:$0xff] }
 0x6ef   : > { %v2092_v13 = vpop.f32.mrb[54].mxu1  ;;  %v2165_v14 = vpop.f32.mrb[50].mxu0  ;;  %v2552_v0 = vmul.f32 %v2448_v8, %v2090_v11  ;;  %v2554_v27 = vmul.f32 %v2450_v46, %v2163_v40  ;;  %v2402_v7 = vld [vmem:[%s6852_s12 + $0x58] sm:$0xff]  ;;  %v2413_v8 = vld [vmem:[%s6852_s12 + $0xb0] sm:$0xff] }
 0x6f0   : > { %v2564_v51 = vmul.f32 %v2460_v9, %v2092_v13  ;;  %v2566_v18 = vmul.f32 %v2462_v10, %v2165_v14  ;;  %v2094_v19 = vpop.f32.mrb[55].mxu1  ;;  %v2167_v20 = vpop.f32.mrb[51].mxu0  ;;  %v2415_v9 = vld [vmem:[%s6852_s12 + $0xc0] sm:$0xff] }
 0x6f1   : > { %v2565_v28 = vmul.f32 %v2461_v12, %v2094_v19  ;;  %v2567_v29 = vmul.f32 %v2463_v56, %v2167_v20 }
 0x6f2   : > { %v4578_v48 = vpack.c.bf16 %v2564_v51, %v2551_v15  ;;  %v4594_v30 = vpack.c.bf16 %v2566_v18, %v2553_v16 }
 0x6f3   : > { %v4576_v22 = vpack.c.bf16 %v2565_v28, %v2552_v0  ;;  %v4592_v31 = vpack.c.bf16 %v2567_v29, %v2554_v27  ;;  %v2425_v28 = vld [vmem:[%s6852_s12 + $0x110] sm:$0xff]  ;;  %v2427_v29 = vld [vmem:[%s6852_s12 + $0x120] sm:$0xff] }
 0x6f5   : > { %v2098_v33 = vpop.f32.mrb[56].mxu1  ;;  %v2171_v34 = vpop.f32.mrb[52].mxu0  ;;  %4577 = vmatprep.subr.bf16.mxu0 %v4576_v22  ;;  %4593 = vmatprep.subr.bf16.mxu1 %v4592_v31  ;;  %v2426_v22 = vld [vmem:[%s6852_s12 + $0x118] sm:$0xff] }
 0x6f6   : > { %v2100_v37 = vpop.f32.mrb[57].mxu1  ;;  %v2173_v38 = vpop.f32.mrb[53].mxu0  ;;  %4579 = vmatpush1.bf16.msra.mxu0 %v4578_v48  ;;  %4595 = vmatpush1.bf16.msra.mxu1 %v4594_v30  ;;  %v2577_v24 = vmul.f32 %v2473_v23, %v2098_v33  ;;  %v2579_v42 = vmul.f32 %v2475_v25, %v2171_v34  ;;  %v2438_v31 = vld [vmem:[%s6852_s12 + $0x178] sm:$0xff]  ;;  %v2440_v23 = vld [vmem:[%s6852_s12 + $0x188] sm:$0xff] }
 0x6f7   : > { %v2102_v17 = vpop.f32.mrb[58].mxu1  ;;  %v2175_v21 = vpop.f32.mrb[54].mxu0  ;;  %v2578_v52 = vmul.f32 %v2474_v54, %v2100_v37  ;;  %v2580_v55 = vmul.f32 %v2476_v39, %v2173_v38  ;;  %v2428_v34 = vld [vmem:[%s6852_s12 + $0x128] sm:$0xff]  ;;  %v2439_v54 = vld [vmem:[%s6852_s12 + $0x180] sm:$0xff] }
 0x6f8   : > { %v2590_v43 = vmul.f32 %v2486_v35, %v2102_v17  ;;  %v2592_v45 = vmul.f32 %v2488_v36, %v2175_v21  ;;  %v2104_v58 = vpop.f32.mrb[59].mxu1  ;;  %v2177_v47 = vpop.f32.mrb[55].mxu0  ;;  %v2441_v35 = vld [vmem:[%s6852_s12 + $0x190] sm:$0xff] }
 0x6f9   : > { %v2591_v57 = vmul.f32 %v2487_v50, %v2104_v58  ;;  %v2593_v44 = vmul.f32 %v2489_v41, %v2177_v47 }
 0x6fa   : > { %v4582_v61 = vpack.c.bf16 %v2590_v43, %v2577_v24  ;;  %v4598_v62 = vpack.c.bf16 %v2592_v45, %v2579_v42 }
 0x6fb   : > { %v4580_v53 = vpack.c.bf16 %v2591_v57, %v2578_v52  ;;  %v4596_v1 = vpack.c.bf16 %v2593_v44, %v2580_v55  ;;  %v2451_v57 = vld [vmem:[%s6852_s12 + $0x1e0] sm:$0xff]  ;;  %v2453_v44 = vld [vmem:[%s6852_s12 + $0x1f0] sm:$0xff] }
 0x6fd   : > { %v2214_v4 = vpop.f32.mrb[60].mxu1  ;;  %v2287_v59 = vpop.f32.mrb[56].mxu0  ;;  %4581 = vmatprep.subr.bf16.mxu0 %v4580_v53  ;;  %4597 = vmatprep.subr.bf16.mxu1 %v4596_v1  ;;  %v2452_v53 = vld [vmem:[%s6852_s12 + $0x1e8] sm:$0xff] }
 0x6fe   : > { %v2216_v63 = vpop.f32.mrb[61].mxu1  ;;  %v2289_v49 = vpop.f32.mrb[57].mxu0  ;;  %4583 = vmatpush1.bf16.msra.mxu0 %v4582_v61  ;;  %4599 = vmatpush1.bf16.msra.mxu1 %v4598_v62  ;;  %v2503_v10 = vmul.f32 %v2399_v2, %v2214_v4  ;;  %v2505_v46 = vmul.f32 %v2401_v3, %v2287_v59  ;;  %v2464_v1 = vld [vmem:[%s6852_s12 + $0x248] sm:$0xff]  ;;  %v2466_v2 = vld [vmem:[%s6852_s12 + $0x258] sm:$0xff] }
 0x6ff   : > { %v2218_v11 = vpop.f32.mrb[62].mxu1  ;;  %v2291_v40 = vpop.f32.mrb[58].mxu0  ;;  %v2504_v12 = vmul.f32 %v2400_v60, %v2216_v63  ;;  %v2506_v16 = vmul.f32 %v2402_v7, %v2289_v49  ;;  %v2454_v59 = vld [vmem:[%s6852_s12 + $0x1f8] sm:$0xff]  ;;  %v2465_v60 = vld [vmem:[%s6852_s12 + $0x250] sm:$0xff] }
 0x700   : > { %v2516_v56 = vmul.f32 %v2412_v5, %v2218_v11  ;;  %v2518_v13 = vmul.f32 %v2414_v6, %v2291_v40  ;;  %v2220_v14 = vpop.f32.mrb[63].mxu1  ;;  %v2293_v15 = vpop.f32.mrb[59].mxu0  ;;  %v2467_v5 = vld [vmem:[%s6852_s12 + $0x260] sm:$0xff] }
 0x701   : > { %v2517_v51 = vmul.f32 %v2413_v8, %v2220_v14  ;;  %v2519_v18 = vmul.f32 %v2415_v9, %v2293_v15  ;;  %4079 = vmatmul.mubr.msk.f32.vlgmr.msra.gmra.mrb[74].mxu0 %vm2599_vm11, %v5098_v32  ;;  %4080 = vmatmul.mubr.msk.f32.vlgmr.msra.gmra.mrb[86].mxu1 %vm2599_vm11, %v5098_v32 }
 0x702   : > { %v4602_v19 = vpack.c.bf16 %v2516_v56, %v2503_v10  ;;  %v4618_v20 = vpack.c.bf16 %v2518_v13, %v2505_v46  ;;  %2951 = vmatprep.mubr.f32.mxu0 %v5097_v26  ;;  %3022 = vmatprep.mubr.f32.mxu1 %v5097_v26 }
 0x703   : > { %v4600_v0 = vpack.c.bf16 %v2517_v51, %v2504_v12  ;;  %v4616_v27 = vpack.c.bf16 %v2519_v18, %v2506_v16  ;;  %v2477_v51 = vld [vmem:[%s6852_s12 + $0x2b0] sm:$0xff]  ;;  %v2479_v18 = vld [vmem:[%s6852_s12 + $0x2c0] sm:$0xff] }
 0x705   : > { %v2224_v48 = vpop.f32.mrb[64].mxu1  ;;  %v2297_v30 = vpop.f32.mrb[60].mxu0  ;;  %4601 = vmatprep.subr.bf16.mxu0 %v4600_v0  ;;  %4617 = vmatprep.subr.bf16.mxu1 %v4616_v27  ;;  %v2478_v0 = vld [vmem:[%s6852_s12 + $0x2b8] sm:$0xff] }
 0x706   : > { %v2226_v25 = vpop.f32.mrb[65].mxu1  ;;  %v2299_v33 = vpop.f32.mrb[61].mxu0  ;;  %4603 = vmatpush1.bf16.msra.mxu0 %v4602_v19  ;;  %4619 = vmatpush1.bf16.msra.mxu1 %v4618_v20  ;;  %v2529_v38 = vmul.f32 %v2425_v28, %v2224_v48  ;;  %v2531_v39 = vmul.f32 %v2427_v29, %v2297_v30  ;;  %v2490_v27 = vld [vmem:[%s6852_s12 + $0x318] sm:$0xff]  ;;  %v2492_v28 = vld [vmem:[%s6852_s12 + $0x328] sm:$0xff] }
 0x707   : > { %v2228_v36 = vpop.f32.mrb[66].mxu1  ;;  %v2301_v37 = vpop.f32.mrb[62].mxu0  ;;  %v2530_v24 = vmul.f32 %v2426_v22, %v2226_v25  ;;  %v2532_v42 = vmul.f32 %v2428_v34, %v2299_v33  ;;  %v2480_v30 = vld [vmem:[%s6852_s12 + $0x2c8] sm:$0xff]  ;;  %v2491_v22 = vld [vmem:[%s6852_s12 + $0x320] sm:$0xff] }
 0x708   : > { %v2542_v50 = vmul.f32 %v2438_v31, %v2228_v36  ;;  %v2544_v41 = vmul.f32 %v2440_v23, %v2301_v37  ;;  %v2230_v17 = vpop.f32.mrb[67].mxu1  ;;  %v2303_v21 = vpop.f32.mrb[63].mxu0  ;;  %v2493_v31 = vld [vmem:[%s6852_s12 + $0x330] sm:$0xff] }
 0x709   : > { %v2543_v43 = vmul.f32 %v2439_v54, %v2230_v17  ;;  %v2545_v45 = vmul.f32 %v2441_v35, %v2303_v21 }
 0x70a   : > { %v4606_v58 = vpack.c.bf16 %v2542_v50, %v2529_v38  ;;  %v4622_v47 = vpack.c.bf16 %v2544_v41, %v2531_v39  ;;  %v3115_v38 = vld [vmem:[%s6854_s14 + $0x80] sm:$0xff]  ;;  %v3116_v39 = vld [vmem:[%s6854_s14 + $0x88] sm:$0xff] }
 0x70b   : > { %v4604_v52 = vpack.c.bf16 %v2543_v43, %v2530_v24  ;;  %v4620_v55 = vpack.c.bf16 %v2545_v45, %v2532_v42 }
 0x70d   : > { %v2234_v61 = vpop.f32.mrb[68].mxu1  ;;  %v2307_v62 = vpop.f32.mrb[64].mxu0  ;;  %4605 = vmatprep.subr.bf16.mxu0 %v4604_v52  ;;  %4621 = vmatprep.subr.bf16.mxu1 %v4620_v55  ;;  %v3100_v52 = vld [vmem:[%s6854_s14 + $0x8] sm:$0xff]  ;;  %v3117_v55 = vld [vmem:[%s6854_s14 + $0x90] sm:$0xff] }
 0x70e   : > { %v2236_v3 = vpop.f32.mrb[69].mxu1  ;;  %v2309_v4 = vpop.f32.mrb[65].mxu0  ;;  %4607 = vmatpush1.bf16.msra.mxu0 %v4606_v58  ;;  %4623 = vmatpush1.bf16.msra.mxu1 %v4622_v47  ;;  %v2555_v49 = vmul.f32 %v2451_v57, %v2234_v61  ;;  %v2557_v7 = vmul.f32 %v2453_v44, %v2307_v62  ;;  %v4644_v58 = vpack.c.bf16 %v3116_v39, %v3115_v38  ;;  %v3099_v47 = vld [vmem:[%s6854_s14] sm:$0xff]  ;;  %v3118_v57 = vld [vmem:[%s6854_s14 + $0x98] sm:$0xff]  ;;  %v2429_v61 = vld [vmem:[%s6852_s12 + $0x130] sm:$0xff] }
 0x70f   : > { %v2238_v6 = vpop.f32.mrb[70].mxu1  ;;  %v2311_v63 = vpop.f32.mrb[66].mxu0  ;;  %v2556_v40 = vmul.f32 %v2452_v53, %v2236_v3  ;;  %v2558_v46 = vmul.f32 %v2454_v59, %v2309_v4  ;;  %v2442_v62 = vld [vmem:[%s6852_s12 + $0x198] sm:$0xff]  ;;  %v4646_v3 = vpack.c.bf16 %v3100_v52, %v3099_v47  ;;  %v5099_v59 = vmov 0.0|0.0   ;;  %v3149_v47 = vld [vmem:[%s6854_s14 + $0x190] sm:$0xff] }
 0x710   : > { %v2568_v8 = vmul.f32 %v2464_v1, %v2238_v6  ;;  %v2570_v9 = vmul.f32 %v2466_v2, %v2311_v63  ;;  %v2240_v10 = vpop.f32.mrb[71].mxu1  ;;  %v2313_v11 = vpop.f32.mrb[67].mxu0  ;;  %v2403_v1 = vld [vmem:[%s6852_s12 + $0x60] sm:$0xff]  ;;  %v2416_v2 = vld [vmem:[%s6852_s12 + $0xc8] sm:$0xff]  ;;  %v3102_v6 = vld [vmem:[%s6854_s14 + $0x18] sm:$0xff] }
 0x711   : > { %v2569_v12 = vmul.f32 %v2465_v60, %v2240_v10  ;;  %v2571_v56 = vmul.f32 %v2467_v5, %v2313_v11  ;;  %v4648_v60 = vpack.c.bf16 %v3118_v57, %v3117_v55  ;;  %v3101_v5 = vld [vmem:[%s6854_s14 + $0x10] sm:$0xff]  ;;  %v3150_v55 = vld [vmem:[%s6854_s14 + $0x198] sm:$0xff] }
 0x712   : > { %v4610_v13 = vpack.c.bf16 %v2568_v8, %v2555_v49  ;;  %v4626_v14 = vpack.c.bf16 %v2570_v9, %v2557_v7  ;;  %v3119_v8 = vld [vmem:[%s6854_s14 + $0xa0] sm:$0xff]  ;;  %v3120_v9 = vld [vmem:[%s6854_s14 + $0xa8] sm:$0xff] }
 0x713   : > { %v4608_v15 = vpack.c.bf16 %v2569_v12, %v2556_v40  ;;  %v4624_v16 = vpack.c.bf16 %v2571_v56, %v2558_v46  ;;  %v4650_v46 = vpack.c.bf16 %v3102_v6, %v3101_v5  ;;  %v4652_v56 = vpack.c.bf16 %v3120_v9, %v3119_v8  ;;  %v3152_v6 = vld [vmem:[%s6854_s14 + $0x1a8] sm:$0xff]  ;;  %v3129_v8 = vld [vmem:[%s6854_s14 + $0xf0] sm:$0xff]  ;;  %v3130_v9 = vld [vmem:[%s6854_s14 + $0xf8] sm:$0xff] }
 0x715   : > { %v2244_v19 = vpop.f32.mrb[72].mxu1  ;;  %v2317_v20 = vpop.f32.mrb[68].mxu0  ;;  %4609 = vmatprep.subr.bf16.mxu0 %v4608_v15  ;;  %4625 = vmatprep.subr.bf16.mxu1 %v4624_v16  ;;  %v3121_v15 = vld [vmem:[%s6854_s14 + $0xb0] sm:$0xff]  ;;  %v3122_v16 = vld [vmem:[%s6854_s14 + $0xb8] sm:$0xff] }
 0x716   : > { %v2246_v29 = vpop.f32.mrb[73].mxu1  ;;  %v2319_v48 = vpop.f32.mrb[69].mxu0  ;;  %4611 = vmatpush1.bf16.msra.mxu0 %v4610_v13  ;;  %4627 = vmatpush1.bf16.msra.mxu1 %v4626_v14  ;;  %v2581_v33 = vmul.f32 %v2477_v51, %v2244_v19  ;;  %v2583_v34 = vmul.f32 %v2479_v18, %v2317_v20  ;;  %v3103_v13 = vld [vmem:[%s6854_s14 + $0x20] sm:$0xff]  ;;  %v3104_v14 = vld [vmem:[%s6854_s14 + $0x28] sm:$0xff]  ;;  %v2481_v18 = vld [vmem:[%s6852_s12 + $0x2d0] sm:$0xff] }
 0x717   : > { %v2248_v23 = vpop.f32.mrb[74].mxu1  ;;  %v2321_v25 = vpop.f32.mrb[70].mxu0  ;;  %v2582_v50 = vmul.f32 %v2478_v0, %v2246_v29  ;;  %v2584_v41 = vmul.f32 %v2480_v30, %v2319_v48  ;;  %v2494_v19 = vld [vmem:[%s6852_s12 + $0x338] sm:$0xff]  ;;  %v2455_v0 = vld [vmem:[%s6852_s12 + $0x200] sm:$0xff]  ;;  %v4656_v48 = vpack.c.bf16 %v3122_v16, %v3121_v15  ;;  %v3105_v30 = vld [vmem:[%s6854_s14 + $0x30] sm:$0xff] }
 0x718   : > { %v2594_v54 = vmul.f32 %v2490_v27, %v2248_v23  ;;  %v2596_v35 = vmul.f32 %v2492_v28, %v2321_v25  ;;  %v2250_v36 = vpop.f32.mrb[75].mxu1  ;;  %v2323_v37 = vpop.f32.mrb[71].mxu0  ;;  %v2468_v27 = vld [vmem:[%s6852_s12 + $0x268] sm:$0xff]  ;;  %v4654_v28 = vpack.c.bf16 %v3104_v14, %v3103_v13  ;;  %v4672_v13 = vpack.c.bf16 %v3130_v9, %v3129_v8  ;;  %v3113_v14 = vld [vmem:[%s6854_s14 + $0x70] sm:$0xff]  ;;  %v3114_v15 = vld [vmem:[%s6854_s14 + $0x78] sm:$0xff] }
 0x719   : > { %v2595_v17 = vmul.f32 %v2491_v22, %v2250_v36  ;;  %v2597_v21 = vmul.f32 %v2493_v31, %v2323_v37  ;;  %v3106_v22 = vld [vmem:[%s6854_s14 + $0x38] sm:$0xff]  ;;  %v3147_v37 = vld [vmem:[%s6854_s14 + $0x180] sm:$0xff] }
 0x71a   : > { %v4614_v24 = vpack.c.bf16 %v2594_v54, %v2581_v33  ;;  %v4630_v42 = vpack.c.bf16 %v2596_v35, %v2583_v34  ;;  %v3123_v33 = vld [vmem:[%s6854_s14 + $0xc0] sm:$0xff]  ;;  %v3124_v34 = vld [vmem:[%s6854_s14 + $0xc8] sm:$0xff]  ;;  %v4658_v38 = vpack.c.bf16 %v3106_v22, %v3105_v30 }
 0x71b   : > { %v4612_v43 = vpack.c.bf16 %v2595_v17, %v2582_v50  ;;  %v4628_v45 = vpack.c.bf16 %v2597_v21, %v2584_v41  ;;  %v3148_v50 = vld [vmem:[%s6854_s14 + $0x188] sm:$0xff]  ;;  %v4660_v41 = vpack.c.bf16 %v3124_v34, %v3123_v33  ;;  %v3107_v17 = vld [vmem:[%s6854_s14 + $0x40] sm:$0xff]  ;;  %v3158_v33 = vld [vmem:[%s6854_s14 + $0x1d8] sm:$0xff] }
 0x71c   : > { %v3108_v21 = vld [vmem:[%s6854_s14 + $0x48] sm:$0xff]  ;;  %v3179_v16 = vld [vmem:[%s6854_s14 + $0x280] sm:$0xff] }
 0x71d   : > { %v4463_v44 = vpop.f32.mrb[76].mxu1  ;;  %4613 = vmatprep.subr.bf16.mxu0 %v4612_v43  ;;  %4629 = vmatprep.subr.bf16.mxu1 %v4628_v45  ;;  %v4676_v43 = vpack.c.bf16 %v3148_v50, %v3147_v37  ;;  %v3131_v45 = vld [vmem:[%s6854_s14 + $0x100] sm:$0xff]  ;;  %v4662_v52 = vpack.c.bf16 %v3108_v21, %v3107_v17  ;;  %v3144_v17 = vld [vmem:[%s6854_s14 + $0x168] sm:$0xff]  ;;  %v3161_v21 = vld [vmem:[%s6854_s14 + $0x1f0] sm:$0xff] }
 0x71e   : > { %v2360_v53 = vpop.f32.mrb[77].mxu1  ;;  %4615 = vmatpush1.bf16.msra.mxu0 %v4614_v24  ;;  %4631 = vmatpush1.bf16.msra.mxu1 %v4630_v42  ;;  %v2533_v63 = vmul.f32 %v4463_v44, %v2429_v61  ;;  %v3125_v24 = vld [vmem:[%s6854_s14 + $0xd0] sm:$0xff]  ;;  %v3126_v42 = vld [vmem:[%s6854_s14 + $0xd8] sm:$0xff]  ;;  %v3159_v37 = vld [vmem:[%s6854_s14 + $0x1e0] sm:$0xff] }
 0x71f   : > { %v4464_v4 = vpop.f32.mrb[78].mxu1  ;;  %4632 = vmatprep.subr.bf16.mxu0 %v5099_v59  ;;  %4645 = vmatprep.subr.bf16.mxu1 %v4644_v58  ;;  %v2507_v10 = vmul.f32 %v2403_v1, %v2360_v53  ;;  %v3132_v58 = vld [vmem:[%s6854_s14 + $0x108] sm:$0xff]  ;;  %v4664_v57 = vpack.c.bf16 %v3126_v42, %v3125_v24  ;;  %v3109_v44 = vld [vmem:[%s6854_s14 + $0x50] sm:$0xff]  ;;  %v3110_v61 = vld [vmem:[%s6854_s14 + $0x58] sm:$0xff] }
 0x720   : > { %v2546_v49 = vmul.f32 %v4464_v4, %v2442_v62  ;;  %v2363_v7 = vpop.f32.mrb[79].mxu1  ;;  %v3127_v62 = vld [vmem:[%s6854_s14 + $0xe0] sm:$0xff]  ;;  %v3128_v53 = vld [vmem:[%s6854_s14 + $0xe8] sm:$0xff]  ;;  %v4678_v1 = vpack.c.bf16 %v3132_v58, %v3131_v45  ;;  %v3134_v4 = vld [vmem:[%s6854_s14 + $0x118] sm:$0xff]  ;;  %v4666_v5 = vpack.c.bf16 %v3110_v61, %v3109_v44 }
 0x721   : > { %v2520_v11 = vmul.f32 %v2416_v2, %v2363_v7  ;;  %4081 = vmatmul.mubr.msk.f32.vlgmr.msra.gmra.mrb[76].mxu0 %vm2599_vm11, %v5098_v32  ;;  %4082 = vmatmul.mubr.msk.f32.vlgmr.msra.gmra.mrb[88].mxu1 %vm2599_vm11, %v5098_v32  ;;  %v4680_v2 = vpack.c.bf16 %v3150_v55, %v3149_v47  ;;  %v3112_v7 = vld [vmem:[%s6854_s14 + $0x68] sm:$0xff]  ;;  %v3162_v24 = vld [vmem:[%s6854_s14 + $0x1f8] sm:$0xff]  ;;  %v3145_v45 = vld [vmem:[%s6854_s14 + $0x170] sm:$0xff] }
 0x722   : > { %v4636_v40 = vpack.c.bf16 %v2546_v49, %v2533_v63  ;;  %4485 = vmatprep.mubr.msk.f32.mxu0 %vm5100_vm12, %v5097_v26  ;;  %4647 = vmatpush3.bf16.msra.mxu1 %v4646_v3  ;;  %v3133_v3 = vld [vmem:[%s6854_s14 + $0x110] sm:$0xff]  ;;  %v4668_v63 = vpack.c.bf16 %v3128_v53, %v3127_v62  ;;  %v3111_v49 = vld [vmem:[%s6854_s14 + $0x60] sm:$0xff]  ;;  %v3146_v58 = vld [vmem:[%s6854_s14 + $0x178] sm:$0xff] }
 0x723   : > { %v4633_v12 = vpack.c.bf16 %v2520_v11, %v2507_v10  ;;  %4649 = vmatprep.subr.bf16.mxu1 %v4648_v60  ;;  %v3151_v60 = vld [vmem:[%s6854_s14 + $0x1a0] sm:$0xff]  ;;  %v4682_v10 = vpack.c.bf16 %v3134_v4, %v3133_v3  ;;  %v4706_v55 = vpack.c.bf16 %v3146_v58, %v3145_v45  ;;  %v3164_v61 = vld [vmem:[%s6854_s14 + $0x208] sm:$0xff]  ;;  %v3213_v3 = vld [vmem:[%s6854_s14 + $0x390] sm:$0xff] }
 0x724   : > { %v4684_v11 = vpack.c.bf16 %v3152_v6, %v3151_v60  ;;  %v3211_v47 = vld [vmem:[%s6854_s14 + $0x380] sm:$0xff]  ;;  %v3196_v53 = vld [vmem:[%s6854_s14 + $0x308] sm:$0xff]  ;;  %v3214_v4 = vld [vmem:[%s6854_s14 + $0x398] sm:$0xff] }
 0x725   : > { %v4467_v51 = vpop.f32.mrb[80].mxu1  ;;  %4634 = vmatpush3.bf16.msra.mxu0 %v4633_v12  ;;  %v4670_v12 = vpack.c.bf16 %v3112_v7, %v3111_v49  ;;  %v3163_v44 = vld [vmem:[%s6854_s14 + $0x200] sm:$0xff]  ;;  %v3165_v49 = vld [vmem:[%s6854_s14 + $0x210] sm:$0xff]  ;;  %v3166_v7 = vld [vmem:[%s6854_s14 + $0x218] sm:$0xff] }
 0x726   : > { %v2376_v20 = vpop.f32.mrb[81].mxu1  ;;  %4635 = vmatprep.subr.bf16.mxu0 %v5099_v59  ;;  %4651 = vmatpush3.bf16.msra.mxu1 %v4650_v46  ;;  %v2585_v31 = vmul.f32 %v4467_v51, %v2481_v18  ;;  %v3153_v46 = vld [vmem:[%s6854_s14 + $0x1b0] sm:$0xff]  ;;  %v3180_v51 = vld [vmem:[%s6854_s14 + $0x288] sm:$0xff]  ;;  %v3195_v62 = vld [vmem:[%s6854_s14 + $0x300] sm:$0xff]  ;;  %v4710_v6 = vpack.c.bf16 %v3164_v61, %v3163_v44 }
 0x727   : > { %v4468_v29 = vpop.f32.mrb[82].mxu1  ;;  %4653 = vmatprep.subr.bf16.mxu1 %v4652_v56  ;;  %v2559_v54 = vmul.f32 %v2455_v0, %v2376_v20  ;;  %v3154_v56 = vld [vmem:[%s6854_s14 + $0x1b8] sm:$0xff]  ;;  %v3137_v20 = vld [vmem:[%s6854_s14 + $0x130] sm:$0xff] }
 0x728   : > { %v2598_v23 = vmul.f32 %v4468_v29, %v2494_v19  ;;  %v2379_v25 = vpop.f32.mrb[83].mxu1  ;;  %v4688_v19 = vpack.c.bf16 %v3154_v56, %v3153_v46  ;;  %v3138_v0 = vld [vmem:[%s6854_s14 + $0x138] sm:$0xff]  ;;  %v3156_v29 = vld [vmem:[%s6854_s14 + $0x1c8] sm:$0xff]  ;;  %v3183_v46 = vld [vmem:[%s6854_s14 + $0x2a0] sm:$0xff] }
 0x729   : > { %v2572_v35 = vmul.f32 %v2468_v27, %v2379_v25  ;;  %4637 = vmatpush3.bf16.msra.mxu0 %v4636_v40  ;;  %v3135_v40 = vld [vmem:[%s6854_s14 + $0x120] sm:$0xff]  ;;  %v4674_v27 = vpack.c.bf16 %v3114_v15, %v3113_v14  ;;  %v4690_v30 = vpack.c.bf16 %v3138_v0, %v3137_v20  ;;  %v3157_v25 = vld [vmem:[%s6854_s14 + $0x1d0] sm:$0xff]  ;;  %v4714_v14 = vpack.c.bf16 %v3166_v7, %v3165_v49  ;;  %v3200_v0 = vld [vmem:[%s6854_s14 + $0x328] sm:$0xff] }
 0x72a   : > { %v4642_v36 = vpack.c.bf16 %v2598_v23, %v2585_v31  ;;  %4638 = vmatprep.subr.bf16.mxu0 %v5099_v59  ;;  %4655 = vmatpush3.bf16.msra.mxu1 %v4654_v28  ;;  %v3155_v28 = vld [vmem:[%s6854_s14 + $0x1c0] sm:$0xff]  ;;  %v3140_v23 = vld [vmem:[%s6854_s14 + $0x148] sm:$0xff]  ;;  %v3189_v45 = vld [vmem:[%s6854_s14 + $0x2d0] sm:$0xff] }
 0x72b   : > { %v4639_v39 = vpack.c.bf16 %v2572_v35, %v2559_v54  ;;  %4657 = vmatprep.subr.bf16.mxu1 %v4656_v48  ;;  %v4708_v48 = vpack.c.bf16 %v3180_v51, %v3179_v16  ;;  %v4692_v22 = vpack.c.bf16 %v3156_v29, %v3155_v28  ;;  %v3139_v31 = vld [vmem:[%s6854_s14 + $0x140] sm:$0xff]  ;;  %v4696_v54 = vpack.c.bf16 %v3158_v33, %v3157_v25  ;;  %v3141_v35 = vld [vmem:[%s6854_s14 + $0x150] sm:$0xff]  ;;  %v3168_v51 = vld [vmem:[%s6854_s14 + $0x228] sm:$0xff] }
 0x72c   : > { %v4694_v34 = vpack.c.bf16 %v3140_v23, %v3139_v31  ;;  %v3215_v56 = vld [vmem:[%s6854_s14 + $0x3a0] sm:$0xff]  ;;  %v3186_v28 = vld [vmem:[%s6854_s14 + $0x2b8] sm:$0xff]  ;;  %v3217_v29 = vld [vmem:[%s6854_s14 + $0x3b0] sm:$0xff] }
 0x72d   : > { %4640 = vmatpush3.bf16.msra.mxu0 %v4639_v39  ;;  %v3167_v16 = vld [vmem:[%s6854_s14 + $0x220] sm:$0xff]  ;;  %v3169_v31 = vld [vmem:[%s6854_s14 + $0x230] sm:$0xff]  ;;  %v3170_v23 = vld [vmem:[%s6854_s14 + $0x238] sm:$0xff] }
 0x72e   : > { %4641 = vmatprep.subr.bf16.mxu0 %v5099_v59  ;;  %4659 = vmatpush3.bf16.msra.mxu1 %v4658_v38  ;;  %v3160_v38 = vld [vmem:[%s6854_s14 + $0x1e8] sm:$0xff]  ;;  %v3199_v20 = vld [vmem:[%s6854_s14 + $0x320] sm:$0xff]  ;;  %v3190_v58 = vld [vmem:[%s6854_s14 + $0x2d8] sm:$0xff] }
 0x72f   : > { %4661 = vmatprep.subr.bf16.mxu1 %v4660_v41  ;;  %v4700_v50 = vpack.c.bf16 %v3160_v38, %v3159_v37  ;;  %v3143_v41 = vld [vmem:[%s6854_s14 + $0x160] sm:$0xff]  ;;  %v3220_v38 = vld [vmem:[%s6854_s14 + $0x3c8] sm:$0xff]  ;;  %v3173_v44 = vld [vmem:[%s6854_s14 + $0x250] sm:$0xff] }
 0x730   : > { %v4702_v42 = vpack.c.bf16 %v3144_v17, %v3143_v41  ;;  %v3219_v37 = vld [vmem:[%s6854_s14 + $0x3c0] sm:$0xff]  ;;  %v3172_v17 = vld [vmem:[%s6854_s14 + $0x248] sm:$0xff]  ;;  %v3174_v61 = vld [vmem:[%s6854_s14 + $0x258] sm:$0xff] }
 0x731   : > { %4643 = vmatpush3.bf16.msra.mxu0 %v4642_v36  ;;  %v3142_v36 = vld [vmem:[%s6854_s14 + $0x158] sm:$0xff]  ;;  %v3171_v41 = vld [vmem:[%s6854_s14 + $0x240] sm:$0xff]  ;;  %v3176_v7 = vld [vmem:[%s6854_s14 + $0x268] sm:$0xff] }
 0x732   : > { %4677 = vmatprep.subr.bf16.mxu0 %v4676_v43  ;;  %4663 = vmatpush3.bf16.msra.mxu1 %v4662_v52  ;;  %v4698_v39 = vpack.c.bf16 %v3142_v36, %v3141_v35  ;;  %v4704_v43 = vpack.c.bf16 %v3162_v24, %v3161_v21  ;;  %v3212_v52 = vld [vmem:[%s6854_s14 + $0x388] sm:$0xff]  ;;  %v3187_v35 = vld [vmem:[%s6854_s14 + $0x2c0] sm:$0xff]  ;;  %v4756_v24 = vpack.c.bf16 %v3220_v38, %v3219_v37 }
 0x733   : > { %4665 = vmatprep.subr.bf16.mxu1 %v4664_v57  ;;  %v4740_v57 = vpack.c.bf16 %v3212_v52, %v3211_v47  ;;  %v3188_v36 = vld [vmem:[%s6854_s14 + $0x2c8] sm:$0xff]  ;;  %v3221_v47 = vld [vmem:[%s6854_s14 + $0x3d0] sm:$0xff]  ;;  %v3222_v52 = vld [vmem:[%s6854_s14 + $0x3d8] sm:$0xff] }
 0x734   : > { %4486 = vmatmul.mubr.msk.f32.vlgmr.msra.gmra.mrb[78].mxu0 %vm2599_vm11, %v5098_v32  ;;  %v3136_v32 = vld [vmem:[%s6854_s14 + $0x128] sm:$0xff]  ;;  %v4724_v21 = vpack.c.bf16 %v3188_v36, %v3187_v35  ;;  %v3175_v49 = vld [vmem:[%s6854_s14 + $0x260] sm:$0xff]  ;;  %v3277_v35 = vld [vmem:[%s6854_s14 + $0x590] sm:$0xff] }
 0x735   : > { %4679 = vmatpush3.bf16.msra.mxu0 %v4678_v1  ;;  %v4686_v18 = vpack.c.bf16 %v3136_v32, %v3135_v40  ;;  %v3181_v1 = vld [vmem:[%s6854_s14 + $0x290] sm:$0xff]  ;;  %v3198_v32 = vld [vmem:[%s6854_s14 + $0x318] sm:$0xff] }
 0x736   : > { %4681 = vmatprep.subr.bf16.mxu0 %v4680_v2  ;;  %4667 = vmatpush3.bf16.msra.mxu1 %v4666_v5  ;;  %v3182_v2 = vld [vmem:[%s6854_s14 + $0x298] sm:$0xff]  ;;  %v3197_v40 = vld [vmem:[%s6854_s14 + $0x310] sm:$0xff] }
 0x737   : > { %4669 = vmatprep.subr.bf16.mxu1 %v4668_v63  ;;  %v4742_v63 = vpack.c.bf16 %v3196_v53, %v3195_v62  ;;  %v4746_v15 = vpack.c.bf16 %v3198_v32, %v3197_v40  ;;  %v4728_v62 = vpack.c.bf16 %v3190_v58, %v3189_v45  ;;  %v4760_v53 = vpack.c.bf16 %v3222_v52, %v3221_v47  ;;  %v3193_v40 = vld [vmem:[%s6854_s14 + $0x2f0] sm:$0xff]  ;;  %v3194_v32 = vld [vmem:[%s6854_s14 + $0x2f8] sm:$0xff]  ;;  %v3247_v47 = vld [vmem:[%s6854_s14 + $0x4a0] sm:$0xff] }
 0x738   : > { %v3278_v36 = vld [vmem:[%s6854_s14 + $0x598] sm:$0xff]  ;;  %v3261_v45 = vld [vmem:[%s6854_s14 + $0x510] sm:$0xff]  ;;  %v3248_v52 = vld [vmem:[%s6854_s14 + $0x4a8] sm:$0xff] }
 0x739   : > { %4683 = vmatpush3.bf16.msra.mxu0 %v4682_v10  ;;  %v4712_v10 = vpack.c.bf16 %v3182_v2, %v3181_v1  ;;  %v3205_v1 = vld [vmem:[%s6854_s14 + $0x350] sm:$0xff]  ;;  %v3206_v2 = vld [vmem:[%s6854_s14 + $0x358] sm:$0xff] }
 0x73a   : > { %4685 = vmatprep.subr.bf16.mxu0 %v4684_v11  ;;  %4671 = vmatpush3.bf16.msra.mxu1 %v4670_v12  ;;  %v4744_v11 = vpack.c.bf16 %v3214_v4, %v3213_v3  ;;  %v3184_v12 = vld [vmem:[%s6854_s14 + $0x2a8] sm:$0xff]  ;;  %v3191_v3 = vld [vmem:[%s6854_s14 + $0x2e0] sm:$0xff]  ;;  %v3262_v58 = vld [vmem:[%s6854_s14 + $0x518] sm:$0xff] }
 0x73b   : > { %4673 = vmatprep.subr.bf16.mxu1 %v4672_v13  ;;  %v3216_v13 = vld [vmem:[%s6854_s14 + $0x3a8] sm:$0xff] }
 0x73c   : > { %v3192_v4 = vld [vmem:[%s6854_s14 + $0x2e8] sm:$0xff] }
 0x73d   : > { %4687 = vmatpush3.bf16.msra.mxu0 %v4686_v18  ;;  %v4716_v18 = vpack.c.bf16 %v3184_v12, %v3183_v46  ;;  %v3225_v46 = vld [vmem:[%s6854_s14 + $0x3f0] sm:$0xff]  ;;  %v3226_v12 = vld [vmem:[%s6854_s14 + $0x3f8] sm:$0xff] }
 0x73e   : > { %4689 = vmatprep.subr.bf16.mxu0 %v4688_v19  ;;  %4675 = vmatpush3.bf16.msra.mxu1 %v4674_v27  ;;  %v4748_v19 = vpack.c.bf16 %v3216_v13, %v3215_v56  ;;  %v3185_v27 = vld [vmem:[%s6854_s14 + $0x2b0] sm:$0xff]  ;;  %v4734_v56 = vpack.c.bf16 %v3176_v7, %v3175_v49 }
 0x73f   : > { %4709 = vmatprep.subr.bf16.mxu1 %v4708_v48  ;;  %v3218_v48 = vld [vmem:[%s6854_s14 + $0x3b8] sm:$0xff]  ;;  %v4720_v25 = vpack.c.bf16 %v3186_v28, %v3185_v27  ;;  %v3275_v27 = vld [vmem:[%s6854_s14 + $0x580] sm:$0xff]  ;;  %v3276_v28 = vld [vmem:[%s6854_s14 + $0x588] sm:$0xff] }
 0x740   : > { %v4752_v33 = vpack.c.bf16 %v3218_v48, %v3217_v29 }
 0x741   : > { %4691 = vmatpush3.bf16.msra.mxu0 %v4690_v30  ;;  %v4718_v30 = vpack.c.bf16 %v3168_v51, %v3167_v16  ;;  %v4736_v16 = vpack.c.bf16 %v3194_v32, %v3193_v40  ;;  %v4768_v51 = vpack.c.bf16 %v3226_v12, %v3225_v46  ;;  %v3265_v40 = vld [vmem:[%s6854_s14 + $0x530] sm:$0xff]  ;;  %v3266_v32 = vld [vmem:[%s6854_s14 + $0x538] sm:$0xff]  ;;  %v3251_v46 = vld [vmem:[%s6854_s14 + $0x4c0] sm:$0xff] }
 0x742   : > { %4693 = vmatprep.subr.bf16.mxu0 %v4692_v22  ;;  %v4750_v22 = vpack.c.bf16 %v3200_v0, %v3199_v20  ;;  %v3243_v20 = vld [vmem:[%s6854_s14 + $0x480] sm:$0xff]  ;;  %v3244_v0 = vld [vmem:[%s6854_s14 + $0x488] sm:$0xff] }
 0x743   : > { %v3252_v12 = vld [vmem:[%s6854_s14 + $0x4c8] sm:$0xff] }
 0x745   : > { %4695 = vmatpush3.bf16.msra.mxu0 %v4694_v34  ;;  %v3201_v34 = vld [vmem:[%s6854_s14 + $0x330] sm:$0xff] }
 0x746   : > { %4697 = vmatprep.subr.bf16.mxu0 %v4696_v54  ;;  %v3202_v54 = vld [vmem:[%s6854_s14 + $0x338] sm:$0xff] }
 0x749   : > { %4699 = vmatpush3.bf16.msra.mxu0 %v4698_v39  ;;  %v4722_v39 = vpack.c.bf16 %v3170_v23, %v3169_v31  ;;  %v4772_v31 = vpack.c.bf16 %v3244_v0, %v3243_v20  ;;  %v4804_v23 = vpack.c.bf16 %v3276_v28, %v3275_v27  ;;  %v3267_v20 = vld [vmem:[%s6854_s14 + $0x540] sm:$0xff]  ;;  %v3268_v0 = vld [vmem:[%s6854_s14 + $0x548] sm:$0xff]  ;;  %v3253_v27 = vld [vmem:[%s6854_s14 + $0x4d0] sm:$0xff] }
 0x74a   : > { %4701 = vmatprep.subr.bf16.mxu0 %v4700_v50  ;;  %v4754_v50 = vpack.c.bf16 %v3202_v54, %v3201_v34  ;;  %v3245_v34 = vld [vmem:[%s6854_s14 + $0x490] sm:$0xff]  ;;  %v3246_v54 = vld [vmem:[%s6854_s14 + $0x498] sm:$0xff] }
 0x74b   : > { %v3254_v28 = vld [vmem:[%s6854_s14 + $0x4d8] sm:$0xff] }
 0x74d   : > { %4703 = vmatpush3.bf16.msra.mxu0 %v4702_v42  ;;  %v3203_v42 = vld [vmem:[%s6854_s14 + $0x340] sm:$0xff] }
 0x74e   : > { %4705 = vmatprep.subr.bf16.mxu0 %v4704_v43  ;;  %v3204_v43 = vld [vmem:[%s6854_s14 + $0x348] sm:$0xff] }
 0x751   : > { %4707 = vmatpush3.bf16.msra.mxu0 %v4706_v55  ;;  %v4726_v55 = vpack.c.bf16 %v3172_v17, %v3171_v41  ;;  %v3229_v41 = vld [vmem:[%s6854_s14 + $0x410] sm:$0xff]  ;;  %v3230_v17 = vld [vmem:[%s6854_s14 + $0x418] sm:$0xff] }
 0x752   : > { %4741 = vmatprep.subr.bf16.mxu0 %v4740_v57  ;;  %v4758_v57 = vpack.c.bf16 %v3204_v43, %v3203_v42  ;;  %v4776_v42 = vpack.c.bf16 %v3246_v54, %v3245_v34  ;;  %v4808_v43 = vpack.c.bf16 %v3278_v36, %v3277_v35  ;;  %v3269_v34 = vld [vmem:[%s6854_s14 + $0x550] sm:$0xff]  ;;  %v3270_v54 = vld [vmem:[%s6854_s14 + $0x558] sm:$0xff]  ;;  %v3255_v35 = vld [vmem:[%s6854_s14 + $0x4e0] sm:$0xff] }
 0x753   : > { %v3256_v36 = vld [vmem:[%s6854_s14 + $0x4e8] sm:$0xff] }
 0x7b4   : > { %v2669_v60 = vpop.f32.mrb[72].mxu0  ;;  %v2740_v5 = vpop.f32.mrb[84].mxu1 }
 0x7b5   : > { %v2671_v8 = vpop.f32.mrb[73].mxu0  ;;  %v2742_v9 = vpop.f32.mrb[85].mxu1 }
 0x7b6   : > { %3367 = vmatprep.mubr.f32.mxu1 %v2671_v8  ;;  %3437 = vmatprep.mubr.f32.mxu0 %v2742_v9  ;;  %v4732_v8 = vpack.c.bf16 %v3192_v4, %v3191_v3  ;;  %v3263_v3 = vld [vmem:[%s6854_s14 + $0x520] sm:$0xff]  ;;  %v3264_v4 = vld [vmem:[%s6854_s14 + $0x528] sm:$0xff] }
 0x7b7   : > { %3368 = vmatmul.mubr.f32.vlgmr.msra.gmra.mrb[90].mxu1 %v2669_v60  ;;  %3438 = vmatmul.mubr.f32.vlgmr.msra.gmra.mrb[80].mxu0 %v2740_v5  ;;  %v3223_v60 = vld [vmem:[%s6854_s14 + $0x3e0] sm:$0xff]  ;;  %v3224_v5 = vld [vmem:[%s6854_s14 + $0x3e8] sm:$0xff]  ;;  %v4814_v7 = vpack.c.bf16 %v3264_v4, %v3263_v3 }
 0x7b8   : > { %4711 = vmatpush3.bf16.msra.mxu1 %v4710_v6  ;;  %4743 = vmatpush3.bf16.msra.mxu0 %v4742_v63  ;;  %v4730_v6 = vpack.c.bf16 %v3174_v61, %v3173_v44  ;;  %v4762_v63 = vpack.c.bf16 %v3206_v2, %v3205_v1  ;;  %v4764_v9 = vpack.c.bf16 %v3224_v5, %v3223_v60  ;;  %v3249_v60 = vld [vmem:[%s6854_s14 + $0x4b0] sm:$0xff]  ;;  %v3250_v5 = vld [vmem:[%s6854_s14 + $0x4b8] sm:$0xff] }
 0x7b9   : > { %4713 = vmatprep.subr.bf16.mxu1 %v4712_v10  ;;  %4745 = vmatprep.subr.bf16.mxu0 %v4744_v11  ;;  %v3207_v10 = vld [vmem:[%s6854_s14 + $0x360] sm:$0xff]  ;;  %v3208_v11 = vld [vmem:[%s6854_s14 + $0x368] sm:$0xff]  ;;  %v4778_v44 = vpack.c.bf16 %v3230_v17, %v3229_v41  ;;  %v4810_v61 = vpack.c.bf16 %v3262_v58, %v3261_v45  ;;  %v4780_v1 = vpack.c.bf16 %v3248_v52, %v3247_v47  ;;  %v3257_v45 = vld [vmem:[%s6854_s14 + $0x4f0] sm:$0xff] }
 0x7ba   : > { %v4766_v13 = vpack.c.bf16 %v3208_v11, %v3207_v10  ;;  %v4784_v10 = vpack.c.bf16 %v3250_v5, %v3249_v60  ;;  %v3239_v41 = vld [vmem:[%s6854_s14 + $0x460] sm:$0xff]  ;;  %v3240_v17 = vld [vmem:[%s6854_s14 + $0x468] sm:$0xff]  ;;  %v3258_v58 = vld [vmem:[%s6854_s14 + $0x4f8] sm:$0xff] }
 0x7bb   : > { %v3289_v47 = vld [vmem:[%s6854_s14 + $0x5f0] sm:$0xff]  ;;  %v3290_v52 = vld [vmem:[%s6854_s14 + $0x5f8] sm:$0xff]  ;;  %v3291_v60 = vld [vmem:[%s6854_s14 + $0x600] sm:$0xff] }
 0x7bc   : > { %4715 = vmatpush3.bf16.msra.mxu1 %v4714_v14  ;;  %4747 = vmatpush3.bf16.msra.mxu0 %v4746_v15  ;;  %v3177_v14 = vld [vmem:[%s6854_s14 + $0x270] sm:$0xff]  ;;  %v3178_v15 = vld [vmem:[%s6854_s14 + $0x278] sm:$0xff]  ;;  %v3292_v5 = vld [vmem:[%s6854_s14 + $0x608] sm:$0xff] }
 0x7bd   : > { %4717 = vmatprep.subr.bf16.mxu1 %v4716_v18  ;;  %4749 = vmatprep.subr.bf16.mxu0 %v4748_v19  ;;  %v3209_v18 = vld [vmem:[%s6854_s14 + $0x370] sm:$0xff]  ;;  %v3210_v19 = vld [vmem:[%s6854_s14 + $0x378] sm:$0xff]  ;;  %v4738_v29 = vpack.c.bf16 %v3178_v15, %v3177_v14  ;;  %v4818_v15 = vpack.c.bf16 %v3266_v32, %v3265_v40  ;;  %v3295_v40 = vld [vmem:[%s6854_s14 + $0x620] sm:$0xff] }
 0x7be   : > { %v4770_v48 = vpack.c.bf16 %v3210_v19, %v3209_v18  ;;  %v4788_v18 = vpack.c.bf16 %v3252_v12, %v3251_v46  ;;  %v3296_v32 = vld [vmem:[%s6854_s14 + $0x628] sm:$0xff]  ;;  %v3297_v12 = vld [vmem:[%s6854_s14 + $0x630] sm:$0xff] }
 0x7bf   : > { %v4843_v46 = vpack.c.bf16 %v3296_v32, %v3295_v40 }
 0x7c0   : > { %4719 = vmatpush3.bf16.msra.mxu1 %v4718_v30  ;;  %4751 = vmatpush3.bf16.msra.mxu0 %v4750_v22  ;;  %v3227_v30 = vld [vmem:[%s6854_s14 + $0x400] sm:$0xff]  ;;  %v3228_v22 = vld [vmem:[%s6854_s14 + $0x408] sm:$0xff] }
 0x7c1   : > { %4721 = vmatprep.subr.bf16.mxu1 %v4720_v25  ;;  %4753 = vmatprep.subr.bf16.mxu0 %v4752_v33  ;;  %v3259_v25 = vld [vmem:[%s6854_s14 + $0x500] sm:$0xff]  ;;  %v3260_v33 = vld [vmem:[%s6854_s14 + $0x508] sm:$0xff] }
 0x7c4   : > { %4723 = vmatpush3.bf16.msra.mxu1 %v4722_v39  ;;  %4755 = vmatpush3.bf16.msra.mxu0 %v4754_v50  ;;  %v4774_v39 = vpack.c.bf16 %v3228_v22, %v3227_v30  ;;  %v4806_v50 = vpack.c.bf16 %v3260_v33, %v3259_v25  ;;  %v4822_v22 = vpack.c.bf16 %v3268_v0, %v3267_v20  ;;  %v3797_v20 = vld [vmem:[%s6855_s15 + $0x18] sm:$0xff] }
 0x7c5   : > { %4725 = vmatprep.subr.bf16.mxu1 %v4724_v21  ;;  %4757 = vmatprep.subr.bf16.mxu0 %v4756_v24  ;;  %v4792_v25 = vpack.c.bf16 %v3254_v28, %v3253_v27  ;;  %v3798_v27 = vld [vmem:[%s6855_s15 + $0x20] sm:$0xff]  ;;  %v3799_v28 = vld [vmem:[%s6855_s15 + $0x28] sm:$0xff] }
 0x7c8   : > { %4727 = vmatpush3.bf16.msra.mxu1 %v4726_v55  ;;  %4759 = vmatpush3.bf16.msra.mxu0 %v4758_v57  ;;  %v3279_v55 = vld [vmem:[%s6854_s14 + $0x5a0] sm:$0xff]  ;;  %v3280_v57 = vld [vmem:[%s6854_s14 + $0x5a8] sm:$0xff] }
 0x7c9   : > { %4729 = vmatprep.subr.bf16.mxu1 %v4728_v62  ;;  %4761 = vmatprep.subr.bf16.mxu0 %v4760_v53  ;;  %v3231_v62 = vld [vmem:[%s6854_s14 + $0x420] sm:$0xff]  ;;  %v3232_v53 = vld [vmem:[%s6854_s14 + $0x428] sm:$0xff]  ;;  %v4812_v2 = vpack.c.bf16 %v3280_v57, %v3279_v55  ;;  %v4798_v55 = vpack.c.bf16 %v3240_v17, %v3239_v41 }
 0x7ca   : > { %v4782_v49 = vpack.c.bf16 %v3232_v53, %v3231_v62  ;;  %v3242_v62 = vld [vmem:[%s6854_s14 + $0x478] sm:$0xff]  ;;  %v4832_v53 = vpack.c.bf16 %v3290_v52, %v3289_v47 }
 0x7cc   : > { %4731 = vmatpush3.bf16.msra.mxu1 %v4730_v6  ;;  %4763 = vmatpush3.bf16.msra.mxu0 %v4762_v63  ;;  %v3281_v6 = vld [vmem:[%s6854_s14 + $0x5b0] sm:$0xff]  ;;  %v3282_v63 = vld [vmem:[%s6854_s14 + $0x5b8] sm:$0xff] }
 0x7cd   : > { %4733 = vmatprep.subr.bf16.mxu1 %v4732_v8  ;;  %4765 = vmatprep.subr.bf16.mxu0 %v4764_v9  ;;  %v3233_v8 = vld [vmem:[%s6854_s14 + $0x430] sm:$0xff]  ;;  %v3234_v9 = vld [vmem:[%s6854_s14 + $0x438] sm:$0xff]  ;;  %v4816_v11 = vpack.c.bf16 %v3282_v63, %v3281_v6 }
 0x7ce   : > { %v4786_v14 = vpack.c.bf16 %v3234_v9, %v3233_v8  ;;  %v3293_v9 = vld [vmem:[%s6854_s14 + $0x610] sm:$0xff] }
 0x7d0   : > { %4735 = vmatpush3.bf16.msra.mxu1 %v4734_v56  ;;  %4767 = vmatpush3.bf16.msra.mxu0 %v4766_v13  ;;  %v3283_v56 = vld [vmem:[%s6854_s14 + $0x5c0] sm:$0xff]  ;;  %v3284_v13 = vld [vmem:[%s6854_s14 + $0x5c8] sm:$0xff] }
 0x7d1   : > { %4737 = vmatprep.subr.bf16.mxu1 %v4736_v16  ;;  %4769 = vmatprep.subr.bf16.mxu0 %v4768_v51  ;;  %v3235_v16 = vld [vmem:[%s6854_s14 + $0x440] sm:$0xff]  ;;  %v3236_v51 = vld [vmem:[%s6854_s14 + $0x448] sm:$0xff]  ;;  %v4820_v19 = vpack.c.bf16 %v3284_v13, %v3283_v56  ;;  %v3298_v56 = vld [vmem:[%s6854_s14 + $0x638] sm:$0xff] }
 0x7d2   : > { %v4790_v30 = vpack.c.bf16 %v3236_v51, %v3235_v16  ;;  %v4846_v13 = vpack.c.bf16 %v3298_v56, %v3297_v12  ;;  %v3794_v16 = vld [vmem:[%s6855_s15] sm:$0xff]  ;;  %v3795_v51 = vld [vmem:[%s6855_s15 + $0x8] sm:$0xff] }
 0x7d4   : > { %v2811_v37 = vpop.f32.mrb[74].mxu0  ;;  %4739 = vmatpush3.bf16.msra.mxu1 %v4738_v29  ;;  %v2882_v38 = vpop.f32.mrb[86].mxu1  ;;  %4771 = vmatpush3.bf16.msra.mxu0 %v4770_v48  ;;  %v3285_v29 = vld [vmem:[%s6854_s14 + $0x5d0] sm:$0xff]  ;;  %v3286_v48 = vld [vmem:[%s6854_s14 + $0x5d8] sm:$0xff] }
 0x7d5   : > { %v2813_v21 = vpop.f32.mrb[75].mxu0  ;;  %v2884_v24 = vpop.f32.mrb[87].mxu1  ;;  %4773 = vmatprep.subr.bf16.mxu1 %v4772_v31  ;;  %4805 = vmatprep.subr.bf16.mxu0 %v4804_v23  ;;  %v3237_v31 = vld [vmem:[%s6854_s14 + $0x450] sm:$0xff]  ;;  %v3238_v23 = vld [vmem:[%s6854_s14 + $0x458] sm:$0xff]  ;;  %v4824_v33 = vpack.c.bf16 %v3286_v48, %v3285_v29  ;;  %v4855_v29 = vpack.c.bf16 %v3799_v28, %v3798_v27 }
 0x7d6   : > { %3507 = vmatprep.mubr.f32.mxu1 %v2813_v21  ;;  %3577 = vmatprep.mubr.f32.mxu0 %v2884_v24  ;;  %v4796_v21 = vpack.c.bf16 %v3256_v36, %v3255_v35  ;;  %v3800_v48 = vld [vmem:[%s6855_s15 + $0x30] sm:$0xff]  ;;  %v3806_v35 = vld [vmem:[%s6855_s15 + $0x60] sm:$0xf] }
 0x7d7   : > { %3508 = vmatmul.mubr.f32.vlgmr.msra.gmra.mrb[92].mxu1 %v2811_v37  ;;  %3578 = vmatmul.mubr.f32.vlgmr.msra.gmra.mrb[82].mxu0 %v2882_v38  ;;  %v3287_v37 = vld [vmem:[%s6854_s14 + $0x5e0] sm:$0xff]  ;;  %v3288_v38 = vld [vmem:[%s6854_s14 + $0x5e8] sm:$0xff] }
 0x7d8   : > { %4775 = vmatpush3.bf16.msra.mxu1 %v4774_v39  ;;  %4807 = vmatpush3.bf16.msra.mxu0 %v4806_v50  ;;  %v4794_v39 = vpack.c.bf16 %v3238_v23, %v3237_v31  ;;  %v4826_v50 = vpack.c.bf16 %v3270_v54, %v3269_v34  ;;  %v4828_v24 = vpack.c.bf16 %v3288_v38, %v3287_v37  ;;  %v3802_v31 = vld [vmem:[%s6855_s15 + $0x40] sm:$0xff]  ;;  %v3803_v23 = vld [vmem:[%s6855_s15 + $0x48] sm:$0xff]  ;;  %v3805_v34 = vld [vmem:[%s6855_s15 + $0x58] sm:$0xff] }
 0x7d9   : > { %4777 = vmatprep.subr.bf16.mxu1 %v4776_v42  ;;  %4809 = vmatprep.subr.bf16.mxu0 %v4808_v43  ;;  %v3271_v42 = vld [vmem:[%s6854_s14 + $0x560] sm:$0xff]  ;;  %v3272_v43 = vld [vmem:[%s6854_s14 + $0x568] sm:$0xff] }
 0x7da   : > { %v4830_v57 = vpack.c.bf16 %v3272_v43, %v3271_v42  ;;  %v3299_v37 = vld [vmem:[%s6853_s13] sm:$0x1] }
 0x7dc   : > { %4779 = vmatpush3.bf16.msra.mxu1 %v4778_v44  ;;  %4811 = vmatpush3.bf16.msra.mxu0 %v4810_v61  ;;  %v3241_v44 = vld [vmem:[%s6854_s14 + $0x470] sm:$0xff]  ;;  %v4800_v61 = vpack.c.bf16 %v3258_v58, %v3257_v45 }
 0x7dd   : > { %4781 = vmatprep.subr.bf16.mxu1 %v4780_v1  ;;  %4813 = vmatprep.subr.bf16.mxu0 %v4812_v2  ;;  %v3273_v1 = vld [vmem:[%s6854_s14 + $0x570] sm:$0xff]  ;;  %v3274_v2 = vld [vmem:[%s6854_s14 + $0x578] sm:$0xff]  ;;  %v4802_v3 = vpack.c.bf16 %v3242_v62, %v3241_v44 }
 0x7de   : > { %v4834_v4 = vpack.c.bf16 %v3274_v2, %v3273_v1 }
 0x7e0   : > { %4783 = vmatpush3.bf16.msra.mxu1 %v4782_v49  ;;  %4815 = vmatpush3.bf16.msra.mxu0 %v4814_v7  ;;  %v4837_v49 = vpack.c.bf16 %v3292_v5, %v3291_v60 }
 0x7e1   : > { %4785 = vmatprep.subr.bf16.mxu1 %v4784_v10  ;;  %4817 = vmatprep.subr.bf16.mxu0 %v4816_v11  ;;  %v3294_v10 = vld [vmem:[%s6854_s14 + $0x618] sm:$0xff] }
 0x7e2   : > { %v4840_v11 = vpack.c.bf16 %v3294_v10, %v3293_v9 }
 0x7e4   : > { %4787 = vmatpush3.bf16.msra.mxu1 %v4786_v14  ;;  %4819 = vmatpush3.bf16.msra.mxu0 %v4818_v15 }
 0x7e5   : > { %4789 = vmatprep.subr.bf16.mxu1 %v4788_v18  ;;  %4821 = vmatprep.subr.bf16.mxu0 %v4820_v19  ;;  %v4849_v18 = vpack.c.bf16 %v3795_v51, %v3794_v16  ;;  %v3796_v19 = vld [vmem:[%s6855_s15 + $0x10] sm:$0xff] }
 0x7e6   : > { %v4852_v0 = vpack.c.bf16 %v3797_v20, %v3796_v19 }
 0x7e8   : > { %4791 = vmatpush3.bf16.msra.mxu1 %v4790_v30  ;;  %4823 = vmatpush3.bf16.msra.mxu0 %v4822_v22  ;;  %v3801_v30 = vld [vmem:[%s6855_s15 + $0x38] sm:$0xff] }
 0x7e9   : > { %4793 = vmatprep.subr.bf16.mxu1 %v4792_v25  ;;  %4825 = vmatprep.subr.bf16.mxu0 %v4824_v33  ;;  %v4858_v22 = vpack.c.bf16 %v3801_v30, %v3800_v48  ;;  %v4861_v25 = vpack.c.bf16 %v3803_v23, %v3802_v31  ;;  %v3804_v33 = vld [vmem:[%s6855_s15 + $0x50] sm:$0xff] }
 0x7ea   : > { %v4864_v54 = vpack.c.bf16 %v3805_v34, %v3804_v33 }
 0x7ec   : > { %4795 = vmatpush3.bf16.msra.mxu1 %v4794_v39  ;;  %4827 = vmatpush3.bf16.msra.mxu0 %v4826_v50 }
 0x7ed   : > { %4797 = vmatprep.subr.bf16.mxu1 %v4796_v21  ;;  %4829 = vmatprep.subr.bf16.mxu0 %v4828_v24 }
 0x7f0   : > { %4799 = vmatpush3.bf16.msra.mxu1 %v4798_v55  ;;  %4831 = vmatpush3.bf16.msra.mxu0 %v4830_v57 }
 0x7f1   : > { %4801 = vmatprep.subr.bf16.mxu1 %v4800_v61  ;;  %4833 = vmatprep.subr.bf16.mxu0 %v4832_v53 }
 0x7f4   : > { %v2953_v6 = vpop.f32.mrb[76].mxu0  ;;  %4803 = vmatpush3.bf16.msra.mxu1 %v4802_v3  ;;  %v3024_v63 = vpop.f32.mrb[88].mxu1  ;;  %4835 = vmatpush3.bf16.msra.mxu0 %v4834_v4 }
 0x7f5   : > { %v2955_v7 = vpop.f32.mrb[77].mxu0  ;;  %v3026_v8 = vpop.f32.mrb[89].mxu1  ;;  %4836 = vmatprep.subr.bf16.mxu1 %v5099_v59  ;;  %4848 = vmatprep.subr.bf16.mxu0 %v5099_v59 }
 0x7f6   : > { %3647 = vmatprep.mubr.f32.mxu1 %v2955_v7  ;;  %3717 = vmatprep.mubr.f32.mxu0 %v3026_v8 }
 0x7f7   : > { %3648 = vmatmul.mubr.f32.vlgmr.msra.gmra.mrb[94].mxu1 %v2953_v6  ;;  %3718 = vmatmul.mubr.f32.vlgmr.msra.gmra.mrb[84].mxu0 %v3024_v63  ;;  %v3807_v6 = vld [vmem:[%s6856_s16] sm:$0x1] }
 0x7f8   : > { %4838 = vmatpush3.bf16.msra.mxu1 %v4837_v49  ;;  %4504 = vmatprep.mubr.msk.f32.mxu1 %vm5100_vm12, %v5097_v26 }
 0x7f9   : > { %4839 = vmatprep.subr.bf16.mxu1 %v5099_v59  ;;  %4533 = vmatprep.mubr.msk.f32.mxu0 %vm5100_vm12, %v5097_v26 }
 0x7fa   : > { %4850 = vmatpush3.bf16.msra.mxu0 %v4849_v18 }
 0x7fb   : > { %4851 = vmatprep.subr.bf16.mxu0 %v5099_v59 }
 0x7fc   : > { %4841 = vmatpush3.bf16.msra.mxu1 %v4840_v11 }
 0x7fd   : > { %4842 = vmatprep.subr.bf16.mxu1 %v5099_v59 }
 0x7fe   : > { %4853 = vmatpush3.bf16.msra.mxu0 %v4852_v0 }
 0x7ff   : > { %4854 = vmatprep.subr.bf16.mxu0 %v5099_v59 }
 0x800   : > { %4844 = vmatpush3.bf16.msra.mxu1 %v4843_v46 }
 0x801   : > { %4845 = vmatprep.subr.bf16.mxu1 %v5099_v59 }
 0x802   : > { %4856 = vmatpush3.bf16.msra.mxu0 %v4855_v29 }
 0x803   : > { %4857 = vmatprep.subr.bf16.mxu0 %v5099_v59 }
 0x804   : > { %4847 = vmatpush3.bf16.msra.mxu1 %v4846_v13 }
 0x806   : > { %4859 = vmatpush3.bf16.msra.mxu0 %v4858_v22 }
 0x807   : > { %v3095_v14 = vpop.f32.mrb[78].mxu0  ;;  %4860 = vmatprep.subr.bf16.mxu0 %v5099_v59 }
 0x808   : > { %4505 = vmatmul.mubr.msk.f32.vlgmr.msra.gmra.mrb[96].mxu1 %vm2599_vm11, %v3095_v14  ;;  %v4487_v15 = vpop.f32.mrb[79].mxu0 }
 0x80a   : > { %4862 = vmatpush3.bf16.msra.mxu0 %v4861_v25 }
 0x80b   : > { %4863 = vmatprep.subr.bf16.mxu0 %v5099_v59 }
 0x80e   : > { %4865 = vmatpush3.bf16.msra.mxu0 %v4864_v54 }
 0x80f   : > { %4531 = vmatprep.subr.mxu0 %v5097_v26 }
 0x812   : > { %4532 = vmatpush3.msk.msra.mxu0 %vm3812_vm13, %v3806_v35 }
 0x88a   : > { %v4222_v36 = vpop.f32.mrb[90].mxu1  ;;  %v4257_v59 = vpop.f32.mrb[80].mxu0 }
 0x88b   : > { %v4223_v38 = vpop.f32.mrb[91].mxu1  ;;  %v4258_v39 = vpop.f32.mrb[81].mxu0 }
 0x88c   : > { %v4224_v50 = vadd.f32 %v4223_v38, %v4222_v36  ;;  %v4259_v41 = vadd.f32 %v4258_v39, %v4257_v59 }
 0x88e   : > { %v3370_v17 = vadd.f32 %v4224_v50, %v3299_v37 }
 0x890   : > { %v3440_v21 = vadd.f32 %v4259_v41, %v3370_v17 }
 0x8aa   : > { %v4292_v24 = vpop.f32.mrb[92].mxu1  ;;  %v4327_v26 = vpop.f32.mrb[82].mxu0 }
 0x8ab   : > { %v4293_v42 = vpop.f32.mrb[93].mxu1  ;;  %v4328_v43 = vpop.f32.mrb[83].mxu0 }
 0x8ac   : > { %v4294_v45 = vadd.f32 %v4293_v42, %v4292_v24  ;;  %v4329_v58 = vadd.f32 %v4328_v43, %v4327_v26 }
 0x8ae   : > { %v3510_v47 = vadd.f32 %v4294_v45, %v3440_v21 }
 0x8b0   : > { %v3580_v52 = vadd.f32 %v4329_v58, %v3510_v47 }
 0x8ca   : > { %v4362_v55 = vpop.f32.mrb[94].mxu1  ;;  %v4397_v57 = vpop.f32.mrb[84].mxu0 }
 0x8cb   : > { %v4363_v44 = vpop.f32.mrb[95].mxu1  ;;  %v4398_v61 = vpop.f32.mrb[85].mxu0 }
 0x8cc   : > { %v4364_v62 = vadd.f32 %v4363_v44, %v4362_v55  ;;  %v4399_v53 = vadd.f32 %v4398_v61, %v4397_v57 }
 0x8ce   : > { %v3650_v1 = vadd.f32 %v4364_v62, %v3580_v52 }
 0x8d0   : > { %v3720_v2 = vadd.f32 %v4399_v53, %v3650_v1 }
 0x8db   : > { %v3789_v3 = vpop.f32.mrb[96].mxu1 }
 0x8dc   : > { %v3790_v4 = vadd.f32 %v3789_v3, %v3720_v2  ;;  %v4506_v60 = vpop.f32.mrb[97].mxu1 }
 0x8de   : > { %v3793_v5 = vmax.f32 %v3790_v4, 0.0 }
 0x8e0   : > { %4534 = vmatmul.mubr.msk.f32.vlgmr.msra.gmra.mrb[86].mxu0 %vm3808_vm14, %v3793_v5 }
 0x9b3   : > { %v3882_v63 = vpop.f32.mrb[86].mxu0 }
 0x9b4   : > { %v3883_v49 = vadd.f32 %v3882_v63, %v3807_v6  ;;  %v4535_v7 = vpop.f32.mrb[87].mxu0 }
 0x9b6   : > { %3886 = vst [vmem:[%s540_s3] sm:$0x1] %v3883_v49 }
 0x9b7   : > { %5031 = shalt.err (!%p5028_p3)
}
 0x9b8   : > { %s5032_s0 = scalar_lea.hbm %s6798_s23, 16  ;;  %s5036_s3 = scalar_lea.hbm %s6857_s17, 32 }
 0x9b9   : > { %p5033_p4 = scmp.ne.s32.totalorder %s6798_s23, %s5032_s0  ;;  %p5037_p9 = scmp.lt.u32.totalorder %s6798_s23, %s6857_s17 }
 0x9ba   : > { %p5038_p10 = scmp.lt.u32.totalorder %s5036_s3, %s5032_s0  ;;  %p5040_p12 = scmp.lt.u32.totalorder %s5032_s0, %s6798_s23 }
 0x9bb   : > { %p5034_p7 = pnand %p5033_p4, %p5230_p5 }
 0x9bc   : > { %p5039_p11 = por %p5038_p10, %p5037_p9 }
 0x9bd   : > { %p5035_p8 = pneg %p5034_p7 }
 0x9be   : > { %p5041_p13 = por %p5040_p12, %p5039_p11 }
 0x9c0   : > { %p5042_p0 = pnand %p5041_p13, %p5035_p8 }
 0x9c2   : > { %5045 = shalt.err (!%p5042_p0)
}
 0x9c3   : > { %4883 = dma.vmem_to_hbm [thread:$0]  (%p5230_p5), %s6800_s21, 16, %s6798_s23, %s3888_s29  }
 0x9c4 PF: > { %p4889_p1 = scmp.ge.s32.totalorder %s5080_s27, 2  ;;  %s3912_s28 = sand.u32 1, %s5068_s24  }
 0x9c5   : > { %s3913_s26 = scalar_lea.sflag [#allocation3], %s3912_s28 }
 0x9c6   : > { %p4886_p2 = pnand %p4889_p1, %p5234_p6 }
 0x9c8   : > { %5063 = dma.done.wait (!%p4886_p2), %s3913_s26, 16  }
 0x9c9   : > { %5065 = vsyncadd (!%p4886_p2), %s3913_s26, 4294967280  ;;  %s6883_s27 = sld [smem:[#allocation6_spill]]  ;;  %s6884_s18 = sld [smem:[#allocation5_spill]] }
 0x9ca   : > { %s6885_s26 = sld [smem:[#allocation7_spill]]  ;;  %s6886_s24 = smov %s5072_s25 }
 0x9cf   : > { %p27_p3 = scmp.ge.s32.totalorder %s6883_s27, 4   ;;  %s6887_s25 = smov %s6884_s18 }
 0x9d1   :  { %29 = sbr.rel (!%p27_p3) target bundleno = 8 (0x8), region = 137 }
 0x9d8   :  { %3917 = vsyncpa [#allocation3], 1 }
 0x9d9   :  { %3919 = vsyncpa [#allocation3 + $0x1], 1 }

</bundles_post_ra>
